<compile_context>
chip_gen: v5e
topology: v5e:2x2
jax: 0.10.0
libtpu: 0.0.40
codegen_flags: <defaults>
</compile_context>

<pallas_src>
import jax
import jax.numpy as jnp
from jax import lax
from jax.experimental import pallas as pl
from jax.experimental.pallas import tpu as pltpu

EPS = 1e-5                     # torch.nn.BatchNorm2d default eps
LANE = 128                     # TPU lane width
VMEM_LIMIT = 48 * 1024 * 1024  # comfortably under v5e/v6e/v7x physical VMEM


def _ceil_to(x, m):
    return ((x + m - 1) // m) * m


def _pick_block(total, target, quantum):
    """Largest divisor of `total` that is <= target and a multiple of `quantum`;
    falls back to `total` (a full dimension is always a legal block)."""
    best = None
    d = quantum
    lim = min(total, target)
    while d <= lim:
        if total % d == 0:
            best = d
        d += quantum
    return best if best is not None else total


def _pad_to(a, shape):
    return jnp.pad(a, [(0, s - d) for d, s in zip(a.shape, shape)])


def _sigmoid(z):
    return 1.0 / (1.0 + jnp.exp(-z))


# ----------------------------- Kernel 1: expand -------------------------------
def _expand_kernel(x_ref, we_ref, be_ref, y_ref, stat_ref):
    y = jnp.dot(x_ref[...], we_ref[...], preferred_element_type=jnp.float32)
    y = y + be_ref[...]
    y_ref[...] = y.astype(y_ref.dtype)
    # single-pass partial BatchNorm statistics for this row tile
    stat_ref[0, 0:1, :] = jnp.sum(y, axis=0, keepdims=True)
    stat_ref[0, 1:2, :] = jnp.sum(y * y, axis=0, keepdims=True)


# --------------------------- Kernel 2: depthwise -------------------------------
def _dw_kernel(y_ref, sce_ref, she_ref, wdw_ref, bdw_ref,
               dw_ref, stat_ref, ypad_ref):
    _, H, W, CB = dw_ref.shape
    K = wdw_ref.shape[0]
    p = K // 2
    # BN(expand) affine + ReLU6, staged into a zero-padded VMEM scratch tile
    # (replaces the old 9x im2col materialization in HBM).
    ypad_ref[...] = jnp.zeros(ypad_ref.shape, ypad_ref.dtype)
    y = y_ref[0].astype(jnp.float32)
    y = jnp.clip(y * sce_ref[0] + she_ref[0], 0.0, 6.0)
    ypad_ref[p:p + H, p:p + W, :] = y
    yp = ypad_ref[...]
    w = wdw_ref[...].astype(jnp.float32)
    taps = [yp[dy:dy + H, dx:dx + W, :] * w[dy, dx]
            for dy in range(K) for dx in range(K)]
    while len(taps) > 1:                      # pairwise tree-sum (VALU ILP)
        nxt = [taps[i] + taps[i + 1] for i in range(0, len(taps) - 1, 2)]
        if len(taps) % 2:
            nxt.append(taps[-1])
        taps = nxt
    d = taps[0] + bdw_ref[0]
    dw_ref[...] = d[None].astype(dw_ref.dtype)
    stat_ref[0, 0:1, :] = jnp.sum(d, axis=(0, 1))[None, :]
    stat_ref[0, 1:2, :] = jnp.sum(d * d, axis=(0, 1))[None, :]


# --------------------------- Kernel 3: SE pooling ------------------------------
def _pool_kernel(dw_ref, sc_ref, sh_ref, pool_ref):
    _, H, W, _ = dw_ref.shape
    d = dw_ref[0].astype(jnp.float32)
    d = jnp.clip(d * sc_ref[0] + sh_ref[0], 0.0, 6.0)       # BN_dw + ReLU6
    pool_ref[...] = (jnp.sum(d, axis=(0, 1)) * (1.0 / (H * W)))[None, None, :]


# ----------------------------- Kernel 4: SE MLP --------------------------------
def _se_kernel(pool_ref, wf1_ref, bf1_ref, wf2_ref, bf2_ref, gate_ref):
    pooled = pool_ref[:, 0, :]                               # (N, Cexp_p) f32
    h = jnp.dot(pooled.astype(wf1_ref.dtype), wf1_ref[...],
                preferred_element_type=jnp.float32) + bf1_ref[...]
    h = jnp.maximum(h, 0.0)
    z = jnp.dot(h.astype(wf2_ref.dtype), wf2_ref[...],
                preferred_element_type=jnp.float32) + bf2_ref[...]
    gate_ref[...] = _sigmoid(z)[:, None, :]


# --------------------- Kernel 5: SE scale + 1x1 shrink -------------------------
def _shrink_kernel(dw_ref, sc_ref, sh_ref, gate_ref, ws_ref, bs_ref,
                   o_ref, stat_ref):
    d = dw_ref[0].astype(jnp.float32)                        # (TS, Cexp_p)
    d = jnp.clip(d * sc_ref[...] + sh_ref[...], 0.0, 6.0)    # BN_dw + ReLU6
    d = d * gate_ref[0]                                      # SE gate
    o = jnp.dot(d.astype(ws_ref.dtype), ws_ref[...],
                preferred_element_type=jnp.float32) + bs_ref[...]
    o_ref[...] = o[None].astype(o_ref.dtype)
    stat_ref[0, 0, 0:1, :] = jnp.sum(o, axis=0, keepdims=True)
    stat_ref[0, 0, 1:2, :] = jnp.sum(o * o, axis=0, keepdims=True)


# --------------------- Kernel 6: BN_shrink + residual --------------------------
def _final_kernel(o_ref, sc_ref, sh_ref, x_ref, out_ref):
    o = o_ref[...].astype(jnp.float32)
    out_ref[...] = (o * sc_ref[...] + sh_ref[...] + x_ref[...]).astype(out_ref.dtype)


# ------------------------------ Wrapper --------------------------------------
def rmbse_forward(x_nchw, p, compute_dtype=jnp.float32):
    N, Cin, H, W = x_nchw.shape
    Cexp = p["we"].shape[1]
    Cse = p["wf1"].shape[1]
    K = p["wdw"].shape[0]
    pad = K // 2
    R = N * H * W
    HW = H * W
    f32 = jnp.float32
    cdt = compute_dtype

    Cin_p = _ceil_to(Cin, LANE)
    Cexp_p = _ceil_to(Cexp, LANE)
    Cse_p = _ceil_to(Cse, LANE)

    # -------- lane-dense (zero-padded) parameters; padded channels are inert ----
    we = _pad_to(p["we"], (Cin_p, Cexp_p)).astype(cdt)
    be = _pad_to(p["be"], (1, Cexp_p)).astype(f32)
    g_e = _pad_to(p["g_e"], (1, Cexp_p)).astype(f32)
    bt_e = _pad_to(p["bt_e"], (1, Cexp_p)).astype(f32)
    wdw = _pad_to(p["wdw"], (K, K, Cexp_p)).astype(cdt)
    bdw = _pad_to(p["bdw"], (1, Cexp_p)).astype(f32)
    g_dw = _pad_to(p["g_dw"], (1, Cexp_p)).astype(f32)
    bt_dw = _pad_to(p["bt_dw"], (1, Cexp_p)).astype(f32)
    wf1 = _pad_to(p["wf1"], (Cexp_p, Cse_p)).astype(cdt)
    bf1 = _pad_to(p["bf1"], (1, Cse_p)).astype(f32)
    wf2 = _pad_to(p["wf2"], (Cse_p, Cexp_p)).astype(cdt)
    bf2 = _pad_to(p["bf2"], (1, Cexp_p)).astype(f32)
    ws = _pad_to(p["ws"], (Cexp_p, Cin_p)).astype(cdt)
    bs = _pad_to(p["bs"], (1, Cin_p)).astype(f32)
    g_s = _pad_to(p["g_s"], (1, Cin_p)).astype(f32)
    bt_s = _pad_to(p["bt_s"], (1, Cin_p)).astype(f32)

    x_nhwc = jnp.transpose(x_nchw, (0, 2, 3, 1)).astype(f32)
    x_pad = _pad_to(x_nhwc, (N, H, W, Cin_p))
    x_flat = x_pad.reshape(R, Cin_p)

    # tile sizes (divisors only -> no ragged edge blocks corrupting statistics)
    TR = _pick_block(R, 512, 8)        # row tile for K1 / K6
    nRt = R // TR
    CB = _pick_block(Cexp_p, 256, LANE)  # channel block for K2 / K3
    nCt = Cexp_p // CB
    TS = _pick_block(HW, 512, 8)       # per-image row tile for K5
    nSt = HW // TS
    # TODO: add H-halo tiling inside K2/K3 for very large spatial extents.

    def _cparams(*sem):
        return pltpu.CompilerParams(dimension_semantics=sem,
                                    vmem_limit_bytes=VMEM_LIMIT)

    def _affine(stats, cnt, gamma, beta):
        """Fold training-mode BN (single-pass sum / sumsq) into scale & shift."""
        ssum, ssq = stats[0], stats[1]
        mean = ssum / cnt
        var = jnp.maximum(ssq / cnt - mean * mean, 0.0)
        scale = gamma * lax.rsqrt(var + EPS)           # (1, C)
        shift = beta - mean * scale                    # (1, C)
        return scale.astype(f32), shift.astype(f32)

    # ---------------- K1: 1x1 expand conv + BN_expand partial stats -------------
    y_raw, stat_e = pl.pallas_call(
        _expand_kernel,
        grid=(nRt,),
        in_specs=(
            pl.BlockSpec((TR, Cin_p), lambda i: (i, 0)),
            pl.BlockSpec((Cin_p, Cexp_p), lambda i: (0, 0)),
            pl.BlockSpec((1, Cexp_p), lambda i: (0, 0)),
        ),
        out_specs=(
            pl.BlockSpec((TR, Cexp_p), lambda i: (i, 0)),
            pl.BlockSpec((1, 2, Cexp_p), lambda i: (i, 0, 0)),
        ),
        out_shape=(
            jax.ShapeDtypeStruct((R, Cexp_p), cdt),
            jax.ShapeDtypeStruct((nRt, 2, Cexp_p), f32),
        ),
        compiler_params=_cparams("parallel"),
    )(x_flat.astype(cdt), we, be)

    sc_e, sh_e = _affine(jnp.sum(stat_e, axis=0), float(R), g_e, bt_e)
    y_img = y_raw.reshape(N, H, W, Cexp_p)

    # ------- K2: BN_e + ReLU6 + depthwise conv (+ BN_dw partial stats) ----------
    dw_raw, stat_dw = pl.pallas_call(
        _dw_kernel,
        grid=(N, nCt),
        in_specs=(
            pl.BlockSpec((1, H, W, CB), lambda n, c: (n, 0, 0, c)),
            pl.BlockSpec((1, CB), lambda n, c: (0, c)),
            pl.BlockSpec((1, CB), lambda n, c: (0, c)),
            pl.BlockSpec((K, K, CB), lambda n, c: (0, 0, c)),
            pl.BlockSpec((1, CB), lambda n, c: (0, c)),
        ),
        out_specs=(
            pl.BlockSpec((1, H, W, CB), lambda n, c: (n, 0, 0, c)),
            pl.BlockSpec((1, 2, CB), lambda n, c: (n, 0, c)),
        ),
        out_shape=(
            jax.ShapeDtypeStruct((N, H, W, Cexp_p), cdt),
            jax.ShapeDtypeStruct((N, 2, Cexp_p), f32),
        ),
        scratch_shapes=[pltpu.VMEM((H + 2 * pad, W + 2 * pad, CB), f32)],
        compiler_params=_cparams("parallel", "parallel"),
    )(y_img, sc_e, sh_e, wdw, bdw)

    sc_dw, sh_dw = _affine(jnp.sum(stat_dw, axis=0), float(R), g_dw, bt_dw)

    # ---------------- K3: SE global average pool (post BN_dw + ReLU6) -----------
    pooled = pl.pallas_call(
        _pool_kernel,
        grid=(N, nCt),
        in_specs=(
            pl.BlockSpec((1, H, W, CB), lambda n, c: (n, 0, 0, c)),
            pl.BlockSpec((1, CB), lambda n, c: (0, c)),
            pl.BlockSpec((1, CB), lambda n, c: (0, c)),
        ),
        out_specs=pl.BlockSpec((1, 1, CB), lambda n, c: (n, 0, c)),
        out_shape=jax.ShapeDtypeStruct((N, 1, Cexp_p), f32),
        compiler_params=_cparams("parallel", "parallel"),
    )(dw_raw, sc_dw, sh_dw)

    # ---------------- K4: SE MLP (tiny, whole arrays in VMEM) -------------------
    vmem = pl.BlockSpec(memory_space=pltpu.MemorySpace.VMEM)
    gate = pl.pallas_call(
        _se_kernel,
        in_specs=[vmem] * 5,
        out_specs=vmem,
        out_shape=jax.ShapeDtypeStruct((N, 1, Cexp_p), f32),
    )(pooled, wf1, bf1, wf2, bf2)

    # -------- K5: SE scale + 1x1 shrink conv (+ BN_shrink partial stats) --------
    dw_flat = dw_raw.reshape(N, HW, Cexp_p)
    o_raw, stat_s = pl.pallas_call(
        _shrink_kernel,
        grid=(N, nSt),
        in_specs=(
            pl.BlockSpec((1, TS, Cexp_p), lambda n, j: (n, j, 0)),
            pl.BlockSpec((1, Cexp_p), lambda n, j: (0, 0)),
            pl.BlockSpec((1, Cexp_p), lambda n, j: (0, 0)),
            pl.BlockSpec((1, 1, Cexp_p), lambda n, j: (n, 0, 0)),
            pl.BlockSpec((Cexp_p, Cin_p), lambda n, j: (0, 0)),
            pl.BlockSpec((1, Cin_p), lambda n, j: (0, 0)),
        ),
        out_specs=(
            pl.BlockSpec((1, TS, Cin_p), lambda n, j: (n, j, 0)),
            pl.BlockSpec((1, 1, 2, Cin_p), lambda n, j: (n, j, 0, 0)),
        ),
        out_shape=(
            jax.ShapeDtypeStruct((N, HW, Cin_p), f32),
            jax.ShapeDtypeStruct((N, nSt, 2, Cin_p), f32),
        ),
        compiler_params=_cparams("parallel", "parallel"),
    )(dw_flat, sc_dw, sh_dw, gate, ws, bs)

    sc_s, sh_s = _affine(jnp.sum(stat_s, axis=(0, 1)), float(R), g_s, bt_s)

    # ---------------- K6: BN_shrink + residual add -------------------------------
    out_flat = pl.pallas_call(
        _final_kernel,
        grid=(nRt,),
        in_specs=(
            pl.BlockSpec((TR, Cin_p), lambda i: (i, 0)),
            pl.BlockSpec((1, Cin_p), lambda i: (0, 0)),
            pl.BlockSpec((1, Cin_p), lambda i: (0, 0)),
            pl.BlockSpec((TR, Cin_p), lambda i: (i, 0)),
        ),
        out_specs=pl.BlockSpec((TR, Cin_p), lambda i: (i, 0)),
        out_shape=jax.ShapeDtypeStruct((R, Cin_p), f32),
        compiler_params=_cparams("parallel"),
    )(o_raw.reshape(R, Cin_p), sc_s, sh_s, x_flat)

    out = out_flat.reshape(N, H, W, Cin_p)[..., :Cin]
    return jnp.transpose(out, (0, 3, 1, 2))


# ------------------------ deterministic parameters ----------------------------
def init_params(key, in_channels, kernel_size, expansion=3, se_ratio=8):
    Cin = in_channels
    Cexp = expansion * Cin
    Cse = max(Cexp // se_ratio, 1)
    K = kernel_size
    ks = jax.random.split(key, 7)

    def kaiming_uniform(k, shape, fan_in):       # mode='fan_in', nonlinearity='relu'
        bound = jnp.sqrt(2.0) * jnp.sqrt(3.0 / fan_in)
        return jax.random.uniform(k, shape, jnp.float32, -bound, bound)

    we = kaiming_uniform(ks[0], (Cin, Cexp), Cin)          # 1x1 expand
    wdw = kaiming_uniform(ks[1], (K, K, Cexp), K * K)      # depthwise
    ws = kaiming_uniform(ks[2], (Cexp, Cin), Cexp)         # 1x1 shrink
    b1 = 1.0 / float(jnp.sqrt(jnp.float32(Cexp)))
    b2 = 1.0 / float(jnp.sqrt(jnp.float32(Cse)))
    wf1 = jax.random.uniform(ks[3], (Cexp, Cse), jnp.float32, -b1, b1)
    bf1 = jax.random.uniform(ks[4], (1, Cse), jnp.float32, -b1, b1)
    wf2 = jax.random.uniform(ks[5], (Cse, Cexp), jnp.float32, -b2, b2)
    bf2 = jax.random.uniform(ks[6], (1, Cexp), jnp.float32, -b2, b2)

    return dict(
        we=we, be=jnp.zeros((1, Cexp), jnp.float32),
        g_e=jnp.ones((1, Cexp), jnp.float32), bt_e=jnp.zeros((1, Cexp), jnp.float32),
        wdw=wdw, bdw=jnp.zeros((1, Cexp), jnp.float32),
        g_dw=jnp.ones((1, Cexp), jnp.float32), bt_dw=jnp.zeros((1, Cexp), jnp.float32),
        wf1=wf1, bf1=bf1, wf2=wf2, bf2=bf2,
        ws=ws, bs=jnp.zeros((1, Cin), jnp.float32),
        g_s=jnp.ones((1, Cin), jnp.float32), bt_s=jnp.zeros((1, Cin), jnp.float32),
    )


# ------------------------------ pure-JAX reference ----------------------------
def reference_forward(x, p):
    Cexp = p["we"].shape[1]
    K = p["wdw"].shape[0]
    pad = K // 2

    def bn(y, gamma, beta):
        mean = y.mean(axis=(0, 2, 3), keepdims=True)
        var = ((y - mean) ** 2).mean(axis=(0, 2, 3), keepdims=True)
        g = gamma.reshape(1, -1, 1, 1)
        b = beta.reshape(1, -1, 1, 1)
        return (y - mean) / jnp.sqrt(var + EPS) * g + b

    y = jnp.einsum('nchw,co->nohw', x, p["we"]) + p["be"].reshape(1, -1, 1, 1)
    y = jnp.clip(bn(y, p["g_e"], p["bt_e"]), 0.0, 6.0)
    wdw_oihw = jnp.transpose(p["wdw"], (2, 0, 1))[:, None, :, :]
    y = lax.conv_general_dilated(y, wdw_oihw, (1, 1), [(pad, pad), (pad, pad)],
                                 feature_group_count=Cexp,
                                 dimension_numbers=('NCHW', 'OIHW', 'NCHW'))
    y = y + p["bdw"].reshape(1, -1, 1, 1)
    y = jnp.clip(bn(y, p["g_dw"], p["bt_dw"]), 0.0, 6.0)
    pooled = y.mean(axis=(2, 3))
    h = jnp.maximum(pooled @ p["wf1"] + p["bf1"], 0.0)
    s = _sigmoid(h @ p["wf2"] + p["bf2"])
    y = y * s[:, :, None, None]
    o = jnp.einsum('nchw,co->nohw', y, p["ws"]) + p["bs"].reshape(1, -1, 1, 1)
    o = bn(o, p["g_s"], p["bt_s"])
    return o + x


if __name__ == "__main__":
    key = jax.random.PRNGKey(0)
    k_x, k_p = jax.random.split(key)
    N, Cin, H, W = 2, 4, 16, 16
    K = 3
    x = jax.random.normal(k_x, (N, Cin, H, W), jnp.float32)
    params = init_params(k_p, Cin, K, expansion=3, se_ratio=8)

    ref = reference_forward(x, params)

    fwd_f32 = jax.jit(lambda a, q: rmbse_forward(a, q, jnp.float32))
    fwd_bf16 = jax.jit(lambda a, q: rmbse_forward(a, q, jnp.bfloat16))

    out = jax.block_until_ready(fwd_f32(x, params))
    assert out.shape == x.shape
    err = float(jnp.max(jnp.abs(out - ref)))
    if not err < 3e-3:
        raise AssertionError(f"f32 mismatch vs reference: max abs err = {err}")

    # bf16 activations/weights (recommended on v6e/v7x): looser sanity check.
    out_bf = jax.block_until_ready(fwd_bf16(x, params))
    err_bf = float(jnp.max(jnp.abs(out_bf - ref)))
    mean_bf = float(jnp.mean(jnp.abs(out_bf - ref)))
    if not (err_bf < 0.5 and mean_bf < 0.05):
        raise AssertionError(f"bf16 sanity check failed: max={err_bf}, mean={mean_bf}")

    print("KERNEL_OK")
</pallas_src>

<mosaic_0001>
module attributes {stable_mosaic.version = 11 : i64} {
  func.func @_expand_kernel(%arg0: i32, %arg1: memref<512x128xf32, #tpu.memory_space<vmem>>, %arg2: memref<128x128xf32, #tpu.memory_space<vmem>>, %arg3: memref<1x128xf32, #tpu.memory_space<vmem>>, %arg4: memref<512x128xf32, #tpu.memory_space<vmem>>, %arg5: memref<1x2x128xf32, #tpu.memory_space<vmem>>) attributes {dimension_semantics = [#tpu.dimension_semantics<parallel>], iteration_bounds = array<i64: 1>, scalar_prefetch = 0 : i64, scratch_operands = 0 : i64, tpu.core_type = #tpu.core_type<tc>, window_params = [{transform_indices = @transform_0, window_bounds = array<i64: 512, 128>}, {pipeline_mode = #tpu.pipeline_mode<synchronous>, transform_indices = @transform_1, window_bounds = array<i64: 128, 128>}, {pipeline_mode = #tpu.pipeline_mode<synchronous>, transform_indices = @transform_2, window_bounds = array<i64: 1, 128>}, {transform_indices = @transform_3, window_bounds = array<i64: 512, 128>}, {transform_indices = @transform_4, window_bounds = array<i64: 1, 2, 128>}]} {
    %c0 = arith.constant 0 : index
    %c0_0 = arith.constant 0 : index
    %0 = vector.load %arg1[%c0, %c0_0] : memref<512x128xf32, #tpu.memory_space<vmem>>, vector<512x128xf32>
    %c0_1 = arith.constant 0 : index
    %c0_2 = arith.constant 0 : index
    %1 = vector.load %arg2[%c0_1, %c0_2] : memref<128x128xf32, #tpu.memory_space<vmem>>, vector<128x128xf32>
    %cst = arith.constant dense<0.000000e+00> : vector<512x128xf32>
    %2 = tpu.matmul %0, %1, %cst {dimension_numbers = #tpu.dot_dimension_numbers<[1], [0], [0], [1], [0, 0, 1, 1], [], []>} : vector<512x128xf32>, vector<128x128xf32>, vector<512x128xf32> -> vector<512x128xf32>
    %c0_3 = arith.constant 0 : index
    %c0_4 = arith.constant 0 : index
    %3 = vector.load %arg3[%c0_3, %c0_4] : memref<1x128xf32, #tpu.memory_space<vmem>>, vector<1x128xf32>
    %4 = vector.broadcast %3 : vector<1x128xf32> to vector<512x128xf32>
    %5 = arith.addf %2, %4 : vector<512x128xf32>
    %c0_5 = arith.constant 0 : index
    %c0_6 = arith.constant 0 : index
    %6 = vector.load %arg4[%c0_5, %c0_6] : memref<512x128xf32, #tpu.memory_space<vmem>>, vector<512x128xf32>
    tpu.vector_store %arg4[%c0_5, %c0_6], %5 {strides = array<i32>} : memref<512x128xf32, #tpu.memory_space<vmem>>, vector<512x128xf32>,
    %cst_7 = arith.constant dense<0.000000e+00> : vector<128xf32>
    %7 = vector.multi_reduction <add>, %5, %cst_7 [0] : vector<512x128xf32> to vector<128xf32>
    %8 = vector.shape_cast %7 : vector<128xf32> to vector<1x128xf32>
    %c0_8 = arith.constant 0 : index
    %c0_9 = arith.constant 0 : index
    %c0_10 = arith.constant 0 : index
    %9 = vector.load %arg5[%c0_8, %c0_9, %c0_10] : memref<1x2x128xf32, #tpu.memory_space<vmem>>, vector<1x1x128xf32>
    %10 = vector.shape_cast %9 : vector<1x1x128xf32> to vector<1x128xf32>
    %11 = vector.shape_cast %8 : vector<1x128xf32> to vector<1x1x128xf32>
    tpu.vector_store %arg5[%c0_8, %c0_9, %c0_10], %11 {strides = array<i32>} : memref<1x2x128xf32, #tpu.memory_space<vmem>>, vector<1x1x128xf32>,
    %12 = arith.mulf %5, %5 : vector<512x128xf32>
    %cst_11 = arith.constant dense<0.000000e+00> : vector<128xf32>
    %13 = vector.multi_reduction <add>, %12, %cst_11 [0] : vector<512x128xf32> to vector<128xf32>
    %14 = vector.shape_cast %13 : vector<128xf32> to vector<1x128xf32>
    %c0_12 = arith.constant 0 : index
    %c1 = arith.constant 1 : index
    %c0_13 = arith.constant 0 : index
    %15 = vector.load %arg5[%c0_12, %c1, %c0_13] : memref<1x2x128xf32, #tpu.memory_space<vmem>>, vector<1x1x128xf32>
    %16 = vector.shape_cast %15 : vector<1x1x128xf32> to vector<1x128xf32>
    %17 = vector.shape_cast %14 : vector<1x128xf32> to vector<1x1x128xf32>
    tpu.vector_store %arg5[%c0_12, %c1, %c0_13], %17 {strides = array<i32>} : memref<1x2x128xf32, #tpu.memory_space<vmem>>, vector<1x1x128xf32>,
    return
  }
  func.func @transform_0(%arg0: i32) -> (i32, i32) {
    %c0_i32 = arith.constant 0 : i32
    %c0_i32_0 = arith.constant 0 : i32
    return %arg0, %c0_i32 : i32, i32
  }
  func.func @transform_1(%arg0: i32) -> (i32, i32) {
    %c0_i32 = arith.constant 0 : i32
    %c0_i32_0 = arith.constant 0 : i32
    %c0_i32_1 = arith.constant 0 : i32
    return %c0_i32, %c0_i32_0 : i32, i32
  }
  func.func @transform_2(%arg0: i32) -> (i32, i32) {
    %c0_i32 = arith.constant 0 : i32
    %c0_i32_0 = arith.constant 0 : i32
    %c0_i32_1 = arith.constant 0 : i32
    return %c0_i32, %c0_i32_0 : i32, i32
  }
  func.func @transform_3(%arg0: i32) -> (i32, i32) {
    %c0_i32 = arith.constant 0 : i32
    %c0_i32_0 = arith.constant 0 : i32
    return %arg0, %c0_i32 : i32, i32
  }
  func.func @transform_4(%arg0: i32) -> (i32, i32, i32) {
    %c0_i32 = arith.constant 0 : i32
    %c0_i32_0 = arith.constant 0 : i32
    %c0_i32_1 = arith.constant 0 : i32
    return %arg0, %c0_i32, %c0_i32_0 : i32, i32, i32
  }
}

module attributes {stable_mosaic.version = 11 : i64} {
  func.func @_dw_kernel(%arg0: i32, %arg1: i32, %arg2: memref<1x16x16x128xf32, #tpu.memory_space<vmem>>, %arg3: memref<1x128xf32, #tpu.memory_space<vmem>>, %arg4: memref<1x128xf32, #tpu.memory_space<vmem>>, %arg5: memref<3x3x128xf32, #tpu.memory_space<vmem>>, %arg6: memref<1x128xf32, #tpu.memory_space<vmem>>, %arg7: memref<1x16x16x128xf32, #tpu.memory_space<vmem>>, %arg8: memref<1x2x128xf32, #tpu.memory_space<vmem>>, %arg9: memref<18x18x128xf32, #tpu.memory_space<vmem>>) attributes {dimension_semantics = [#tpu.dimension_semantics<parallel>, #tpu.dimension_semantics<parallel>], iteration_bounds = array<i64: 2, 1>, scalar_prefetch = 0 : i64, scratch_operands = 1 : i64, tpu.core_type = #tpu.core_type<tc>, window_params = [{transform_indices = @transform_0, window_bounds = array<i64: 1, 16, 16, 128>}, {transform_indices = @transform_1, window_bounds = array<i64: 1, 128>}, {transform_indices = @transform_2, window_bounds = array<i64: 1, 128>}, {transform_indices = @transform_3, window_bounds = array<i64: 3, 3, 128>}, {transform_indices = @transform_4, window_bounds = array<i64: 1, 128>}, {transform_indices = @transform_5, window_bounds = array<i64: 1, 16, 16, 128>}, {transform_indices = @transform_6, window_bounds = array<i64: 1, 2, 128>}]} {
    %cst = arith.constant 0.000000e+00 : f32
    %0 = vector.broadcast %cst : f32 to vector<18x18x128xf32>
    %c0 = arith.constant 0 : index
    %c0_0 = arith.constant 0 : index
    %c0_1 = arith.constant 0 : index
    %1 = vector.load %arg9[%c0, %c0_0, %c0_1] : memref<18x18x128xf32, #tpu.memory_space<vmem>>, vector<18x18x128xf32>
    tpu.vector_store %arg9[%c0, %c0_0, %c0_1], %0 {strides = array<i32>} : memref<18x18x128xf32, #tpu.memory_space<vmem>>, vector<18x18x128xf32>,
    %c0_2 = arith.constant 0 : index
    %c0_3 = arith.constant 0 : index
    %c0_4 = arith.constant 0 : index
    %c0_5 = arith.constant 0 : index
    %2 = vector.load %arg2[%c0_2, %c0_3, %c0_4, %c0_5] : memref<1x16x16x128xf32, #tpu.memory_space<vmem>>, vector<1x16x16x128xf32>
    %3 = vector.shape_cast %2 : vector<1x16x16x128xf32> to vector<16x16x128xf32>
    %c0_6 = arith.constant 0 : index
    %c0_7 = arith.constant 0 : index
    %4 = vector.load %arg3[%c0_6, %c0_7] : memref<1x128xf32, #tpu.memory_space<vmem>>, vector<1x128xf32>
    %5 = vector.shape_cast %4 : vector<1x128xf32> to vector<128xf32>
    %6 = vector.shape_cast %5 : vector<128xf32> to vector<1x1x128xf32>
    %7 = vector.broadcast %6 : vector<1x1x128xf32> to vector<16x16x128xf32>
    %8 = arith.mulf %3, %7 : vector<16x16x128xf32>
    %c0_8 = arith.constant 0 : index
    %c0_9 = arith.constant 0 : index
    %9 = vector.load %arg4[%c0_8, %c0_9] : memref<1x128xf32, #tpu.memory_space<vmem>>, vector<1x128xf32>
    %10 = vector.shape_cast %9 : vector<1x128xf32> to vector<128xf32>
    %11 = vector.shape_cast %10 : vector<128xf32> to vector<1x1x128xf32>
    %12 = vector.broadcast %11 : vector<1x1x128xf32> to vector<16x16x128xf32>
    %13 = arith.addf %8, %12 : vector<16x16x128xf32>
    %cst_10 = arith.constant 0.000000e+00 : f32
    %cst_11 = arith.constant 6.000000e+00 : f32
    %14 = vector.broadcast %cst_10 : f32 to vector<16x16x128xf32>
    %15 = arith.maximumf %14, %13 : vector<16x16x128xf32>
    %16 = vector.broadcast %cst_11 : f32 to vector<16x16x128xf32>
    %17 = arith.minimumf %16, %15 : vector<16x16x128xf32>
    %c1 = arith.constant 1 : index
    %c1_12 = arith.constant 1 : index
    %c0_13 = arith.constant 0 : index
    %18 = vector.load %arg9[%c1, %c1_12, %c0_13] : memref<18x18x128xf32, #tpu.memory_space<vmem>>, vector<16x16x128xf32>
    tpu.vector_store %arg9[%c1, %c1_12, %c0_13], %17 {strides = array<i32>} : memref<18x18x128xf32, #tpu.memory_space<vmem>>, vector<16x16x128xf32>,
    %c0_14 = arith.constant 0 : index
    %c0_15 = arith.constant 0 : index
    %c0_16 = arith.constant 0 : index
    %19 = vector.load %arg9[%c0_14, %c0_15, %c0_16] : memref<18x18x128xf32, #tpu.memory_space<vmem>>, vector<18x18x128xf32>
    %c0_17 = arith.constant 0 : index
    %c0_18 = arith.constant 0 : index
    %c0_19 = arith.constant 0 : index
    %20 = vector.load %arg5[%c0_17, %c0_18, %c0_19] : memref<3x3x128xf32, #tpu.memory_space<vmem>>, vector<3x3x128xf32>
    %21 = vector.extract_strided_slice %19 {offsets = [0, 0, 0], sizes = [16, 16, 128], strides = [1, 1, 1]} : vector<18x18x128xf32> to vector<16x16x128xf32>
    %22 = vector.extract_strided_slice %20 {offsets = [0, 0, 0], sizes = [1, 1, 128], strides = [1, 1, 1]} : vector<3x3x128xf32> to vector<1x1x128xf32>
    %23 = vector.shape_cast %22 : vector<1x1x128xf32> to vector<128xf32>
    %24 = vector.shape_cast %23 : vector<128xf32> to vector<1x1x128xf32>
    %25 = vector.broadcast %24 : vector<1x1x128xf32> to vector<16x16x128xf32>
    %26 = arith.mulf %21, %25 : vector<16x16x128xf32>
    %27 = vector.extract_strided_slice %19 {offsets = [0, 1, 0], sizes = [16, 16, 128], strides = [1, 1, 1]} : vector<18x18x128xf32> to vector<16x16x128xf32>
    %28 = vector.extract_strided_slice %20 {offsets = [0, 1, 0], sizes = [1, 1, 128], strides = [1, 1, 1]} : vector<3x3x128xf32> to vector<1x1x128xf32>
    %29 = vector.shape_cast %28 : vector<1x1x128xf32> to vector<128xf32>
    %30 = vector.shape_cast %29 : vector<128xf32> to vector<1x1x128xf32>
    %31 = vector.broadcast %30 : vector<1x1x128xf32> to vector<16x16x128xf32>
    %32 = arith.mulf %27, %31 : vector<16x16x128xf32>
    %33 = vector.extract_strided_slice %19 {offsets = [0, 2, 0], sizes = [16, 16, 128], strides = [1, 1, 1]} : vector<18x18x128xf32> to vector<16x16x128xf32>
    %34 = vector.extract_strided_slice %20 {offsets = [0, 2, 0], sizes = [1, 1, 128], strides = [1, 1, 1]} : vector<3x3x128xf32> to vector<1x1x128xf32>
    %35 = vector.shape_cast %34 : vector<1x1x128xf32> to vector<128xf32>
    %36 = vector.shape_cast %35 : vector<128xf32> to vector<1x1x128xf32>
    %37 = vector.broadcast %36 : vector<1x1x128xf32> to vector<16x16x128xf32>
    %38 = arith.mulf %33, %37 : vector<16x16x128xf32>
    %39 = vector.extract_strided_slice %19 {offsets = [1, 0, 0], sizes = [16, 16, 128], strides = [1, 1, 1]} : vector<18x18x128xf32> to vector<16x16x128xf32>
    %40 = vector.extract_strided_slice %20 {offsets = [1, 0, 0], sizes = [1, 1, 128], strides = [1, 1, 1]} : vector<3x3x128xf32> to vector<1x1x128xf32>
    %41 = vector.shape_cast %40 : vector<1x1x128xf32> to vector<128xf32>
    %42 = vector.shape_cast %41 : vector<128xf32> to vector<1x1x128xf32>
    %43 = vector.broadcast %42 : vector<1x1x128xf32> to vector<16x16x128xf32>
    %44 = arith.mulf %39, %43 : vector<16x16x128xf32>
    %45 = vector.extract_strided_slice %19 {offsets = [1, 1, 0], sizes = [16, 16, 128], strides = [1, 1, 1]} : vector<18x18x128xf32> to vector<16x16x128xf32>
    %46 = vector.extract_strided_slice %20 {offsets = [1, 1, 0], sizes = [1, 1, 128], strides = [1, 1, 1]} : vector<3x3x128xf32> to vector<1x1x128xf32>
    %47 = vector.shape_cast %46 : vector<1x1x128xf32> to vector<128xf32>
    %48 = vector.shape_cast %47 : vector<128xf32> to vector<1x1x128xf32>
    %49 = vector.broadcast %48 : vector<1x1x128xf32> to vector<16x16x128xf32>
    %50 = arith.mulf %45, %49 : vector<16x16x128xf32>
    %51 = vector.extract_strided_slice %19 {offsets = [1, 2, 0], sizes = [16, 16, 128], strides = [1, 1, 1]} : vector<18x18x128xf32> to vector<16x16x128xf32>
    %52 = vector.extract_strided_slice %20 {offsets = [1, 2, 0], sizes = [1, 1, 128], strides = [1, 1, 1]} : vector<3x3x128xf32> to vector<1x1x128xf32>
    %53 = vector.shape_cast %52 : vector<1x1x128xf32> to vector<128xf32>
    %54 = vector.shape_cast %53 : vector<128xf32> to vector<1x1x128xf32>
    %55 = vector.broadcast %54 : vector<1x1x128xf32> to vector<16x16x128xf32>
    %56 = arith.mulf %51, %55 : vector<16x16x128xf32>
    %57 = vector.extract_strided_slice %19 {offsets = [2, 0, 0], sizes = [16, 16, 128], strides = [1, 1, 1]} : vector<18x18x128xf32> to vector<16x16x128xf32>
    %58 = vector.extract_strided_slice %20 {offsets = [2, 0, 0], sizes = [1, 1, 128], strides = [1, 1, 1]} : vector<3x3x128xf32> to vector<1x1x128xf32>
    %59 = vector.shape_cast %58 : vector<1x1x128xf32> to vector<128xf32>
    %60 = vector.shape_cast %59 : vector<128xf32> to vector<1x1x128xf32>
    %61 = vector.broadcast %60 : vector<1x1x128xf32> to vector<16x16x128xf32>
    %62 = arith.mulf %57, %61 : vector<16x16x128xf32>
    %63 = vector.extract_strided_slice %19 {offsets = [2, 1, 0], sizes = [16, 16, 128], strides = [1, 1, 1]} : vector<18x18x128xf32> to vector<16x16x128xf32>
    %64 = vector.extract_strided_slice %20 {offsets = [2, 1, 0], sizes = [1, 1, 128], strides = [1, 1, 1]} : vector<3x3x128xf32> to vector<1x1x128xf32>
    %65 = vector.shape_cast %64 : vector<1x1x128xf32> to vector<128xf32>
    %66 = vector.shape_cast %65 : vector<128xf32> to vector<1x1x128xf32>
    %67 = vector.broadcast %66 : vector<1x1x128xf32> to vector<16x16x128xf32>
    %68 = arith.mulf %63, %67 : vector<16x16x128xf32>
    %69 = vector.extract_strided_slice %19 {offsets = [2, 2, 0], sizes = [16, 16, 128], strides = [1, 1, 1]} : vector<18x18x128xf32> to vector<16x16x128xf32>
    %70 = vector.extract_strided_slice %20 {offsets = [2, 2, 0], sizes = [1, 1, 128], strides = [1, 1, 1]} : vector<3x3x128xf32> to vector<1x1x128xf32>
    %71 = vector.shape_cast %70 : vector<1x1x128xf32> to vector<128xf32>
    %72 = vector.shape_cast %71 : vector<128xf32> to vector<1x1x128xf32>
    %73 = vector.broadcast %72 : vector<1x1x128xf32> to vector<16x16x128xf32>
    %74 = arith.mulf %69, %73 : vector<16x16x128xf32>
    %75 = arith.addf %26, %32 : vector<16x16x128xf32>
    %76 = arith.addf %38, %44 : vector<16x16x128xf32>
    %77 = arith.addf %50, %56 : vector<16x16x128xf32>
    %78 = arith.addf %62, %68 : vector<16x16x128xf32>
    %79 = arith.addf %75, %76 : vector<16x16x128xf32>
    %80 = arith.addf %77, %78 : vector<16x16x128xf32>
    %81 = arith.addf %79, %80 : vector<16x16x128xf32>
    %82 = arith.addf %81, %74 : vector<16x16x128xf32>
    %c0_20 = arith.constant 0 : index
    %c0_21 = arith.constant 0 : index
    %83 = vector.load %arg6[%c0_20, %c0_21] : memref<1x128xf32, #tpu.memory_space<vmem>>, vector<1x128xf32>
    %84 = vector.shape_cast %83 : vector<1x128xf32> to vector<128xf32>
    %85 = vector.shape_cast %84 : vector<128xf32> to vector<1x1x128xf32>
    %86 = vector.broadcast %85 : vector<1x1x128xf32> to vector<16x16x128xf32>
    %87 = arith.addf %82, %86 : vector<16x16x128xf32>
    %88 = vector.shape_cast %87 : vector<16x16x128xf32> to vector<1x16x16x128xf32>
    %c0_22 = arith.constant 0 : index
    %c0_23 = arith.constant 0 : index
    %c0_24 = arith.constant 0 : index
    %c0_25 = arith.constant 0 : index
    %89 = vector.load %arg7[%c0_22, %c0_23, %c0_24, %c0_25] : memref<1x16x16x128xf32, #tpu.memory_space<vmem>>, vector<1x16x16x128xf32>
    tpu.vector_store %arg7[%c0_22, %c0_23, %c0_24, %c0_25], %88 {strides = array<i32>} : memref<1x16x16x128xf32, #tpu.memory_space<vmem>>, vector<1x16x16x128xf32>,
    %cst_26 = arith.constant dense<0.000000e+00> : vector<128xf32>
    %90 = vector.multi_reduction <add>, %87, %cst_26 [0, 1] : vector<16x16x128xf32> to vector<128xf32>
    %91 = vector.shape_cast %90 : vector<128xf32> to vector<1x128xf32>
    %c0_27 = arith.constant 0 : index
    %c0_28 = arith.constant 0 : index
    %c0_29 = arith.constant 0 : index
    %92 = vector.load %arg8[%c0_27, %c0_28, %c0_29] : memref<1x2x128xf32, #tpu.memory_space<vmem>>, vector<1x1x128xf32>
    %93 = vector.shape_cast %92 : vector<1x1x128xf32> to vector<1x128xf32>
    %94 = vector.shape_cast %91 : vector<1x128xf32> to vector<1x1x128xf32>
    tpu.vector_store %arg8[%c0_27, %c0_28, %c0_29], %94 {strides = array<i32>} : memref<1x2x128xf32, #tpu.memory_space<vmem>>, vector<1x1x128xf32>,
    %95 = arith.mulf %87, %87 : vector<16x16x128xf32>
    %cst_30 = arith.constant dense<0.000000e+00> : vector<128xf32>
    %96 = vector.multi_reduction <add>, %95, %cst_30 [0, 1] : vector<16x16x128xf32> to vector<128xf32>
    %97 = vector.shape_cast %96 : vector<128xf32> to vector<1x128xf32>
    %c0_31 = arith.constant 0 : index
    %c1_32 = arith.constant 1 : index
    %c0_33 = arith.constant 0 : index
    %98 = vector.load %arg8[%c0_31, %c1_32, %c0_33] : memref<1x2x128xf32, #tpu.memory_space<vmem>>, vector<1x1x128xf32>
    %99 = vector.shape_cast %98 : vector<1x1x128xf32> to vector<1x128xf32>
    %100 = vector.shape_cast %97 : vector<1x128xf32> to vector<1x1x128xf32>
    tpu.vector_store %arg8[%c0_31, %c1_32, %c0_33], %100 {strides = array<i32>} : memref<1x2x128xf32, #tpu.memory_space<vmem>>, vector<1x1x128xf32>,
    return
  }
  func.func @transform_0(%arg0: i32, %arg1: i32) -> (i32, i32, i32, i32) {
    %c0_i32 = arith.constant 0 : i32
    %c0_i32_0 = arith.constant 0 : i32
    %c0_i32_1 = arith.constant 0 : i32
    return %arg0, %c0_i32, %c0_i32_0, %arg1 : i32, i32, i32, i32
  }
  func.func @transform_1(%arg0: i32, %arg1: i32) -> (i32, i32) {
    %c0_i32 = arith.constant 0 : i32
    %c0_i32_0 = arith.constant 0 : i32
    return %c0_i32, %arg1 : i32, i32
  }
  func.func @transform_2(%arg0: i32, %arg1: i32) -> (i32, i32) {
    %c0_i32 = arith.constant 0 : i32
    %c0_i32_0 = arith.constant 0 : i32
    return %c0_i32, %arg1 : i32, i32
  }
  func.func @transform_3(%arg0: i32, %arg1: i32) -> (i32, i32, i32) {
    %c0_i32 = arith.constant 0 : i32
    %c0_i32_0 = arith.constant 0 : i32
    %c0_i32_1 = arith.constant 0 : i32
    return %c0_i32, %c0_i32_0, %arg1 : i32, i32, i32
  }
  func.func @transform_4(%arg0: i32, %arg1: i32) -> (i32, i32) {
    %c0_i32 = arith.constant 0 : i32
    %c0_i32_0 = arith.constant 0 : i32
    return %c0_i32, %arg1 : i32, i32
  }
  func.func @transform_5(%arg0: i32, %arg1: i32) -> (i32, i32, i32, i32) {
    %c0_i32 = arith.constant 0 : i32
    %c0_i32_0 = arith.constant 0 : i32
    %c0_i32_1 = arith.constant 0 : i32
    return %arg0, %c0_i32, %c0_i32_0, %arg1 : i32, i32, i32, i32
  }
  func.func @transform_6(%arg0: i32, %arg1: i32) -> (i32, i32, i32) {
    %c0_i32 = arith.constant 0 : i32
    %c0_i32_0 = arith.constant 0 : i32
    return %arg0, %c0_i32, %arg1 : i32, i32, i32
  }
}

module attributes {stable_mosaic.version = 11 : i64} {
  func.func @_pool_kernel(%arg0: i32, %arg1: i32, %arg2: memref<1x16x16x128xf32, #tpu.memory_space<vmem>>, %arg3: memref<1x128xf32, #tpu.memory_space<vmem>>, %arg4: memref<1x128xf32, #tpu.memory_space<vmem>>, %arg5: memref<1x1x128xf32, #tpu.memory_space<vmem>>) attributes {dimension_semantics = [#tpu.dimension_semantics<parallel>, #tpu.dimension_semantics<parallel>], iteration_bounds = array<i64: 2, 1>, scalar_prefetch = 0 : i64, scratch_operands = 0 : i64, tpu.core_type = #tpu.core_type<tc>, window_params = [{transform_indices = @transform_0, window_bounds = array<i64: 1, 16, 16, 128>}, {transform_indices = @transform_1, window_bounds = array<i64: 1, 128>}, {transform_indices = @transform_2, window_bounds = array<i64: 1, 128>}, {transform_indices = @transform_3, window_bounds = array<i64: 1, 1, 128>}]} {
    %c0 = arith.constant 0 : index
    %c0_0 = arith.constant 0 : index
    %c0_1 = arith.constant 0 : index
    %c0_2 = arith.constant 0 : index
    %0 = vector.load %arg2[%c0, %c0_0, %c0_1, %c0_2] : memref<1x16x16x128xf32, #tpu.memory_space<vmem>>, vector<1x16x16x128xf32>
    %1 = vector.shape_cast %0 : vector<1x16x16x128xf32> to vector<16x16x128xf32>
    %c0_3 = arith.constant 0 : index
    %c0_4 = arith.constant 0 : index
    %2 = vector.load %arg3[%c0_3, %c0_4] : memref<1x128xf32, #tpu.memory_space<vmem>>, vector<1x128xf32>
    %3 = vector.shape_cast %2 : vector<1x128xf32> to vector<128xf32>
    %4 = vector.shape_cast %3 : vector<128xf32> to vector<1x1x128xf32>
    %5 = vector.broadcast %4 : vector<1x1x128xf32> to vector<16x16x128xf32>
    %6 = arith.mulf %1, %5 : vector<16x16x128xf32>
    %c0_5 = arith.constant 0 : index
    %c0_6 = arith.constant 0 : index
    %7 = vector.load %arg4[%c0_5, %c0_6] : memref<1x128xf32, #tpu.memory_space<vmem>>, vector<1x128xf32>
    %8 = vector.shape_cast %7 : vector<1x128xf32> to vector<128xf32>
    %9 = vector.shape_cast %8 : vector<128xf32> to vector<1x1x128xf32>
    %10 = vector.broadcast %9 : vector<1x1x128xf32> to vector<16x16x128xf32>
    %11 = arith.addf %6, %10 : vector<16x16x128xf32>
    %cst = arith.constant 0.000000e+00 : f32
    %cst_7 = arith.constant 6.000000e+00 : f32
    %12 = vector.broadcast %cst : f32 to vector<16x16x128xf32>
    %13 = arith.maximumf %12, %11 : vector<16x16x128xf32>
    %14 = vector.broadcast %cst_7 : f32 to vector<16x16x128xf32>
    %15 = arith.minimumf %14, %13 : vector<16x16x128xf32>
    %cst_8 = arith.constant dense<0.000000e+00> : vector<128xf32>
    %16 = vector.multi_reduction <add>, %15, %cst_8 [0, 1] : vector<16x16x128xf32> to vector<128xf32>
    %cst_9 = arith.constant 3.906250e-03 : f32
    %17 = vector.broadcast %cst_9 : f32 to vector<128xf32>
    %18 = arith.mulf %16, %17 : vector<128xf32>
    %19 = vector.shape_cast %18 : vector<128xf32> to vector<1x1x128xf32>
    %c0_10 = arith.constant 0 : index
    %c0_11 = arith.constant 0 : index
    %c0_12 = arith.constant 0 : index
    %20 = vector.load %arg5[%c0_10, %c0_11, %c0_12] : memref<1x1x128xf32, #tpu.memory_space<vmem>>, vector<1x1x128xf32>
    tpu.vector_store %arg5[%c0_10, %c0_11, %c0_12], %19 {strides = array<i32>} : memref<1x1x128xf32, #tpu.memory_space<vmem>>, vector<1x1x128xf32>,
    return
  }
  func.func @transform_0(%arg0: i32, %arg1: i32) -> (i32, i32, i32, i32) {
    %c0_i32 = arith.constant 0 : i32
    %c0_i32_0 = arith.constant 0 : i32
    %c0_i32_1 = arith.constant 0 : i32
    return %arg0, %c0_i32, %c0_i32_0, %arg1 : i32, i32, i32, i32
  }
  func.func @transform_1(%arg0: i32, %arg1: i32) -> (i32, i32) {
    %c0_i32 = arith.constant 0 : i32
    %c0_i32_0 = arith.constant 0 : i32
    return %c0_i32, %arg1 : i32, i32
  }
  func.func @transform_2(%arg0: i32, %arg1: i32) -> (i32, i32) {
    %c0_i32 = arith.constant 0 : i32
    %c0_i32_0 = arith.constant 0 : i32
    return %c0_i32, %arg1 : i32, i32
  }
  func.func @transform_3(%arg0: i32, %arg1: i32) -> (i32, i32, i32) {
    %c0_i32 = arith.constant 0 : i32
    %c0_i32_0 = arith.constant 0 : i32
    return %arg0, %c0_i32, %arg1 : i32, i32, i32
  }
}

module attributes {stable_mosaic.version = 11 : i64} {
  func.func @_se_kernel(%arg0: memref<2x1x128xf32, #tpu.memory_space<vmem>>, %arg1: memref<128x128xf32, #tpu.memory_space<vmem>>, %arg2: memref<1x128xf32, #tpu.memory_space<vmem>>, %arg3: memref<128x128xf32, #tpu.memory_space<vmem>>, %arg4: memref<1x128xf32, #tpu.memory_space<vmem>>, %arg5: memref<2x1x128xf32, #tpu.memory_space<vmem>>) attributes {dimension_semantics = [], scalar_prefetch = 0 : i64, scratch_operands = 0 : i64, tpu.core_type = #tpu.core_type<tc>} {
    %c0 = arith.constant 0 : index
    %c0_0 = arith.constant 0 : index
    %c0_1 = arith.constant 0 : index
    %0 = vector.load %arg0[%c0, %c0_0, %c0_1] : memref<2x1x128xf32, #tpu.memory_space<vmem>>, vector<2x1x128xf32>
    %1 = vector.shape_cast %0 : vector<2x1x128xf32> to vector<2x128xf32>
    %c0_2 = arith.constant 0 : index
    %c0_3 = arith.constant 0 : index
    %2 = vector.load %arg1[%c0_2, %c0_3] : memref<128x128xf32, #tpu.memory_space<vmem>>, vector<128x128xf32>
    %cst = arith.constant dense<0.000000e+00> : vector<2x128xf32>
    %3 = tpu.matmul %1, %2, %cst {dimension_numbers = #tpu.dot_dimension_numbers<[1], [0], [0], [1], [0, 0, 1, 1], [], []>} : vector<2x128xf32>, vector<128x128xf32>, vector<2x128xf32> -> vector<2x128xf32>
    %c0_4 = arith.constant 0 : index
    %c0_5 = arith.constant 0 : index
    %4 = vector.load %arg2[%c0_4, %c0_5] : memref<1x128xf32, #tpu.memory_space<vmem>>, vector<1x128xf32>
    %5 = vector.broadcast %4 : vector<1x128xf32> to vector<2x128xf32>
    %6 = arith.addf %3, %5 : vector<2x128xf32>
    %cst_6 = arith.constant 0.000000e+00 : f32
    %7 = vector.broadcast %cst_6 : f32 to vector<2x128xf32>
    %8 = arith.maximumf %6, %7 : vector<2x128xf32>
    %c0_7 = arith.constant 0 : index
    %c0_8 = arith.constant 0 : index
    %9 = vector.load %arg3[%c0_7, %c0_8] : memref<128x128xf32, #tpu.memory_space<vmem>>, vector<128x128xf32>
    %cst_9 = arith.constant dense<0.000000e+00> : vector<2x128xf32>
    %10 = tpu.matmul %8, %9, %cst_9 {dimension_numbers = #tpu.dot_dimension_numbers<[1], [0], [0], [1], [0, 0, 1, 1], [], []>} : vector<2x128xf32>, vector<128x128xf32>, vector<2x128xf32> -> vector<2x128xf32>
    %c0_10 = arith.constant 0 : index
    %c0_11 = arith.constant 0 : index
    %11 = vector.load %arg4[%c0_10, %c0_11] : memref<1x128xf32, #tpu.memory_space<vmem>>, vector<1x128xf32>
    %12 = vector.broadcast %11 : vector<1x128xf32> to vector<2x128xf32>
    %13 = arith.addf %10, %12 : vector<2x128xf32>
    %cst_12 = arith.constant 0.000000e+00 : f32
    %14 = vector.broadcast %cst_12 : f32 to vector<2x128xf32>
    %15 = arith.subf %14, %13 : vector<2x128xf32>
    %16 = math.exp %15 : vector<2x128xf32>
    %cst_13 = arith.constant 1.000000e+00 : f32
    %17 = vector.broadcast %cst_13 : f32 to vector<2x128xf32>
    %18 = arith.addf %17, %16 : vector<2x128xf32>
    %cst_14 = arith.constant 1.000000e+00 : f32
    %19 = vector.broadcast %cst_14 : f32 to vector<2x128xf32>
    %20 = arith.divf %19, %18 : vector<2x128xf32>
    %21 = vector.shape_cast %20 : vector<2x128xf32> to vector<2x1x128xf32>
    %c0_15 = arith.constant 0 : index
    %c0_16 = arith.constant 0 : index
    %c0_17 = arith.constant 0 : index
    %22 = vector.load %arg5[%c0_15, %c0_16, %c0_17] : memref<2x1x128xf32, #tpu.memory_space<vmem>>, vector<2x1x128xf32>
    tpu.vector_store %arg5[%c0_15, %c0_16, %c0_17], %21 {strides = array<i32>} : memref<2x1x128xf32, #tpu.memory_space<vmem>>, vector<2x1x128xf32>,
    return
  }
}

module attributes {stable_mosaic.version = 11 : i64} {
  func.func @_final_kernel(%arg0: i32, %arg1: memref<512x128xf32, #tpu.memory_space<vmem>>, %arg2: memref<1x128xf32, #tpu.memory_space<vmem>>, %arg3: memref<1x128xf32, #tpu.memory_space<vmem>>, %arg4: memref<512x128xf32, #tpu.memory_space<vmem>>, %arg5: memref<512x128xf32, #tpu.memory_space<vmem>>) attributes {dimension_semantics = [#tpu.dimension_semantics<parallel>], iteration_bounds = array<i64: 1>, scalar_prefetch = 0 : i64, scratch_operands = 0 : i64, tpu.core_type = #tpu.core_type<tc>, window_params = [{transform_indices = @transform_0, window_bounds = array<i64: 512, 128>}, {pipeline_mode = #tpu.pipeline_mode<synchronous>, transform_indices = @transform_1, window_bounds = array<i64: 1, 128>}, {pipeline_mode = #tpu.pipeline_mode<synchronous>, transform_indices = @transform_2, window_bounds = array<i64: 1, 128>}, {transform_indices = @transform_3, window_bounds = array<i64: 512, 128>}, {transform_indices = @transform_4, window_bounds = array<i64: 512, 128>}]} {
    %c0 = arith.constant 0 : index
    %c0_0 = arith.constant 0 : index
    %0 = vector.load %arg1[%c0, %c0_0] : memref<512x128xf32, #tpu.memory_space<vmem>>, vector<512x128xf32>
    %c0_1 = arith.constant 0 : index
    %c0_2 = arith.constant 0 : index
    %1 = vector.load %arg2[%c0_1, %c0_2] : memref<1x128xf32, #tpu.memory_space<vmem>>, vector<1x128xf32>
    %2 = vector.broadcast %1 : vector<1x128xf32> to vector<512x128xf32>
    %3 = arith.mulf %0, %2 : vector<512x128xf32>
    %c0_3 = arith.constant 0 : index
    %c0_4 = arith.constant 0 : index
    %4 = vector.load %arg3[%c0_3, %c0_4] : memref<1x128xf32, #tpu.memory_space<vmem>>, vector<1x128xf32>
    %5 = vector.broadcast %4 : vector<1x128xf32> to vector<512x128xf32>
    %6 = arith.addf %3, %5 : vector<512x128xf32>
    %c0_5 = arith.constant 0 : index
    %c0_6 = arith.constant 0 : index
    %7 = vector.load %arg4[%c0_5, %c0_6] : memref<512x128xf32, #tpu.memory_space<vmem>>, vector<512x128xf32>
    %8 = arith.addf %6, %7 : vector<512x128xf32>
    %c0_7 = arith.constant 0 : index
    %c0_8 = arith.constant 0 : index
    %9 = vector.load %arg5[%c0_7, %c0_8] : memref<512x128xf32, #tpu.memory_space<vmem>>, vector<512x128xf32>
    tpu.vector_store %arg5[%c0_7, %c0_8], %8 {strides = array<i32>} : memref<512x128xf32, #tpu.memory_space<vmem>>, vector<512x128xf32>,
    return
  }
  func.func @transform_0(%arg0: i32) -> (i32, i32) {
    %c0_i32 = arith.constant 0 : i32
    %c0_i32_0 = arith.constant 0 : i32
    return %arg0, %c0_i32 : i32, i32
  }
  func.func @transform_1(%arg0: i32) -> (i32, i32) {
    %c0_i32 = arith.constant 0 : i32
    %c0_i32_0 = arith.constant 0 : i32
    %c0_i32_1 = arith.constant 0 : i32
    return %c0_i32, %c0_i32_0 : i32, i32
  }
  func.func @transform_2(%arg0: i32) -> (i32, i32) {
    %c0_i32 = arith.constant 0 : i32
    %c0_i32_0 = arith.constant 0 : i32
    %c0_i32_1 = arith.constant 0 : i32
    return %c0_i32, %c0_i32_0 : i32, i32
  }
  func.func @transform_3(%arg0: i32) -> (i32, i32) {
    %c0_i32 = arith.constant 0 : i32
    %c0_i32_0 = arith.constant 0 : i32
    return %arg0, %c0_i32 : i32, i32
  }
  func.func @transform_4(%arg0: i32) -> (i32, i32) {
    %c0_i32 = arith.constant 0 : i32
    %c0_i32_0 = arith.constant 0 : i32
    return %arg0, %c0_i32 : i32, i32
  }
}

module attributes {stable_mosaic.version = 11 : i64} {
  func.func @_shrink_kernel(%arg0: i32, %arg1: i32, %arg2: memref<1x256x128xf32, #tpu.memory_space<vmem>>, %arg3: memref<1x128xf32, #tpu.memory_space<vmem>>, %arg4: memref<1x128xf32, #tpu.memory_space<vmem>>, %arg5: memref<1x1x128xf32, #tpu.memory_space<vmem>>, %arg6: memref<128x128xf32, #tpu.memory_space<vmem>>, %arg7: memref<1x128xf32, #tpu.memory_space<vmem>>, %arg8: memref<1x256x128xf32, #tpu.memory_space<vmem>>, %arg9: memref<1x1x2x128xf32, #tpu.memory_space<vmem>>) attributes {dimension_semantics = [#tpu.dimension_semantics<parallel>, #tpu.dimension_semantics<parallel>], iteration_bounds = array<i64: 2, 1>, scalar_prefetch = 0 : i64, scratch_operands = 0 : i64, tpu.core_type = #tpu.core_type<tc>, window_params = [{transform_indices = @transform_0, window_bounds = array<i64: 1, 256, 128>}, {pipeline_mode = #tpu.pipeline_mode<synchronous>, transform_indices = @transform_1, window_bounds = array<i64: 1, 128>}, {pipeline_mode = #tpu.pipeline_mode<synchronous>, transform_indices = @transform_2, window_bounds = array<i64: 1, 128>}, {transform_indices = @transform_3, window_bounds = array<i64: 1, 1, 128>}, {pipeline_mode = #tpu.pipeline_mode<synchronous>, transform_indices = @transform_4, window_bounds = array<i64: 128, 128>}, {pipeline_mode = #tpu.pipeline_mode<synchronous>, transform_indices = @transform_5, window_bounds = array<i64: 1, 128>}, {transform_indices = @transform_6, window_bounds = array<i64: 1, 256, 128>}, {transform_indices = @transform_7, window_bounds = array<i64: 1, 1, 2, 128>}]} {
    %c0 = arith.constant 0 : index
    %c0_0 = arith.constant 0 : index
    %c0_1 = arith.constant 0 : index
    %0 = vector.load %arg2[%c0, %c0_0, %c0_1] : memref<1x256x128xf32, #tpu.memory_space<vmem>>, vector<1x256x128xf32>
    %1 = vector.shape_cast %0 : vector<1x256x128xf32> to vector<256x128xf32>
    %c0_2 = arith.constant 0 : index
    %c0_3 = arith.constant 0 : index
    %2 = vector.load %arg3[%c0_2, %c0_3] : memref<1x128xf32, #tpu.memory_space<vmem>>, vector<1x128xf32>
    %3 = vector.broadcast %2 : vector<1x128xf32> to vector<256x128xf32>
    %4 = arith.mulf %1, %3 : vector<256x128xf32>
    %c0_4 = arith.constant 0 : index
    %c0_5 = arith.constant 0 : index
    %5 = vector.load %arg4[%c0_4, %c0_5] : memref<1x128xf32, #tpu.memory_space<vmem>>, vector<1x128xf32>
    %6 = vector.broadcast %5 : vector<1x128xf32> to vector<256x128xf32>
    %7 = arith.addf %4, %6 : vector<256x128xf32>
    %cst = arith.constant 0.000000e+00 : f32
    %cst_6 = arith.constant 6.000000e+00 : f32
    %8 = vector.broadcast %cst : f32 to vector<256x128xf32>
    %9 = arith.maximumf %8, %7 : vector<256x128xf32>
    %10 = vector.broadcast %cst_6 : f32 to vector<256x128xf32>
    %11 = arith.minimumf %10, %9 : vector<256x128xf32>
    %c0_7 = arith.constant 0 : index
    %c0_8 = arith.constant 0 : index
    %c0_9 = arith.constant 0 : index
    %12 = vector.load %arg5[%c0_7, %c0_8, %c0_9] : memref<1x1x128xf32, #tpu.memory_space<vmem>>, vector<1x1x128xf32>
    %13 = vector.shape_cast %12 : vector<1x1x128xf32> to vector<1x128xf32>
    %14 = vector.broadcast %13 : vector<1x128xf32> to vector<256x128xf32>
    %15 = arith.mulf %11, %14 : vector<256x128xf32>
    %c0_10 = arith.constant 0 : index
    %c0_11 = arith.constant 0 : index
    %16 = vector.load %arg6[%c0_10, %c0_11] : memref<128x128xf32, #tpu.memory_space<vmem>>, vector<128x128xf32>
    %cst_12 = arith.constant dense<0.000000e+00> : vector<256x128xf32>
    %17 = tpu.matmul %15, %16, %cst_12 {dimension_numbers = #tpu.dot_dimension_numbers<[1], [0], [0], [1], [0, 0, 1, 1], [], []>} : vector<256x128xf32>, vector<128x128xf32>, vector<256x128xf32> -> vector<256x128xf32>
    %c0_13 = arith.constant 0 : index
    %c0_14 = arith.constant 0 : index
    %18 = vector.load %arg7[%c0_13, %c0_14] : memref<1x128xf32, #tpu.memory_space<vmem>>, vector<1x128xf32>
    %19 = vector.broadcast %18 : vector<1x128xf32> to vector<256x128xf32>
    %20 = arith.addf %17, %19 : vector<256x128xf32>
    %21 = vector.shape_cast %20 : vector<256x128xf32> to vector<1x256x128xf32>
    %c0_15 = arith.constant 0 : index
    %c0_16 = arith.constant 0 : index
    %c0_17 = arith.constant 0 : index
    %22 = vector.load %arg8[%c0_15, %c0_16, %c0_17] : memref<1x256x128xf32, #tpu.memory_space<vmem>>, vector<1x256x128xf32>
    tpu.vector_store %arg8[%c0_15, %c0_16, %c0_17], %21 {strides = array<i32>} : memref<1x256x128xf32, #tpu.memory_space<vmem>>, vector<1x256x128xf32>,
    %cst_18 = arith.constant dense<0.000000e+00> : vector<128xf32>
    %23 = vector.multi_reduction <add>, %20, %cst_18 [0] : vector<256x128xf32> to vector<128xf32>
    %24 = vector.shape_cast %23 : vector<128xf32> to vector<1x128xf32>
    %c0_19 = arith.constant 0 : index
    %c0_20 = arith.constant 0 : index
    %c0_21 = arith.constant 0 : index
    %c0_22 = arith.constant 0 : index
    %25 = vector.load %arg9[%c0_19, %c0_20, %c0_21, %c0_22] : memref<1x1x2x128xf32, #tpu.memory_space<vmem>>, vector<1x1x1x128xf32>
    %26 = vector.shape_cast %25 : vector<1x1x1x128xf32> to vector<1x128xf32>
    %27 = vector.shape_cast %24 : vector<1x128xf32> to vector<1x1x1x128xf32>
    tpu.vector_store %arg9[%c0_19, %c0_20, %c0_21, %c0_22], %27 {strides = array<i32>} : memref<1x1x2x128xf32, #tpu.memory_space<vmem>>, vector<1x1x1x128xf32>,
    %28 = arith.mulf %20, %20 : vector<256x128xf32>
    %cst_23 = arith.constant dense<0.000000e+00> : vector<128xf32>
    %29 = vector.multi_reduction <add>, %28, %cst_23 [0] : vector<256x128xf32> to vector<128xf32>
    %30 = vector.shape_cast %29 : vector<128xf32> to vector<1x128xf32>
    %c0_24 = arith.constant 0 : index
    %c0_25 = arith.constant 0 : index
    %c1 = arith.constant 1 : index
    %c0_26 = arith.constant 0 : index
    %31 = vector.load %arg9[%c0_24, %c0_25, %c1, %c0_26] : memref<1x1x2x128xf32, #tpu.memory_space<vmem>>, vector<1x1x1x128xf32>
    %32 = vector.shape_cast %31 : vector<1x1x1x128xf32> to vector<1x128xf32>
    %33 = vector.shape_cast %30 : vector<1x128xf32> to vector<1x1x1x128xf32>
    tpu.vector_store %arg9[%c0_24, %c0_25, %c1, %c0_26], %33 {strides = array<i32>} : memref<1x1x2x128xf32, #tpu.memory_space<vmem>>, vector<1x1x1x128xf32>,
    return
  }
  func.func @transform_0(%arg0: i32, %arg1: i32) -> (i32, i32, i32) {
    %c0_i32 = arith.constant 0 : i32
    %c0_i32_0 = arith.constant 0 : i32
    return %arg0, %arg1, %c0_i32 : i32, i32, i32
  }
  func.func @transform_1(%arg0: i32, %arg1: i32) -> (i32, i32) {
    %c0_i32 = arith.constant 0 : i32
    %c0_i32_0 = arith.constant 0 : i32
    %c0_i32_1 = arith.constant 0 : i32
    return %c0_i32, %c0_i32_0 : i32, i32
  }
  func.func @transform_2(%arg0: i32, %arg1: i32) -> (i32, i32) {
    %c0_i32 = arith.constant 0 : i32
    %c0_i32_0 = arith.constant 0 : i32
    %c0_i32_1 = arith.constant 0 : i32
    return %c0_i32, %c0_i32_0 : i32, i32
  }
  func.func @transform_3(%arg0: i32, %arg1: i32) -> (i32, i32, i32) {
    %c0_i32 = arith.constant 0 : i32
    %c0_i32_0 = arith.constant 0 : i32
    %c0_i32_1 = arith.constant 0 : i32
    return %arg0, %c0_i32, %c0_i32_0 : i32, i32, i32
  }
  func.func @transform_4(%arg0: i32, %arg1: i32) -> (i32, i32) {
    %c0_i32 = arith.constant 0 : i32
    %c0_i32_0 = arith.constant 0 : i32
    %c0_i32_1 = arith.constant 0 : i32
    return %c0_i32, %c0_i32_0 : i32, i32
  }
  func.func @transform_5(%arg0: i32, %arg1: i32) -> (i32, i32) {
    %c0_i32 = arith.constant 0 : i32
    %c0_i32_0 = arith.constant 0 : i32
    %c0_i32_1 = arith.constant 0 : i32
    return %c0_i32, %c0_i32_0 : i32, i32
  }
  func.func @transform_6(%arg0: i32, %arg1: i32) -> (i32, i32, i32) {
    %c0_i32 = arith.constant 0 : i32
    %c0_i32_0 = arith.constant 0 : i32
    return %arg0, %arg1, %c0_i32 : i32, i32, i32
  }
  func.func @transform_7(%arg0: i32, %arg1: i32) -> (i32, i32, i32, i32) {
    %c0_i32 = arith.constant 0 : i32
    %c0_i32_0 = arith.constant 0 : i32
    %c0_i32_1 = arith.constant 0 : i32
    return %arg0, %arg1, %c0_i32, %c0_i32_0 : i32, i32, i32, i32
  }
}

</mosaic_0001>

<bundles_post_ra>
// kernel: _lambda_.8
= control target key start
LH: loop header
LB: loop body
LE: loop exit
PB: predicated region body
PF: predicated region fallthrough
CT: control target
= control target key end

     0   :  { %s611_s12 = smov 0   ;;  %s613_s13 = smov 0   ;;  %s756_s0 = inlined_call_operand.vmem [shape: f32[2,16,16,128], index: 0, kind: input, shape index: {}]   ;;  %s757_s1 = inlined_call_operand.vmem [shape: f32[1,128], index: 1, kind: input, shape index: {}]   ;;  %s758_s2 = inlined_call_operand.vmem [shape: f32[1,128], index: 2, kind: input, shape index: {}]   ;;  %s759_s3 = inlined_call_operand.vmem [shape: f32[2,1,128], index: 3, kind: output, shape index: {}]  }
   0x1   :  { %s615_s14 = smov 0  }
   0x2 LB: > { %s25_s15 = sadd.s32 1, %s585_s13  ;;  %p535_p0 = scmp.ge.s32.totalorder %s589_s14, 1  ;;  %s589_s14 = sphi %s615_s14, %s13_s14   ;;  %s585_s13 = sphi %s613_s13, %s761_s13   ;;  %s581_s12 = sphi %s611_s12, %s760_s12  }
   0x3   : > { %p27_p1 = scmp.ge.s32.totalorder %s25_s15, 2  ;;  %p172_p2 = scmp.lt.s32.totalorder %s589_s14, 3 }
   0x5   : > { %s763_s15 = smov (%p27_p1, %s25_s15), 0  ;;  %p173_p3 = pnand %p535_p0, %p172_p2 }
   0x6   : > { %p206_p4 = scmp.lt.s32.totalorder (!%p173_p3), %s581_s12, 1 }
   0x7   : > { %176 = sbr.rel (%p173_p3) target bundleno = 101 (0x65), region = 32 }
   0xc   : > { %s765_s12 = smov (!%p206_p4, %s581_s12), 1  ;;  %v640_v0 = vld [vmem:[%s757_s1] ss:$0 sm:$0xff] }
   0xd   : > { %s540_s16 = sshll.u32 %s765_s12, 8  ;;  %v650_v6 = vld [vmem:[%s758_s2] ss:$0 sm:$0xff]  ;;  %s225_s26 = scalar_lea.vmem %s759_s3, %s765_s12 }
   0xe   : > { %s635_s19 = scalar_lea.vmem %s756_s0, %s540_s16 }
   0xf   : > { %v226_v1 = vld [vmem:[%s635_s19] sm:$0xff]  ;;  %v227_v2 = vld [vmem:[%s635_s19 + $0x8] sm:$0xff]  ;;  %v228_v3 = vld [vmem:[%s635_s19 + $0x10] sm:$0xff] }
  0x10   : > { %v262_v4 = vmul.f32 %v640_v0, %v226_v1  ;;  %v263_v5 = vmul.f32 %v640_v0, %v227_v2  ;;  %v229_v7 = vld [vmem:[%s635_s19 + $0x18] sm:$0xff]  ;;  %v264_v8 = vmul.f32 %v640_v0, %v228_v3  ;;  %v230_v9 = vld [vmem:[%s635_s19 + $0x20] sm:$0xff]  ;;  %v231_v13 = vld [vmem:[%s635_s19 + $0x28] sm:$0xff] }
  0x11   : > { %v265_v10 = vmul.f32 %v640_v0, %v229_v7  ;;  %v266_v14 = vmul.f32 %v640_v0, %v230_v9  ;;  %v232_v16 = vld [vmem:[%s635_s19 + $0x30] sm:$0xff]  ;;  %v233_v17 = vld [vmem:[%s635_s19 + $0x38] sm:$0xff]  ;;  %v267_v18 = vmul.f32 %v640_v0, %v231_v13  ;;  %v234_v25 = vld [vmem:[%s635_s19 + $0x40] sm:$0xff] }
  0x12   : > { %v298_v11 = vadd.f32 %v650_v6, %v262_v4  ;;  %v299_v12 = vadd.f32 %v650_v6, %v263_v5  ;;  %v300_v15 = vadd.f32 %v650_v6, %v264_v8  ;;  %v268_v22 = vmul.f32 %v640_v0, %v232_v16  ;;  %v235_v27 = vld [vmem:[%s635_s19 + $0x48] sm:$0xff]  ;;  %v236_v32 = vld [vmem:[%s635_s19 + $0x50] sm:$0xff]  ;;  %v237_v38 = vld [vmem:[%s635_s19 + $0x58] sm:$0xff] }
  0x13   : > { %v301_v19 = vadd.f32 %v650_v6, %v265_v10  ;;  %v302_v23 = vadd.f32 %v650_v6, %v266_v14  ;;  %v269_v26 = vmul.f32 %v640_v0, %v233_v17  ;;  %v303_v28 = vadd.f32 %v650_v6, %v267_v18  ;;  %v238_v44 = vld [vmem:[%s635_s19 + $0x60] sm:$0xff]  ;;  %v239_v50 = vld [vmem:[%s635_s19 + $0x68] sm:$0xff]  ;;  %v240_v56 = vld [vmem:[%s635_s19 + $0x70] sm:$0xff] }
  0x14   : > { %v330_v20 = vmax.f32 %v298_v11, 0.0  ;;  %v331_v21 = vmax.f32 %v299_v12, 0.0  ;;  %v332_v24 = vmax.f32 %v300_v15, 0.0  ;;  %v270_v33 = vmul.f32 %v640_v0, %v234_v25  ;;  %v241_v62 = vld [vmem:[%s635_s19 + $0x78] sm:$0xff]  ;;  %v242_v5 = vld [vmem:[%s635_s19 + $0x80] sm:$0xff]  ;;  %v243_v12 = vld [vmem:[%s635_s19 + $0x88] sm:$0xff] }
  0x15   : > { %v333_v29 = vmax.f32 %v301_v19, 0.0  ;;  %v304_v34 = vadd.f32 %v650_v6, %v268_v22  ;;  %v334_v35 = vmax.f32 %v302_v23, 0.0  ;;  %v271_v37 = vmul.f32 %v640_v0, %v235_v27  ;;  %v244_v18 = vld [vmem:[%s635_s19 + $0x90] sm:$0xff] }
  0x16   : > { %v362_v30 = vmin.f32 %v330_v20, 6.0  ;;  %v363_v31 = vmin.f32 %v331_v21, 6.0  ;;  %v364_v36 = vmin.f32 %v332_v24, 6.0  ;;  %v305_v39 = vadd.f32 %v650_v6, %v269_v26  ;;  %v245_v24 = vld [vmem:[%s635_s19 + $0x98] sm:$0xff] }
  0x17   : > { %v335_v40 = vmax.f32 %v303_v28, 0.0  ;;  %v365_v41 = vmin.f32 %v333_v29, 6.0  ;;  %v272_v43 = vmul.f32 %v640_v0, %v236_v32  ;;  %v306_v45 = vadd.f32 %v650_v6, %v270_v33 }
  0x18   : > { %v394_v42 = vadd.f32 %v363_v31, %v362_v30  ;;  %v336_v46 = vmax.f32 %v304_v34, 0.0  ;;  %v366_v47 = vmin.f32 %v334_v35, 6.0  ;;  %v273_v49 = vmul.f32 %v640_v0, %v237_v38  ;;  %v246_v30 = vld [vmem:[%s635_s19 + $0xa0] sm:$0xff] }
  0x19   : > { %v307_v51 = vadd.f32 %v650_v6, %v271_v37  ;;  %v337_v52 = vmax.f32 %v305_v39, 0.0  ;;  %v367_v53 = vmin.f32 %v335_v40, 6.0  ;;  %v274_v55 = vmul.f32 %v640_v0, %v238_v44 }
  0x1a   : > { %v395_v48 = vadd.f32 %v394_v42, %v364_v36  ;;  %v308_v57 = vadd.f32 %v650_v6, %v272_v43  ;;  %v338_v58 = vmax.f32 %v306_v45, 0.0  ;;  %v368_v59 = vmin.f32 %v336_v46, 6.0  ;;  %v247_v36 = vld [vmem:[%s635_s19 + $0xa8] sm:$0xff]  ;;  %v248_v42 = vld [vmem:[%s635_s19 + $0xb0] sm:$0xff] }
  0x1b   : > { %v275_v61 = vmul.f32 %v640_v0, %v239_v50  ;;  %v309_v63 = vadd.f32 %v650_v6, %v273_v49  ;;  %v339_v1 = vmax.f32 %v307_v51, 0.0  ;;  %v369_v2 = vmin.f32 %v337_v52, 6.0 }
  0x1c   : > { %v396_v54 = vadd.f32 %v395_v48, %v365_v41  ;;  %v276_v4 = vmul.f32 %v640_v0, %v240_v56  ;;  %v310_v7 = vadd.f32 %v650_v6, %v274_v55  ;;  %v340_v8 = vmax.f32 %v308_v57, 0.0  ;;  %v249_v48 = vld [vmem:[%s635_s19 + $0xb8] sm:$0xff] }
  0x1d   : > { %v370_v9 = vmin.f32 %v338_v58, 6.0  ;;  %v277_v11 = vmul.f32 %v640_v0, %v241_v62  ;;  %v311_v13 = vadd.f32 %v650_v6, %v275_v61  ;;  %v341_v14 = vmax.f32 %v309_v63, 0.0 }
  0x1e   : > { %v397_v60 = vadd.f32 %v396_v54, %v366_v47  ;;  %v371_v15 = vmin.f32 %v339_v1, 6.0  ;;  %v278_v17 = vmul.f32 %v640_v0, %v242_v5  ;;  %v312_v19 = vadd.f32 %v650_v6, %v276_v4  ;;  %v250_v54 = vld [vmem:[%s635_s19 + $0xc0] sm:$0xff] }
  0x1f   : > { %v342_v20 = vmax.f32 %v310_v7, 0.0  ;;  %v372_v21 = vmin.f32 %v340_v8, 6.0  ;;  %v279_v23 = vmul.f32 %v640_v0, %v243_v12  ;;  %v313_v25 = vadd.f32 %v650_v6, %v277_v11 }
  0x20   : > { %v398_v3 = vadd.f32 %v397_v60, %v367_v53  ;;  %v343_v26 = vmax.f32 %v311_v13, 0.0  ;;  %v373_v27 = vmin.f32 %v341_v14, 6.0  ;;  %v280_v29 = vmul.f32 %v640_v0, %v244_v18  ;;  %v251_v60 = vld [vmem:[%s635_s19 + $0xc8] sm:$0xff] }
  0x21   : > { %v314_v31 = vadd.f32 %v650_v6, %v278_v17  ;;  %v344_v32 = vmax.f32 %v312_v19, 0.0  ;;  %v374_v33 = vmin.f32 %v342_v20, 6.0  ;;  %v281_v35 = vmul.f32 %v640_v0, %v245_v24 }
  0x22   : > { %v399_v10 = vadd.f32 %v398_v3, %v368_v59  ;;  %v315_v37 = vadd.f32 %v650_v6, %v279_v23  ;;  %v345_v38 = vmax.f32 %v313_v25, 0.0  ;;  %v375_v39 = vmin.f32 %v343_v26, 6.0  ;;  %v252_v3 = vld [vmem:[%s635_s19 + $0xd0] sm:$0xff] }
  0x23   : > { %v282_v41 = vmul.f32 %v640_v0, %v246_v30  ;;  %v316_v43 = vadd.f32 %v650_v6, %v280_v29  ;;  %v346_v44 = vmax.f32 %v314_v31, 0.0  ;;  %v376_v45 = vmin.f32 %v344_v32, 6.0 }
  0x24   : > { %v400_v16 = vadd.f32 %v399_v10, %v369_v2  ;;  %v283_v47 = vmul.f32 %v640_v0, %v247_v36  ;;  %v317_v49 = vadd.f32 %v650_v6, %v281_v35  ;;  %v347_v50 = vmax.f32 %v315_v37, 0.0  ;;  %v253_v10 = vld [vmem:[%s635_s19 + $0xd8] sm:$0xff] }
  0x25   : > { %v377_v51 = vmin.f32 %v345_v38, 6.0  ;;  %v284_v53 = vmul.f32 %v640_v0, %v248_v42  ;;  %v318_v55 = vadd.f32 %v650_v6, %v282_v41  ;;  %v348_v56 = vmax.f32 %v316_v43, 0.0 }
  0x26   : > { %v401_v22 = vadd.f32 %v400_v16, %v370_v9  ;;  %v378_v57 = vmin.f32 %v346_v44, 6.0  ;;  %v285_v59 = vmul.f32 %v640_v0, %v249_v48  ;;  %v319_v61 = vadd.f32 %v650_v6, %v283_v47  ;;  %v254_v16 = vld [vmem:[%s635_s19 + $0xe0] sm:$0xff] }
  0x27   : > { %v349_v62 = vmax.f32 %v317_v49, 0.0  ;;  %v379_v63 = vmin.f32 %v347_v50, 6.0  ;;  %v286_v2 = vmul.f32 %v640_v0, %v250_v54  ;;  %v320_v4 = vadd.f32 %v650_v6, %v284_v53 }
  0x28   : > { %v402_v28 = vadd.f32 %v401_v22, %v371_v15  ;;  %v350_v5 = vmax.f32 %v318_v55, 0.0  ;;  %v380_v7 = vmin.f32 %v348_v56, 6.0  ;;  %v287_v9 = vmul.f32 %v640_v0, %v251_v60  ;;  %v255_v22 = vld [vmem:[%s635_s19 + $0xe8] sm:$0xff] }
  0x29   : > { %v321_v11 = vadd.f32 %v650_v6, %v285_v59  ;;  %v351_v12 = vmax.f32 %v319_v61, 0.0  ;;  %v381_v13 = vmin.f32 %v349_v62, 6.0  ;;  %v288_v15 = vmul.f32 %v640_v0, %v252_v3 }
  0x2a   : > { %v403_v34 = vadd.f32 %v402_v28, %v372_v21  ;;  %v322_v17 = vadd.f32 %v650_v6, %v286_v2  ;;  %v352_v18 = vmax.f32 %v320_v4, 0.0  ;;  %v382_v19 = vmin.f32 %v350_v5, 6.0  ;;  %v256_v28 = vld [vmem:[%s635_s19 + $0xf0] sm:$0xff] }
  0x2b   : > { %v289_v21 = vmul.f32 %v640_v0, %v253_v10  ;;  %v323_v23 = vadd.f32 %v650_v6, %v287_v9  ;;  %v353_v24 = vmax.f32 %v321_v11, 0.0  ;;  %v383_v25 = vmin.f32 %v351_v12, 6.0 }
  0x2c   : > { %v404_v40 = vadd.f32 %v403_v34, %v373_v27  ;;  %v290_v27 = vmul.f32 %v640_v0, %v254_v16  ;;  %v324_v29 = vadd.f32 %v650_v6, %v288_v15  ;;  %v354_v30 = vmax.f32 %v322_v17, 0.0  ;;  %v257_v34 = vld [vmem:[%s635_s19 + $0xf8] sm:$0xff] }
  0x2d   : > { %v384_v31 = vmin.f32 %v352_v18, 6.0  ;;  %v325_v35 = vadd.f32 %v650_v6, %v289_v21  ;;  %v355_v36 = vmax.f32 %v323_v23, 0.0  ;;  %v385_v37 = vmin.f32 %v353_v24, 6.0 }
  0x2e   : > { %v405_v46 = vadd.f32 %v404_v40, %v374_v33  ;;  %v291_v33 = vmul.f32 %v640_v0, %v255_v22  ;;  %v326_v40 = vadd.f32 %v650_v6, %v290_v27  ;;  %v356_v41 = vmax.f32 %v324_v29, 0.0 }
  0x2f   : > { %v386_v42 = vmin.f32 %v354_v30, 6.0  ;;  %v293_v44 = vmul.f32 %v640_v0, %v257_v34  ;;  %v387_v47 = vmin.f32 %v355_v36, 6.0 }
  0x30   : > { %v406_v52 = vadd.f32 %v405_v46, %v375_v39  ;;  %v292_v39 = vmul.f32 %v640_v0, %v256_v28  ;;  %v357_v46 = vmax.f32 %v325_v35, 0.0  ;;  %v358_v50 = vmax.f32 %v326_v40, 0.0 }
  0x31   : > { %v329_v53 = vadd.f32 %v650_v6, %v293_v44 }
  0x32   : > { %v407_v58 = vadd.f32 %v406_v52, %v376_v45  ;;  %v327_v45 = vadd.f32 %v650_v6, %v291_v33  ;;  %v328_v49 = vadd.f32 %v650_v6, %v292_v39  ;;  %v389_v55 = vmin.f32 %v357_v46, 6.0 }
  0x33   : > { %v361_v0 = vmax.f32 %v329_v53, 0.0 }
  0x34   : > { %v408_v1 = vadd.f32 %v407_v58, %v377_v51  ;;  %v388_v51 = vmin.f32 %v356_v41, 6.0  ;;  %v359_v54 = vmax.f32 %v327_v45, 0.0  ;;  %v390_v58 = vmin.f32 %v358_v50, 6.0 }
  0x36   : > { %v409_v8 = vadd.f32 %v408_v1, %v378_v57  ;;  %v360_v57 = vmax.f32 %v328_v49, 0.0  ;;  %v391_v60 = vmin.f32 %v359_v54, 6.0  ;;  %v393_v1 = vmin.f32 %v361_v0, 6.0 }
  0x38   : > { %v410_v14 = vadd.f32 %v409_v8, %v379_v63  ;;  %v392_v62 = vmin.f32 %v360_v57, 6.0 }
  0x3a   : > { %v411_v20 = vadd.f32 %v410_v14, %v380_v7 }
  0x3c   : > { %v412_v26 = vadd.f32 %v411_v20, %v381_v13 }
  0x3e   : > { %v413_v32 = vadd.f32 %v412_v26, %v382_v19 }
  0x40   : > { %v414_v38 = vadd.f32 %v413_v32, %v383_v25 }
  0x42   : > { %v415_v43 = vadd.f32 %v414_v38, %v384_v31 }
  0x44   : > { %v416_v48 = vadd.f32 %v415_v43, %v385_v37 }
  0x46   : > { %v417_v52 = vadd.f32 %v416_v48, %v386_v42 }
  0x48   : > { %v418_v56 = vadd.f32 %v417_v52, %v387_v47 }
  0x4a   : > { %v419_v59 = vadd.f32 %v418_v56, %v388_v51 }
  0x4c   : > { %v420_v61 = vadd.f32 %v419_v59, %v389_v55 }
  0x4e   : > { %v421_v63 = vadd.f32 %v420_v61, %v390_v58 }
  0x50   : > { %v422_v2 = vadd.f32 %v421_v63, %v391_v60 }
  0x52   : > { %v423_v3 = vadd.f32 %v422_v2, %v392_v62 }
  0x54   : > { %v424_v4 = vadd.f32 %v423_v3, %v393_v1 }
  0x56   : > { %v425_v5 = vrot.slane %v424_v4, 4 }
  0x58   : > { %v426_v7 = vadd.f32 %v425_v5, %v424_v4 }
  0x5a   : > { %v427_v8 = vrot.slane %v426_v7, 2 }
  0x5c   : > { %v428_v6 = vadd.f32 %v427_v8, %v426_v7 }
  0x5e   : > { %v429_v9 = vrot.slane %v428_v6, 1 }
  0x60   : > { %v430_v10 = vadd.f32 %v429_v9, %v428_v6 }
  0x62   : > { %v431_v11 = vmul.f32 0.00390625, %v430_v10 }
  0x64   : > { %432 = vst [vmem:[%s225_s26] sm:$0x1] %v431_v11 }
  0x65 PF: > { %s13_s14 = sadd.s32 1, %s589_s14   ;;  %s760_s12 = smov %s585_s13 }
  0x66   : > { %p10_p5 = scmp.ge.s32.totalorder %s13_s14, 4   ;;  %s761_s13 = smov %s763_s15 }
  0x68   :  { %12 = sbr.rel (!%p10_p5) target bundleno = 2 (0x2), region = 68 }

// kernel: _lambda_.6
= control target key start
LH: loop header
LB: loop body
LE: loop exit
PB: predicated region body
PF: predicated region fallthrough
CT: control target
= control target key end

     0   :  { %s1490_s1 = inlined_call_operand.vmem [shape: f32[128,128], index: 1, kind: input, shape index: {}]   ;;  %s1491_s2 = inlined_call_operand.vmem [shape: f32[1,128], index: 2, kind: input, shape index: {}]   ;;  %s1492_s0 = inlined_call_operand.vmem [shape: f32[512,128], index: 0, kind: input, shape index: {}]   ;;  %s1493_s3 = inlined_call_operand.vmem [shape: f32[512,128], index: 3, kind: output, shape index: {0}]   ;;  %s1494_s4 = inlined_call_operand.vmem [shape: f32[1,2,128], index: 4, kind: output, shape index: {1}]  }
   0x1   :  { %v95_v0 = vld [vmem:[%s1490_s1 + $0x78] sm:$0xff]  ;;  %v94_v1 = vld [vmem:[%s1490_s1 + $0x70] sm:$0xff]  ;;  %v93_v2 = vld [vmem:[%s1490_s1 + $0x68] sm:$0xff] }
   0x2   :  { %100 = vmatpush.msra.mxu0 %v95_v0  ;;  %585 = vmatpush.msra.mxu1 %v95_v0  ;;  %v92_v3 = vld [vmem:[%s1490_s1 + $0x60] sm:$0xff]  ;;  %v91_v4 = vld [vmem:[%s1490_s1 + $0x58] sm:$0xff]  ;;  %v90_v5 = vld [vmem:[%s1490_s1 + $0x50] sm:$0xff] }
   0x3   :  { %586 = vmatpush.msra.mxu2 %v95_v0  ;;  %587 = vmatpush.msra.mxu3 %v95_v0  ;;  %v89_v6 = vld [vmem:[%s1490_s1 + $0x48] sm:$0xff]  ;;  %v88_v7 = vld [vmem:[%s1490_s1 + $0x40] sm:$0xff]  ;;  %v87_v8 = vld [vmem:[%s1490_s1 + $0x38] sm:$0xff] }
   0x4   :  { %101 = vmatpush.msra.mxu0 %v94_v1  ;;  %588 = vmatpush.msra.mxu1 %v94_v1  ;;  %v86_v9 = vld [vmem:[%s1490_s1 + $0x30] sm:$0xff]  ;;  %v85_v10 = vld [vmem:[%s1490_s1 + $0x28] sm:$0xff]  ;;  %v84_v11 = vld [vmem:[%s1490_s1 + $0x20] sm:$0xff] }
   0x5   :  { %589 = vmatpush.msra.mxu2 %v94_v1  ;;  %590 = vmatpush.msra.mxu3 %v94_v1  ;;  %v83_v12 = vld [vmem:[%s1490_s1 + $0x18] sm:$0xff]  ;;  %v82_v13 = vld [vmem:[%s1490_s1 + $0x10] sm:$0xff]  ;;  %v81_v14 = vld [vmem:[%s1490_s1 + $0x8] sm:$0xff] }
   0x6   :  { %102 = vmatpush.msra.mxu0 %v93_v2  ;;  %591 = vmatpush.msra.mxu1 %v93_v2  ;;  %v80_v15 = vld [vmem:[%s1490_s1] sm:$0xff]  ;;  %v17_v18 = vld [vmem:[%s1492_s0 + $0x8] sm:$0xff]  ;;  %v18_v20 = vld [vmem:[%s1492_s0 + $0x10] sm:$0xff] }
   0x7   :  { %592 = vmatpush.msra.mxu2 %v93_v2  ;;  %593 = vmatpush.msra.mxu3 %v93_v2  ;;  %v16_v16 = vld [vmem:[%s1492_s0] sm:$0xff]  ;;  %v33_v19 = vld [vmem:[%s1492_s0 + $0x88] sm:$0xff]  ;;  %v34_v21 = vld [vmem:[%s1492_s0 + $0x90] sm:$0xff] }
   0x8   :  { %103 = vmatpush.msra.mxu0 %v92_v3  ;;  %594 = vmatpush.msra.mxu1 %v92_v3  ;;  %v32_v17 = vld [vmem:[%s1492_s0 + $0x80] sm:$0xff]  ;;  %v19_v22 = vld [vmem:[%s1492_s0 + $0x18] sm:$0xff]  ;;  %v49_v27 = vld [vmem:[%s1492_s0 + $0x108] sm:$0xff] }
   0x9   :  { %595 = vmatpush.msra.mxu2 %v92_v3  ;;  %596 = vmatpush.msra.mxu3 %v92_v3  ;;  %v35_v23 = vld [vmem:[%s1492_s0 + $0x98] sm:$0xff]  ;;  %v48_v24 = vld [vmem:[%s1492_s0 + $0x100] sm:$0xff]  ;;  %v21_v28 = vld [vmem:[%s1492_s0 + $0x28] sm:$0xff] }
   0xa   :  { %104 = vmatpush.msra.mxu0 %v91_v4  ;;  %597 = vmatpush.msra.mxu1 %v91_v4  ;;  %v20_v25 = vld [vmem:[%s1492_s0 + $0x20] sm:$0xff]  ;;  %v37_v29 = vld [vmem:[%s1492_s0 + $0xa8] sm:$0xff]  ;;  %v50_v30 = vld [vmem:[%s1492_s0 + $0x110] sm:$0xff] }
   0xb   :  { %598 = vmatpush.msra.mxu2 %v91_v4  ;;  %599 = vmatpush.msra.mxu3 %v91_v4  ;;  %v36_v26 = vld [vmem:[%s1492_s0 + $0xa0] sm:$0xff]  ;;  %v22_v31 = vld [vmem:[%s1492_s0 + $0x30] sm:$0xff]  ;;  %v51_v33 = vld [vmem:[%s1492_s0 + $0x118] sm:$0xff] }
   0xc   :  { %105 = vmatpush.msra.mxu0 %v90_v5  ;;  %600 = vmatpush.msra.mxu1 %v90_v5  ;;  %v38_v32 = vld [vmem:[%s1492_s0 + $0xb0] sm:$0xff]  ;;  %v23_v34 = vld [vmem:[%s1492_s0 + $0x38] sm:$0xff]  ;;  %v52_v36 = vld [vmem:[%s1492_s0 + $0x120] sm:$0xff] }
   0xd   :  { %601 = vmatpush.msra.mxu2 %v90_v5  ;;  %602 = vmatpush.msra.mxu3 %v90_v5  ;;  %v39_v35 = vld [vmem:[%s1492_s0 + $0xb8] sm:$0xff]  ;;  %v64_v37 = vld [vmem:[%s1492_s0 + $0x180] sm:$0xff]  ;;  %v53_v40 = vld [vmem:[%s1492_s0 + $0x128] sm:$0xff] }
   0xe   :  { %106 = vmatpush.msra.mxu0 %v89_v6  ;;  %603 = vmatpush.msra.mxu1 %v89_v6  ;;  %v24_v38 = vld [vmem:[%s1492_s0 + $0x40] sm:$0xff]  ;;  %v65_v41 = vld [vmem:[%s1492_s0 + $0x188] sm:$0xff]  ;;  %v54_v44 = vld [vmem:[%s1492_s0 + $0x130] sm:$0xff] }
   0xf   :  { %604 = vmatpush.msra.mxu2 %v89_v6  ;;  %605 = vmatpush.msra.mxu3 %v89_v6  ;;  %v40_v39 = vld [vmem:[%s1492_s0 + $0xc0] sm:$0xff]  ;;  %v25_v42 = vld [vmem:[%s1492_s0 + $0x48] sm:$0xff]  ;;  %v66_v45 = vld [vmem:[%s1492_s0 + $0x190] sm:$0xff] }
  0x10   :  { %107 = vmatpush.msra.mxu0 %v88_v7  ;;  %606 = vmatpush.msra.mxu1 %v88_v7  ;;  %v41_v43 = vld [vmem:[%s1492_s0 + $0xc8] sm:$0xff]  ;;  %v26_v46 = vld [vmem:[%s1492_s0 + $0x50] sm:$0xff]  ;;  %v55_v48 = vld [vmem:[%s1492_s0 + $0x138] sm:$0xff] }
  0x11   :  { %607 = vmatpush.msra.mxu2 %v88_v7  ;;  %608 = vmatpush.msra.mxu3 %v88_v7  ;;  %v42_v47 = vld [vmem:[%s1492_s0 + $0xd0] sm:$0xff]  ;;  %v67_v49 = vld [vmem:[%s1492_s0 + $0x198] sm:$0xff]  ;;  %v56_v52 = vld [vmem:[%s1492_s0 + $0x140] sm:$0xff] }
  0x12   :  { %108 = vmatpush.msra.mxu0 %v87_v8  ;;  %609 = vmatpush.msra.mxu1 %v87_v8  ;;  %v27_v50 = vld [vmem:[%s1492_s0 + $0x58] sm:$0xff]  ;;  %v68_v53 = vld [vmem:[%s1492_s0 + $0x1a0] sm:$0xff]  ;;  %v57_v56 = vld [vmem:[%s1492_s0 + $0x148] sm:$0xff] }
  0x13   :  { %610 = vmatpush.msra.mxu2 %v87_v8  ;;  %611 = vmatpush.msra.mxu3 %v87_v8  ;;  %v43_v51 = vld [vmem:[%s1492_s0 + $0xd8] sm:$0xff]  ;;  %v28_v54 = vld [vmem:[%s1492_s0 + $0x60] sm:$0xff]  ;;  %v69_v57 = vld [vmem:[%s1492_s0 + $0x1a8] sm:$0xff] }
  0x14   :  { %109 = vmatpush.msra.mxu0 %v86_v9  ;;  %612 = vmatpush.msra.mxu1 %v86_v9  ;;  %v44_v55 = vld [vmem:[%s1492_s0 + $0xe0] sm:$0xff]  ;;  %v29_v58 = vld [vmem:[%s1492_s0 + $0x68] sm:$0xff]  ;;  %v58_v60 = vld [vmem:[%s1492_s0 + $0x150] sm:$0xff] }
  0x15   :  { %613 = vmatpush.msra.mxu2 %v86_v9  ;;  %614 = vmatpush.msra.mxu3 %v86_v9  ;;  %v45_v59 = vld [vmem:[%s1492_s0 + $0xe8] sm:$0xff]  ;;  %v70_v61 = vld [vmem:[%s1492_s0 + $0x1b0] sm:$0xff]  ;;  %v59_v0 = vld [vmem:[%s1492_s0 + $0x158] sm:$0xff] }
  0x16   :  { %110 = vmatpush.msra.mxu0 %v85_v10  ;;  %615 = vmatpush.msra.mxu1 %v85_v10  ;;  %v30_v62 = vld [vmem:[%s1492_s0 + $0x70] sm:$0xff]  ;;  %v71_v1 = vld [vmem:[%s1492_s0 + $0x1b8] sm:$0xff]  ;;  %v60_v4 = vld [vmem:[%s1492_s0 + $0x160] sm:$0xff] }
  0x17   :  { %616 = vmatpush.msra.mxu2 %v85_v10  ;;  %617 = vmatpush.msra.mxu3 %v85_v10  ;;  %v46_v63 = vld [vmem:[%s1492_s0 + $0xf0] sm:$0xff]  ;;  %v31_v2 = vld [vmem:[%s1492_s0 + $0x78] sm:$0xff]  ;;  %v72_v5 = vld [vmem:[%s1492_s0 + $0x1c0] sm:$0xff] }
  0x18   :  { %111 = vmatpush.msra.mxu0 %v84_v11  ;;  %618 = vmatpush.msra.mxu1 %v84_v11  ;;  %v47_v3 = vld [vmem:[%s1492_s0 + $0xf8] sm:$0xff]  ;;  %v872_v6 = vld [vmem:[%s1491_s2] ss:$0 sm:$0xff] }
  0x19   :  { %619 = vmatpush.msra.mxu2 %v84_v11  ;;  %620 = vmatpush.msra.mxu3 %v84_v11  ;;  %v61_v11 = vld [vmem:[%s1492_s0 + $0x168] sm:$0xff] }
  0x1a   :  { %112 = vmatpush.msra.mxu0 %v83_v12  ;;  %621 = vmatpush.msra.mxu1 %v83_v12 }
  0x1b   :  { %622 = vmatpush.msra.mxu2 %v83_v12  ;;  %623 = vmatpush.msra.mxu3 %v83_v12  ;;  %v73_v12 = vld [vmem:[%s1492_s0 + $0x1c8] sm:$0xff] }
  0x1c   :  { %113 = vmatpush.msra.mxu0 %v82_v13  ;;  %624 = vmatpush.msra.mxu1 %v82_v13 }
  0x1d   :  { %625 = vmatpush.msra.mxu2 %v82_v13  ;;  %626 = vmatpush.msra.mxu3 %v82_v13 }
  0x1e   :  { %114 = vmatpush.msra.mxu0 %v81_v14  ;;  %627 = vmatpush.msra.mxu1 %v81_v14 }
  0x1f   :  { %628 = vmatpush.msra.mxu2 %v81_v14  ;;  %629 = vmatpush.msra.mxu3 %v81_v14 }
  0x20   :  { %115 = vmatpush.msra.mxu0 %v80_v15  ;;  %630 = vmatpush.msra.mxu1 %v80_v15 }
  0x21   :  { %116 = vmatmul.f32.vlgmr.msra.gmra.mxu0 %v16_v16  ;;  %164 = vmatmul.f32.vlgmr.msra.gmra.mxu1 %v32_v17 }
  0x22   :  { %631 = vmatpush.msra.mxu2 %v80_v15  ;;  %632 = vmatpush.msra.mxu3 %v80_v15 }
  0x23   :  { %212 = vmatmul.f32.vlgmr.msra.gmra.mxu2 %v48_v24  ;;  %260 = vmatmul.f32.vlgmr.msra.gmra.mxu3 %v64_v37 }
  0x29   :  { %119 = vmatmul.f32.gmra.mxu0 %v17_v18  ;;  %167 = vmatmul.f32.gmra.mxu1 %v33_v19 }
  0x2b   :  { %215 = vmatmul.f32.gmra.mxu2 %v49_v27  ;;  %263 = vmatmul.f32.gmra.mxu3 %v65_v41 }
  0x31   :  { %122 = vmatmul.f32.gmra.mxu0 %v18_v20  ;;  %170 = vmatmul.f32.gmra.mxu1 %v34_v21  ;;  %v62_v20 = vld [vmem:[%s1492_s0 + $0x170] sm:$0xff] }
  0x32   :  { %v74_v21 = vld [vmem:[%s1492_s0 + $0x1d0] sm:$0xff] }
  0x33   :  { %218 = vmatmul.f32.gmra.mxu2 %v50_v30  ;;  %266 = vmatmul.f32.gmra.mxu3 %v66_v45  ;;  %v75_v30 = vld [vmem:[%s1492_s0 + $0x1d8] sm:$0xff] }
  0x39   :  { %125 = vmatmul.f32.gmra.mxu0 %v19_v22  ;;  %173 = vmatmul.f32.gmra.mxu1 %v35_v23 }
  0x3b   :  { %221 = vmatmul.f32.gmra.mxu2 %v51_v33  ;;  %269 = vmatmul.f32.gmra.mxu3 %v67_v49 }
  0x41   :  { %128 = vmatmul.f32.gmra.mxu0 %v20_v25  ;;  %176 = vmatmul.f32.gmra.mxu1 %v36_v26 }
  0x43   :  { %224 = vmatmul.f32.gmra.mxu2 %v52_v36  ;;  %272 = vmatmul.f32.gmra.mxu3 %v68_v53 }
  0x49   :  { %131 = vmatmul.f32.gmra.mxu0 %v21_v28  ;;  %179 = vmatmul.f32.gmra.mxu1 %v37_v29  ;;  %v63_v29 = vld [vmem:[%s1492_s0 + $0x178] sm:$0xff] }
  0x4b   :  { %227 = vmatmul.f32.gmra.mxu2 %v53_v40  ;;  %275 = vmatmul.f32.gmra.mxu3 %v69_v57 }
  0x51   :  { %134 = vmatmul.f32.gmra.mxu0 %v22_v31  ;;  %182 = vmatmul.f32.gmra.mxu1 %v38_v32 }
  0x53   :  { %230 = vmatmul.f32.gmra.mxu2 %v54_v44  ;;  %278 = vmatmul.f32.gmra.mxu3 %v70_v61 }
  0x59   :  { %137 = vmatmul.f32.gmra.mxu0 %v23_v34  ;;  %185 = vmatmul.f32.gmra.mxu1 %v39_v35 }
  0x5b   :  { %233 = vmatmul.f32.gmra.mxu2 %v55_v48  ;;  %281 = vmatmul.f32.gmra.mxu3 %v71_v1  ;;  %v77_v48 = vld [vmem:[%s1492_s0 + $0x1e8] sm:$0xff] }
  0x61   :  { %140 = vmatmul.f32.gmra.mxu0 %v24_v38  ;;  %188 = vmatmul.f32.gmra.mxu1 %v40_v39  ;;  %v76_v38 = vld [vmem:[%s1492_s0 + $0x1e0] sm:$0xff] }
  0x63   :  { %236 = vmatmul.f32.gmra.mxu2 %v56_v52  ;;  %284 = vmatmul.f32.gmra.mxu3 %v72_v5 }
  0x69   :  { %143 = vmatmul.f32.gmra.mxu0 %v25_v42  ;;  %191 = vmatmul.f32.gmra.mxu1 %v41_v43 }
  0x6b   :  { %239 = vmatmul.f32.gmra.mxu2 %v57_v56  ;;  %287 = vmatmul.f32.gmra.mxu3 %v73_v12  ;;  %v78_v56 = vld [vmem:[%s1492_s0 + $0x1f0] sm:$0xff] }
  0x71   :  { %146 = vmatmul.f32.gmra.mxu0 %v26_v46  ;;  %194 = vmatmul.f32.gmra.mxu1 %v42_v47 }
  0x73   :  { %242 = vmatmul.f32.gmra.mxu2 %v58_v60  ;;  %290 = vmatmul.f32.gmra.mxu3 %v74_v21 }
  0x79   :  { %149 = vmatmul.f32.gmra.mxu0 %v27_v50  ;;  %197 = vmatmul.f32.gmra.mxu1 %v43_v51 }
  0x7b   :  { %245 = vmatmul.f32.gmra.mxu2 %v59_v0  ;;  %293 = vmatmul.f32.gmra.mxu3 %v75_v30 }
  0x81   :  { %152 = vmatmul.f32.gmra.mxu0 %v28_v54  ;;  %200 = vmatmul.f32.gmra.mxu1 %v44_v55 }
  0x83   :  { %248 = vmatmul.f32.gmra.mxu2 %v60_v4  ;;  %296 = vmatmul.f32.gmra.mxu3 %v76_v38 }
  0x89   :  { %155 = vmatmul.f32.gmra.mxu0 %v29_v58  ;;  %203 = vmatmul.f32.gmra.mxu1 %v45_v59 }
  0x8b   :  { %251 = vmatmul.f32.gmra.mxu2 %v61_v11  ;;  %299 = vmatmul.f32.gmra.mxu3 %v77_v48 }
  0x91   :  { %158 = vmatmul.f32.gmra.mxu0 %v30_v62  ;;  %206 = vmatmul.f32.gmra.mxu1 %v46_v63  ;;  %v79_v63 = vld [vmem:[%s1492_s0 + $0x1f8] sm:$0xff] }
  0x93   :  { %254 = vmatmul.f32.gmra.mxu2 %v62_v20  ;;  %302 = vmatmul.f32.gmra.mxu3 %v78_v56 }
  0x99   :  { %161 = vmatmul.f32.gmra.mxu0 %v31_v2  ;;  %209 = vmatmul.f32.gmra.mxu1 %v47_v3 }
  0x9b   :  { %257 = vmatmul.f32.gmra.mxu2 %v63_v29  ;;  %305 = vmatmul.f32.gmra.mxu3 %v79_v63 }
  0x9e   :  { %v117_v7 = vpop.f32.mrf.mxu0  ;;  %v165_v8 = vpop.f32.mrf.mxu1 }
  0x9f   :  { %v118_v9 = vadd.f32 %v872_v6, %v117_v7  ;;  %v876_v10 = vadd.f32 %v872_v6, %v165_v8 }
  0xa1   :  { %309 = vst [vmem:[%s1493_s3] sm:$0xff] %v118_v9  ;;  %v443_v17 = vmul.f32 %v118_v9, %v118_v9 }
  0xa2   :  { %325 = vst [vmem:[%s1493_s3 + $0x80] sm:$0xff] %v876_v10 }
  0xa6   :  { %v120_v13 = vpop.f32.mrf.mxu0  ;;  %v168_v14 = vpop.f32.mrf.mxu1 }
  0xa7   :  { %v121_v15 = vadd.f32 %v872_v6, %v120_v13  ;;  %v893_v16 = vadd.f32 %v872_v6, %v168_v14  ;;  %v213_v44 = vpop.f32.mrf.mxu2  ;;  %v261_v13 = vpop.f32.mrf.mxu3 }
  0xa8   :  { %v944_v45 = vadd.f32 %v872_v6, %v213_v44 }
  0xa9   :  { %310 = vst [vmem:[%s1493_s3 + $0x8] sm:$0xff] %v121_v15  ;;  %v373_v18 = vadd.f32 %v121_v15, %v118_v9  ;;  %v444_v19 = vmul.f32 %v121_v15, %v121_v15  ;;  %v1043_v15 = vadd.f32 %v872_v6, %v261_v13 }
  0xaa   :  { %326 = vst [vmem:[%s1493_s3 + $0x88] sm:$0xff] %v893_v16 }
  0xab   :  { %v507_v22 = vadd.f32 %v444_v19, %v443_v17  ;;  %341 = vst [vmem:[%s1493_s3 + $0x100] sm:$0xff] %v944_v45 }
  0xac   :  { %357 = vst [vmem:[%s1493_s3 + $0x180] sm:$0xff] %v1043_v15 }
  0xae   :  { %v123_v23 = vpop.f32.mrf.mxu0  ;;  %v171_v24 = vpop.f32.mrf.mxu1 }
  0xaf   :  { %v124_v25 = vadd.f32 %v872_v6, %v123_v23  ;;  %v910_v26 = vadd.f32 %v872_v6, %v171_v24  ;;  %v216_v54 = vpop.f32.mrf.mxu2 }
  0xb0   :  { %v971_v55 = vadd.f32 %v872_v6, %v216_v54 }
  0xb1   :  { %311 = vst [vmem:[%s1493_s3 + $0x10] sm:$0xff] %v124_v25  ;;  %v374_v27 = vadd.f32 %v373_v18, %v124_v25  ;;  %v445_v28 = vmul.f32 %v124_v25, %v124_v25 }
  0xb2   :  { %327 = vst [vmem:[%s1493_s3 + $0x90] sm:$0xff] %v910_v26 }
  0xb3   :  { %v508_v31 = vadd.f32 %v507_v22, %v445_v28  ;;  %342 = vst [vmem:[%s1493_s3 + $0x108] sm:$0xff] %v971_v55  ;;  %v264_v22 = vpop.f32.mrf.mxu3 }
  0xb4   :  { %v1071_v24 = vadd.f32 %v872_v6, %v264_v22 }
  0xb6   :  { %v126_v32 = vpop.f32.mrf.mxu0  ;;  %v174_v33 = vpop.f32.mrf.mxu1  ;;  %358 = vst [vmem:[%s1493_s3 + $0x188] sm:$0xff] %v1071_v24 }
  0xb7   :  { %v127_v34 = vadd.f32 %v872_v6, %v126_v32  ;;  %v927_v35 = vadd.f32 %v872_v6, %v174_v33  ;;  %v219_v61 = vpop.f32.mrf.mxu2 }
  0xb8   :  { %v995_v62 = vadd.f32 %v872_v6, %v219_v61 }
  0xb9   :  { %312 = vst [vmem:[%s1493_s3 + $0x18] sm:$0xff] %v127_v34  ;;  %v375_v36 = vadd.f32 %v374_v27, %v127_v34  ;;  %v446_v37 = vmul.f32 %v127_v34, %v127_v34 }
  0xba   :  { %328 = vst [vmem:[%s1493_s3 + $0x98] sm:$0xff] %v927_v35 }
  0xbb   :  { %v509_v39 = vadd.f32 %v508_v31, %v446_v37  ;;  %343 = vst [vmem:[%s1493_s3 + $0x110] sm:$0xff] %v995_v62  ;;  %v267_v31 = vpop.f32.mrf.mxu3 }
  0xbc   :  { %v1099_v33 = vadd.f32 %v872_v6, %v267_v31 }
  0xbe   :  { %v129_v40 = vpop.f32.mrf.mxu0  ;;  %v177_v41 = vpop.f32.mrf.mxu1  ;;  %359 = vst [vmem:[%s1493_s3 + $0x190] sm:$0xff] %v1099_v33 }
  0xbf   :  { %v130_v42 = vadd.f32 %v872_v6, %v129_v40  ;;  %v941_v43 = vadd.f32 %v872_v6, %v177_v41  ;;  %v222_v4 = vpop.f32.mrf.mxu2 }
  0xc0   :  { %v1019_v5 = vadd.f32 %v872_v6, %v222_v4 }
  0xc1   :  { %313 = vst [vmem:[%s1493_s3 + $0x20] sm:$0xff] %v130_v42  ;;  %v949_v46 = vadd.f32 %v375_v36, %v130_v42  ;;  %v447_v47 = vmul.f32 %v130_v42, %v130_v42 }
  0xc2   :  { %329 = vst [vmem:[%s1493_s3 + $0xa0] sm:$0xff] %v941_v43 }
  0xc3   :  { %v958_v49 = vadd.f32 %v509_v39, %v447_v47  ;;  %344 = vst [vmem:[%s1493_s3 + $0x118] sm:$0xff] %v1019_v5  ;;  %v270_v40 = vpop.f32.mrf.mxu3 }
  0xc4   :  { %v1125_v42 = vadd.f32 %v872_v6, %v270_v40 }
  0xc6   :  { %v132_v50 = vpop.f32.mrf.mxu0  ;;  %v180_v51 = vpop.f32.mrf.mxu1  ;;  %360 = vst [vmem:[%s1493_s3 + $0x198] sm:$0xff] %v1125_v42 }
  0xc7   :  { %v965_v52 = vadd.f32 %v872_v6, %v132_v50  ;;  %v968_v53 = vadd.f32 %v872_v6, %v180_v51  ;;  %v225_v12 = vpop.f32.mrf.mxu2 }
  0xc8   :  { %v1040_v14 = vadd.f32 %v872_v6, %v225_v12 }
  0xc9   :  { %314 = vst [vmem:[%s1493_s3 + $0x28] sm:$0xff] %v965_v52  ;;  %v377_v63 = vadd.f32 %v949_v46, %v965_v52 }
  0xca   :  { %330 = vst [vmem:[%s1493_s3 + $0xa8] sm:$0xff] %v968_v53 }
  0xcb   :  { %345 = vst [vmem:[%s1493_s3 + $0x120] sm:$0xff] %v1040_v14  ;;  %v273_v54 = vpop.f32.mrf.mxu3 }
  0xce   :  { %v135_v57 = vpop.f32.mrf.mxu0  ;;  %v183_v58 = vpop.f32.mrf.mxu1 }
  0xcf   :  { %v989_v59 = vadd.f32 %v872_v6, %v135_v57  ;;  %v992_v60 = vadd.f32 %v872_v6, %v183_v58  ;;  %v228_v21 = vpop.f32.mrf.mxu2  ;;  %v1150_v57 = vadd.f32 %v872_v6, %v273_v54  ;;  %v448_v58 = vmul.f32 %v965_v52, %v965_v52 }
  0xd0   :  { %v1068_v23 = vadd.f32 %v872_v6, %v228_v21 }
  0xd1   :  { %315 = vst [vmem:[%s1493_s3 + $0x30] sm:$0xff] %v989_v59  ;;  %v449_v61 = vmul.f32 %v989_v59, %v989_v59 }
  0xd2   :  { %331 = vst [vmem:[%s1493_s3 + $0xb0] sm:$0xff] %v992_v60 }
  0xd3   :  { %346 = vst [vmem:[%s1493_s3 + $0x128] sm:$0xff] %v1068_v23 }
  0xd4   :  { %361 = vst [vmem:[%s1493_s3 + $0x1a0] sm:$0xff] %v1150_v57 }
  0xd6   :  { %v138_v0 = vpop.f32.mrf.mxu0  ;;  %v186_v1 = vpop.f32.mrf.mxu1 }
  0xd7   :  { %v1013_v2 = vadd.f32 %v872_v6, %v138_v0  ;;  %v1016_v3 = vadd.f32 %v872_v6, %v186_v1  ;;  %v231_v30 = vpop.f32.mrf.mxu2  ;;  %v511_v0 = vadd.f32 %v958_v49, %v448_v58 }
  0xd8   :  { %v1096_v32 = vadd.f32 %v872_v6, %v231_v30 }
  0xd9   :  { %316 = vst [vmem:[%s1493_s3 + $0x38] sm:$0xff] %v1013_v2  ;;  %v450_v1 = vmul.f32 %v1013_v2, %v1013_v2  ;;  %v512_v21 = vadd.f32 %v511_v0, %v449_v61 }
  0xda   :  { %332 = vst [vmem:[%s1493_s3 + $0xb8] sm:$0xff] %v1016_v3 }
  0xdb   :  { %347 = vst [vmem:[%s1493_s3 + $0x130] sm:$0xff] %v1096_v32 }
  0xde   :  { %v141_v7 = vpop.f32.mrf.mxu0  ;;  %v189_v8 = vpop.f32.mrf.mxu1 }
  0xdf   :  { %v1034_v9 = vadd.f32 %v872_v6, %v141_v7  ;;  %v1037_v11 = vadd.f32 %v872_v6, %v189_v8  ;;  %v234_v39 = vpop.f32.mrf.mxu2  ;;  %v378_v8 = vadd.f32 %v377_v63, %v989_v59  ;;  %v513_v59 = vadd.f32 %v512_v21, %v450_v1 }
  0xe0   :  { %v1122_v41 = vadd.f32 %v872_v6, %v234_v39 }
  0xe1   :  { %317 = vst [vmem:[%s1493_s3 + $0x40] sm:$0xff] %v1034_v9  ;;  %v451_v46 = vmul.f32 %v1034_v9, %v1034_v9  ;;  %v379_v22 = vadd.f32 %v378_v8, %v1013_v2 }
  0xe2   :  { %333 = vst [vmem:[%s1493_s3 + $0xc0] sm:$0xff] %v1037_v11 }
  0xe3   :  { %348 = vst [vmem:[%s1493_s3 + $0x138] sm:$0xff] %v1122_v41  ;;  %v514_v2 = vadd.f32 %v513_v59, %v451_v46 }
  0xe6   :  { %v144_v17 = vpop.f32.mrf.mxu0  ;;  %v192_v18 = vpop.f32.mrf.mxu1 }
  0xe7   :  { %v1062_v19 = vadd.f32 %v872_v6, %v144_v17  ;;  %v1065_v20 = vadd.f32 %v872_v6, %v192_v18  ;;  %v237_v51 = vpop.f32.mrf.mxu2  ;;  %v276_v18 = vpop.f32.mrf.mxu3 }
  0xe8   :  { %v1147_v56 = vadd.f32 %v872_v6, %v237_v51  ;;  %v1187_v52 = vadd.f32 %v872_v6, %v276_v18 }
  0xe9   :  { %318 = vst [vmem:[%s1493_s3 + $0x48] sm:$0xff] %v1062_v19 }
  0xea   :  { %334 = vst [vmem:[%s1493_s3 + $0xc8] sm:$0xff] %v1065_v20 }
  0xeb   :  { %349 = vst [vmem:[%s1493_s3 + $0x140] sm:$0xff] %v1147_v56 }
  0xec   :  { %362 = vst [vmem:[%s1493_s3 + $0x1a8] sm:$0xff] %v1187_v52 }
  0xee   :  { %v147_v25 = vpop.f32.mrf.mxu0  ;;  %v195_v27 = vpop.f32.mrf.mxu1 }
  0xef   :  { %v1090_v28 = vadd.f32 %v872_v6, %v147_v25  ;;  %v1093_v29 = vadd.f32 %v872_v6, %v195_v27  ;;  %v240_v17 = vpop.f32.mrf.mxu2  ;;  %v452_v25 = vmul.f32 %v1062_v19, %v1062_v19  ;;  %v380_v27 = vadd.f32 %v379_v22, %v1034_v9  ;;  %v279_v54 = vpop.f32.mrf.mxu3 }
  0xf0   :  { %v1184_v49 = vadd.f32 %v872_v6, %v240_v17 }
  0xf1   :  { %319 = vst [vmem:[%s1493_s3 + $0x50] sm:$0xff] %v1090_v28  ;;  %v381_v30 = vadd.f32 %v380_v27, %v1062_v19  ;;  %v453_v31 = vmul.f32 %v1090_v28, %v1090_v28  ;;  %v1220_v19 = vadd.f32 %v872_v6, %v279_v54 }
  0xf2   :  { %335 = vst [vmem:[%s1493_s3 + $0xd0] sm:$0xff] %v1093_v29 }
  0xf3   :  { %350 = vst [vmem:[%s1493_s3 + $0x148] sm:$0xff] %v1184_v49  ;;  %v382_v9 = vadd.f32 %v381_v30, %v1090_v28 }
  0xf4   :  { %363 = vst [vmem:[%s1493_s3 + $0x1b0] sm:$0xff] %v1220_v19 }
  0xf6   :  { %v150_v34 = vpop.f32.mrf.mxu0  ;;  %v198_v36 = vpop.f32.mrf.mxu1 }
  0xf7   :  { %v151_v37 = vadd.f32 %v872_v6, %v150_v34  ;;  %v1119_v38 = vadd.f32 %v872_v6, %v198_v36  ;;  %v515_v34 = vadd.f32 %v514_v2, %v452_v25  ;;  %v243_v51 = vpop.f32.mrf.mxu2  ;;  %v282_v25 = vpop.f32.mrf.mxu3 }
  0xf8   :  { %v1217_v58 = vadd.f32 %v872_v6, %v243_v51  ;;  %v1245_v2 = vadd.f32 %v872_v6, %v282_v25 }
  0xf9   :  { %320 = vst [vmem:[%s1493_s3 + $0x58] sm:$0xff] %v151_v37  ;;  %v454_v40 = vmul.f32 %v151_v37, %v151_v37  ;;  %v516_v61 = vadd.f32 %v515_v34, %v453_v31  ;;  %v383_v63 = vadd.f32 %v382_v9, %v151_v37  ;;  %v459_v34 = vmul.f32 %v876_v10, %v876_v10 }
  0xfa   :  { %336 = vst [vmem:[%s1493_s3 + $0xd8] sm:$0xff] %v1119_v38  ;;  %v460_v9 = vmul.f32 %v893_v16, %v893_v16 }
  0xfb   :  { %v517_v28 = vadd.f32 %v516_v61, %v454_v40  ;;  %351 = vst [vmem:[%s1493_s3 + $0x150] sm:$0xff] %v1217_v58 }
  0xfc   :  { %364 = vst [vmem:[%s1493_s3 + $0x1b8] sm:$0xff] %v1245_v2 }
  0xfe   :  { %v153_v44 = vpop.f32.mrf.mxu0  ;;  %v201_v47 = vpop.f32.mrf.mxu1 }
  0xff   :  { %v154_v48 = vadd.f32 %v872_v6, %v153_v44  ;;  %v1144_v50 = vadd.f32 %v872_v6, %v201_v47  ;;  %v246_v59 = vpop.f32.mrf.mxu2 }
 0x100   :  { %v1242_v27 = vadd.f32 %v872_v6, %v246_v59 }
 0x101   :  { %321 = vst [vmem:[%s1493_s3 + $0x60] sm:$0xff] %v154_v48  ;;  %v455_v0 = vmul.f32 %v154_v48, %v154_v48  ;;  %v384_v1 = vadd.f32 %v383_v63, %v154_v48  ;;  %v285_v63 = vpop.f32.mrf.mxu3 }
 0x102   :  { %337 = vst [vmem:[%s1493_s3 + $0xe0] sm:$0xff] %v1144_v50 }
 0x103   :  { %v518_v37 = vadd.f32 %v517_v28, %v455_v0  ;;  %352 = vst [vmem:[%s1493_s3 + $0x158] sm:$0xff] %v1242_v27  ;;  %v1275_v28 = vadd.f32 %v872_v6, %v285_v63 }
 0x105   :  { %365 = vst [vmem:[%s1493_s3 + $0x1c0] sm:$0xff] %v1275_v28 }
 0x106   :  { %v156_v4 = vpop.f32.mrf.mxu0  ;;  %v204_v7 = vpop.f32.mrf.mxu1 }
 0x107   :  { %v157_v12 = vadd.f32 %v872_v6, %v156_v4  ;;  %v1179_v13 = vadd.f32 %v872_v6, %v204_v7  ;;  %v249_v61 = vpop.f32.mrf.mxu2 }
 0x108   :  { %v1272_v0 = vadd.f32 %v872_v6, %v249_v61 }
 0x109   :  { %322 = vst [vmem:[%s1493_s3 + $0x68] sm:$0xff] %v157_v12  ;;  %v456_v4 = vmul.f32 %v157_v12, %v157_v12  ;;  %v385_v7 = vadd.f32 %v384_v1, %v157_v12  ;;  %v462_v1 = vmul.f32 %v927_v35, %v927_v35 }
 0x10a   :  { %338 = vst [vmem:[%s1493_s3 + $0xe8] sm:$0xff] %v1179_v13 }
 0x10b   :  { %v519_v21 = vadd.f32 %v518_v37, %v456_v4  ;;  %353 = vst [vmem:[%s1493_s3 + $0x160] sm:$0xff] %v1272_v0 }
 0x10e   :  { %v159_v36 = vpop.f32.mrf.mxu0  ;;  %v207_v39 = vpop.f32.mrf.mxu1 }
 0x10f   :  { %v160_v44 = vadd.f32 %v872_v6, %v159_v36  ;;  %v1214_v47 = vadd.f32 %v872_v6, %v207_v39 }
 0x111   :  { %323 = vst [vmem:[%s1493_s3 + $0x70] sm:$0xff] %v160_v44  ;;  %v457_v8 = vmul.f32 %v160_v44, %v160_v44  ;;  %v386_v46 = vadd.f32 %v385_v7, %v160_v44 }
 0x112   :  { %339 = vst [vmem:[%s1493_s3 + $0xf0] sm:$0xff] %v1214_v47 }
 0x113   :  { %v520_v30 = vadd.f32 %v519_v21, %v457_v8 }
 0x116   :  { %v162_v17 = vpop.f32.mrf.mxu0  ;;  %v210_v18 = vpop.f32.mrf.mxu1 }
 0x117   :  { %v163_v48 = vadd.f32 %v872_v6, %v162_v17  ;;  %v1239_v22 = vadd.f32 %v872_v6, %v210_v18  ;;  %v465_v18 = vmul.f32 %v992_v60, %v992_v60 }
 0x119   :  { %324 = vst [vmem:[%s1493_s3 + $0x78] sm:$0xff] %v163_v48  ;;  %v387_v12 = vadd.f32 %v386_v46, %v163_v48  ;;  %v458_v31 = vmul.f32 %v163_v48, %v163_v48  ;;  %v252_v48 = vpop.f32.mrf.mxu2 }
 0x11a   :  { %340 = vst [vmem:[%s1493_s3 + $0xf8] sm:$0xff] %v1239_v22  ;;  %v1298_v59 = vadd.f32 %v872_v6, %v252_v48 }
 0x11b   :  { %v388_v36 = vadd.f32 %v387_v12, %v876_v10  ;;  %v521_v39 = vadd.f32 %v520_v30, %v458_v31  ;;  %v461_v10 = vmul.f32 %v910_v26, %v910_v26  ;;  %v466_v30 = vmul.f32 %v1016_v3, %v1016_v3 }
 0x11c   :  { %354 = vst [vmem:[%s1493_s3 + $0x168] sm:$0xff] %v1298_v59 }
 0x11d   :  { %v389_v40 = vadd.f32 %v388_v36, %v893_v16  ;;  %v522_v44 = vadd.f32 %v521_v39, %v459_v34 }
 0x11f   :  { %v390_v51 = vadd.f32 %v389_v40, %v910_v26  ;;  %v523_v54 = vadd.f32 %v522_v44, %v460_v9  ;;  %v463_v26 = vmul.f32 %v941_v43, %v941_v43  ;;  %v469_v9 = vmul.f32 %v1093_v29, %v1093_v29 }
 0x121   :  { %v391_v16 = vadd.f32 %v390_v51, %v927_v35  ;;  %v524_v4 = vadd.f32 %v523_v54, %v461_v10  ;;  %v464_v35 = vmul.f32 %v968_v53, %v968_v53  ;;  %v255_v10 = vpop.f32.mrf.mxu2 }
 0x122   :  { %v1324_v51 = vadd.f32 %v872_v6, %v255_v10 }
 0x123   :  { %v392_v37 = vadd.f32 %v391_v16, %v941_v43  ;;  %v525_v7 = vadd.f32 %v524_v4, %v462_v1  ;;  %v288_v43 = vpop.f32.mrf.mxu3  ;;  %v471_v16 = vmul.f32 %v1144_v50, %v1144_v50 }
 0x124   :  { %v1301_v25 = vadd.f32 %v872_v6, %v288_v43  ;;  %355 = vst [vmem:[%s1493_s3 + $0x170] sm:$0xff] %v1324_v51 }
 0x125   :  { %v526_v8 = vadd.f32 %v525_v7, %v463_v26  ;;  %v393_v17 = vadd.f32 %v392_v37, %v968_v53  ;;  %v472_v26 = vmul.f32 %v1179_v13, %v1179_v13 }
 0x126   :  { %366 = vst [vmem:[%s1493_s3 + $0x1c8] sm:$0xff] %v1301_v25 }
 0x127   :  { %v394_v21 = vadd.f32 %v393_v17, %v992_v60  ;;  %v527_v46 = vadd.f32 %v526_v8, %v464_v35  ;;  %v467_v60 = vmul.f32 %v1037_v11, %v1037_v11  ;;  %v473_v35 = vmul.f32 %v1214_v47, %v1214_v47 }
 0x129   :  { %v395_v12 = vadd.f32 %v394_v21, %v1016_v3  ;;  %v528_v53 = vadd.f32 %v527_v46, %v465_v18  ;;  %v468_v3 = vmul.f32 %v1065_v20, %v1065_v20  ;;  %v258_v8 = vpop.f32.mrf.mxu2 }
 0x12a   :  { %v1352_v18 = vadd.f32 %v872_v6, %v258_v8 }
 0x12b   :  { %v396_v31 = vadd.f32 %v395_v12, %v1037_v11  ;;  %v529_v34 = vadd.f32 %v528_v53, %v466_v30  ;;  %v291_v11 = vpop.f32.mrf.mxu3  ;;  %v476_v30 = vmul.f32 %v971_v55, %v971_v55  ;;  %v477_v53 = vmul.f32 %v995_v62, %v995_v62 }
 0x12c   :  { %v1327_v54 = vadd.f32 %v872_v6, %v291_v11  ;;  %356 = vst [vmem:[%s1493_s3 + $0x178] sm:$0xff] %v1352_v18 }
 0x12d   :  { %v397_v36 = vadd.f32 %v396_v31, %v1065_v20  ;;  %v530_v39 = vadd.f32 %v529_v34, %v467_v60  ;;  %v470_v20 = vmul.f32 %v1119_v38, %v1119_v38 }
 0x12e   :  { %367 = vst [vmem:[%s1493_s3 + $0x1d0] sm:$0xff] %v1327_v54 }
 0x12f   :  { %v398_v40 = vadd.f32 %v397_v36, %v1093_v29  ;;  %v531_v44 = vadd.f32 %v530_v39, %v468_v3  ;;  %v478_v3 = vmul.f32 %v1019_v5, %v1019_v5 }
 0x131   :  { %v399_v61 = vadd.f32 %v398_v40, %v1119_v38  ;;  %v532_v63 = vadd.f32 %v531_v44, %v469_v9  ;;  %v480_v40 = vmul.f32 %v1068_v23, %v1068_v23 }
 0x133   :  { %v533_v29 = vadd.f32 %v532_v63, %v470_v20  ;;  %v400_v1 = vadd.f32 %v399_v61, %v1144_v50  ;;  %v474_v50 = vmul.f32 %v1239_v22, %v1239_v22  ;;  %v294_v17 = vpop.f32.mrf.mxu3 }
 0x134   :  { %v1355_v21 = vadd.f32 %v872_v6, %v294_v17 }
 0x135   :  { %v534_v4 = vadd.f32 %v533_v29, %v471_v16  ;;  %v401_v38 = vadd.f32 %v400_v1, %v1179_v13 }
 0x136   :  { %368 = vst [vmem:[%s1493_s3 + $0x1d8] sm:$0xff] %v1355_v21 }
 0x137   :  { %v535_v37 = vadd.f32 %v534_v4, %v472_v26  ;;  %v402_v7 = vadd.f32 %v401_v38, %v1214_v47  ;;  %v475_v47 = vmul.f32 %v944_v45, %v944_v45  ;;  %v484_v4 = vmul.f32 %v1184_v49, %v1184_v49 }
 0x139   :  { %v536_v46 = vadd.f32 %v535_v37, %v473_v35  ;;  %v403_v13 = vadd.f32 %v402_v7, %v1239_v22 }
 0x13b   :  { %v404_v48 = vadd.f32 %v403_v13, %v944_v45  ;;  %v537_v43 = vadd.f32 %v536_v46, %v474_v50  ;;  %v297_v34 = vpop.f32.mrf.mxu3 }
 0x13c   :  { %v1376_v45 = vadd.f32 %v872_v6, %v297_v34 }
 0x13d   :  { %v405_v22 = vadd.f32 %v404_v48, %v971_v55  ;;  %v538_v12 = vadd.f32 %v537_v43, %v475_v47  ;;  %v479_v55 = vmul.f32 %v1040_v14, %v1040_v14  ;;  %v488_v48 = vmul.f32 %v1298_v59, %v1298_v59 }
 0x13e   :  { %369 = vst [vmem:[%s1493_s3 + $0x1e0] sm:$0xff] %v1376_v45 }
 0x13f   :  { %v406_v60 = vadd.f32 %v405_v22, %v995_v62  ;;  %v539_v31 = vadd.f32 %v538_v12, %v476_v30  ;;  %v489_v30 = vmul.f32 %v1324_v51, %v1324_v51  ;;  %v490_v22 = vmul.f32 %v1352_v18, %v1352_v18 }
 0x141   :  { %v407_v36 = vadd.f32 %v406_v60, %v1019_v5  ;;  %v540_v39 = vadd.f32 %v539_v31, %v477_v53  ;;  %v481_v5 = vmul.f32 %v1096_v32, %v1096_v32 }
 0x143   :  { %v408_v62 = vadd.f32 %v407_v36, %v1040_v14  ;;  %v541_v9 = vadd.f32 %v540_v39, %v478_v3  ;;  %v300_v20 = vpop.f32.mrf.mxu3  ;;  %v482_v14 = vmul.f32 %v1122_v41, %v1122_v41 }
 0x144   :  { %v1395_v63 = vadd.f32 %v872_v6, %v300_v20 }
 0x145   :  { %v542_v44 = vadd.f32 %v541_v9, %v479_v55  ;;  %v409_v10 = vadd.f32 %v408_v62, %v1068_v23  ;;  %v483_v23 = vmul.f32 %v1147_v56, %v1147_v56  ;;  %v494_v55 = vmul.f32 %v1125_v42, %v1125_v42 }
 0x146   :  { %370 = vst [vmem:[%s1493_s3 + $0x1e8] sm:$0xff] %v1395_v63 }
 0x147   :  { %v410_v11 = vadd.f32 %v409_v10, %v1096_v32  ;;  %v543_v61 = vadd.f32 %v542_v44, %v480_v40 }
 0x149   :  { %v411_v29 = vadd.f32 %v410_v11, %v1122_v41  ;;  %v544_v1 = vadd.f32 %v543_v61, %v481_v5  ;;  %v485_v41 = vmul.f32 %v1217_v58, %v1217_v58 }
 0x14b   :  { %v412_v32 = vadd.f32 %v411_v29, %v1147_v56  ;;  %v545_v16 = vadd.f32 %v544_v1, %v482_v14  ;;  %v303_v35 = vpop.f32.mrf.mxu3  ;;  %v486_v56 = vmul.f32 %v1242_v27, %v1242_v27 }
 0x14c   :  { %v1414_v50 = vadd.f32 %v872_v6, %v303_v35  ;;  %v504_v35 = vmul.f32 %v1395_v63, %v1395_v63 }
 0x14d   :  { %v413_v38 = vadd.f32 %v412_v32, %v1184_v49  ;;  %v546_v26 = vadd.f32 %v545_v16, %v483_v23 }
 0x14e   :  { %371 = vst [vmem:[%s1493_s3 + $0x1f0] sm:$0xff] %v1414_v50 }
 0x14f   :  { %v414_v37 = vadd.f32 %v413_v38, %v1217_v58  ;;  %v547_v7 = vadd.f32 %v546_v26, %v484_v4  ;;  %v487_v58 = vmul.f32 %v1272_v0, %v1272_v0  ;;  %v502_v38 = vmul.f32 %v1355_v21, %v1355_v21 }
 0x151   :  { %v415_v8 = vadd.f32 %v414_v37, %v1242_v27  ;;  %v548_v17 = vadd.f32 %v547_v7, %v485_v41  ;;  %v503_v37 = vmul.f32 %v1376_v45, %v1376_v45 }
 0x153   :  { %v549_v49 = vadd.f32 %v548_v17, %v486_v56  ;;  %v416_v46 = vadd.f32 %v415_v8, %v1272_v0  ;;  %v306_v12 = vpop.f32.mrf.mxu3  ;;  %v505_v56 = vmul.f32 %v1414_v50, %v1414_v50 }
 0x154   :  { %v307_v53 = vadd.f32 %v872_v6, %v306_v12  ;;  %v493_v6 = vmul.f32 %v1099_v33, %v1099_v33 }
 0x155   :  { %v550_v13 = vadd.f32 %v549_v49, %v487_v58  ;;  %v417_v47 = vadd.f32 %v416_v46, %v1298_v59  ;;  %v491_v59 = vmul.f32 %v1043_v15, %v1043_v15 }
 0x156   :  { %372 = vst [vmem:[%s1493_s3 + $0x1f8] sm:$0xff] %v307_v53 }
 0x157   :  { %v551_v43 = vadd.f32 %v550_v13, %v488_v48  ;;  %v418_v27 = vadd.f32 %v417_v47, %v1324_v51  ;;  %v492_v51 = vmul.f32 %v1071_v24, %v1071_v24 }
 0x159   :  { %v552_v60 = vadd.f32 %v551_v43, %v489_v30  ;;  %v419_v0 = vadd.f32 %v418_v27, %v1352_v18 }
 0x15b   :  { %v420_v31 = vadd.f32 %v419_v0, %v1043_v15  ;;  %v553_v34 = vadd.f32 %v552_v60, %v490_v22  ;;  %v495_v15 = vmul.f32 %v1150_v57, %v1150_v57 }
 0x15d   :  { %v421_v3 = vadd.f32 %v420_v31, %v1071_v24  ;;  %v554_v36 = vadd.f32 %v553_v34, %v491_v59  ;;  %v496_v24 = vmul.f32 %v1187_v52, %v1187_v52 }
 0x15f   :  { %v422_v18 = vadd.f32 %v421_v3, %v1099_v33  ;;  %v555_v39 = vadd.f32 %v554_v36, %v492_v51  ;;  %v497_v33 = vmul.f32 %v1220_v19, %v1220_v19 }
 0x161   :  { %v423_v62 = vadd.f32 %v422_v18, %v1125_v42  ;;  %v556_v9 = vadd.f32 %v555_v39, %v493_v6  ;;  %v498_v42 = vmul.f32 %v1245_v2, %v1245_v2 }
 0x163   :  { %v424_v40 = vadd.f32 %v423_v62, %v1150_v57  ;;  %v557_v44 = vadd.f32 %v556_v9, %v494_v55  ;;  %v499_v57 = vmul.f32 %v1275_v28, %v1275_v28 }
 0x165   :  { %v558_v10 = vadd.f32 %v557_v44, %v495_v15  ;;  %v425_v5 = vadd.f32 %v424_v40, %v1187_v52  ;;  %v500_v52 = vmul.f32 %v1301_v25, %v1301_v25 }
 0x167   :  { %v426_v11 = vadd.f32 %v425_v5, %v1220_v19  ;;  %v559_v61 = vadd.f32 %v558_v10, %v496_v24  ;;  %v501_v19 = vmul.f32 %v1327_v54, %v1327_v54 }
 0x169   :  { %v427_v20 = vadd.f32 %v426_v11, %v1245_v2  ;;  %v560_v14 = vadd.f32 %v559_v61, %v497_v33 }
 0x16b   :  { %v428_v29 = vadd.f32 %v427_v20, %v1275_v28  ;;  %v561_v1 = vadd.f32 %v560_v14, %v498_v42 }
 0x16d   :  { %v429_v23 = vadd.f32 %v428_v29, %v1301_v25  ;;  %v562_v32 = vadd.f32 %v561_v1, %v499_v57 }
 0x16f   :  { %v430_v16 = vadd.f32 %v429_v23, %v1327_v54  ;;  %v563_v4 = vadd.f32 %v562_v32, %v500_v52 }
 0x171   :  { %v431_v2 = vadd.f32 %v430_v16, %v1355_v21  ;;  %v564_v26 = vadd.f32 %v563_v4, %v501_v19  ;;  %v506_v21 = vmul.f32 %v307_v53, %v307_v53 }
 0x173   :  { %v565_v28 = vadd.f32 %v564_v26, %v502_v38  ;;  %v432_v41 = vadd.f32 %v431_v2, %v1376_v45 }
 0x175   :  { %v566_v25 = vadd.f32 %v565_v28, %v503_v37  ;;  %v433_v7 = vadd.f32 %v432_v41, %v1395_v63 }
 0x177   :  { %v567_v54 = vadd.f32 %v566_v25, %v504_v35  ;;  %v434_v8 = vadd.f32 %v433_v7, %v1414_v50 }
 0x179   :  { %v568_v17 = vadd.f32 %v567_v54, %v505_v56  ;;  %v435_v49 = vadd.f32 %v434_v8, %v307_v53 }
 0x17b   :  { %v436_v46 = vrot.slane %v435_v49, 4  ;;  %v569_v58 = vadd.f32 %v568_v17, %v506_v21 }
 0x17d   :  { %v437_v13 = vadd.f32 %v436_v46, %v435_v49  ;;  %v570_v47 = vrot.slane %v569_v58, 4 }
 0x17f   :  { %v438_v45 = vrot.slane %v437_v13, 2  ;;  %v571_v48 = vadd.f32 %v570_v47, %v569_v58 }
 0x181   :  { %v439_v43 = vadd.f32 %v438_v45, %v437_v13  ;;  %v572_v27 = vrot.slane %v571_v48, 2 }
 0x183   :  { %v440_v30 = vrot.slane %v439_v43, 1  ;;  %v573_v22 = vadd.f32 %v572_v27, %v571_v48 }
 0x185   :  { %v441_v63 = vadd.f32 %v440_v30, %v439_v43  ;;  %v574_v12 = vrot.slane %v573_v22, 1 }
 0x187   :  { %442 = vst [vmem:[%s1494_s4] sm:$0x1] %v441_v63  ;;  %v575_v50 = vadd.f32 %v574_v12, %v573_v22 }
 0x189   :  { %576 = vst [vmem:[%s1494_s4 + $0x1] sm:$0x1] %v575_v50 }

// kernel: _lambda_.9
= control target key start
LH: loop header
LB: loop body
LE: loop exit
PB: predicated region body
PF: predicated region fallthrough
CT: control target
= control target key end

     0   :  { %s288_s1 = inlined_call_operand.vmem [shape: f32[128,128], index: 1, kind: input, shape index: {}]   ;;  %s289_s0 = inlined_call_operand.vmem [shape: f32[2,1,128], index: 0, kind: input, shape index: {}]   ;;  %s290_s3 = inlined_call_operand.vmem [shape: f32[128,128], index: 3, kind: input, shape index: {}]   ;;  %s291_s2 = inlined_call_operand.vmem [shape: f32[1,128], index: 2, kind: input, shape index: {}]   ;;  %s292_s4 = inlined_call_operand.vmem [shape: f32[1,128], index: 4, kind: input, shape index: {}]   ;;  %s293_s5 = inlined_call_operand.vmem [shape: f32[2,1,128], index: 5, kind: output, shape index: {}]  }
   0x1   :  { %v37_v0 = vld [vmem:[%s288_s1 + $0x78] sm:$0xff]  ;;  %v36_v1 = vld [vmem:[%s288_s1 + $0x70] sm:$0xff]  ;;  %v35_v2 = vld [vmem:[%s288_s1 + $0x68] sm:$0xff] }
   0x2   :  { %49 = vmatpush.msra.mxu0 %v37_v0  ;;  %v34_v3 = vld [vmem:[%s288_s1 + $0x60] sm:$0xff]  ;;  %v33_v6 = vld [vmem:[%s288_s1 + $0x58] sm:$0xff]  ;;  %v84_v8 = vld [vmem:[%s290_s3 + $0x70] sm:$0xff] }
   0x3   :  { %v20_v4 = vld [vmem:[%s289_s0] sm:$0x1]  ;;  %v21_v5 = vld [vmem:[%s289_s0 + $0x1] sm:$0x1]  ;;  %v85_v7 = vld [vmem:[%s290_s3 + $0x78] sm:$0xff] }
   0x4   :  { %50 = vmatpush.msra.mxu0 %v36_v1  ;;  %44 = vst [vmem:[#allocation1] ss:$9 sm:$0xff] %v20_v4  ;;  %90 = vmatpush.msra.mxu1 %v85_v7  ;;  %v32_v9 = vld [vmem:[%s288_s1 + $0x50] sm:$0xff]  ;;  %v83_v10 = vld [vmem:[%s290_s3 + $0x68] sm:$0xff]  ;;  %v82_v12 = vld [vmem:[%s290_s3 + $0x60] sm:$0xff] }
   0x5   :  { %46 = vst [vmem:[#allocation1 + $0x1] ss:$9 sm:$0xff] %v21_v5  ;;  %v31_v11 = vld [vmem:[%s288_s1 + $0x48] sm:$0xff]  ;;  %v30_v13 = vld [vmem:[%s288_s1 + $0x40] sm:$0xff]  ;;  %v81_v14 = vld [vmem:[%s290_s3 + $0x58] sm:$0xff] }
   0x6   :  { %51 = vmatpush.msra.mxu0 %v35_v2  ;;  %91 = vmatpush.msra.mxu1 %v84_v8  ;;  %v29_v15 = vld [vmem:[%s288_s1 + $0x38] sm:$0xff]  ;;  %v80_v16 = vld [vmem:[%s290_s3 + $0x50] sm:$0xff]  ;;  %v79_v18 = vld [vmem:[%s290_s3 + $0x48] sm:$0xff] }
   0x7   :  { %v28_v17 = vld [vmem:[%s288_s1 + $0x30] sm:$0xff]  ;;  %v27_v19 = vld [vmem:[%s288_s1 + $0x28] sm:$0xff]  ;;  %v78_v20 = vld [vmem:[%s290_s3 + $0x40] sm:$0xff] }
   0x8   :  { %52 = vmatpush.msra.mxu0 %v34_v3  ;;  %92 = vmatpush.msra.mxu1 %v83_v10  ;;  %v26_v21 = vld [vmem:[%s288_s1 + $0x20] sm:$0xff]  ;;  %v77_v22 = vld [vmem:[%s290_s3 + $0x38] sm:$0xff]  ;;  %v76_v24 = vld [vmem:[%s290_s3 + $0x30] sm:$0xff] }
   0x9   :  { %v25_v23 = vld [vmem:[%s288_s1 + $0x18] sm:$0xff]  ;;  %v24_v25 = vld [vmem:[%s288_s1 + $0x10] sm:$0xff]  ;;  %v75_v26 = vld [vmem:[%s290_s3 + $0x28] sm:$0xff] }
   0xa   :  { %53 = vmatpush.msra.mxu0 %v33_v6  ;;  %93 = vmatpush.msra.mxu1 %v82_v12  ;;  %v23_v27 = vld [vmem:[%s288_s1 + $0x8] sm:$0xff]  ;;  %v74_v28 = vld [vmem:[%s290_s3 + $0x20] sm:$0xff]  ;;  %v73_v30 = vld [vmem:[%s290_s3 + $0x18] sm:$0xff] }
   0xb   :  { %v22_v29 = vld [vmem:[%s288_s1] sm:$0xff]  ;;  %v72_v32 = vld [vmem:[%s290_s3 + $0x10] sm:$0xff]  ;;  %v71_v33 = vld [vmem:[%s290_s3 + $0x8] sm:$0xff] }
   0xc   :  { %54 = vmatpush.msra.mxu0 %v32_v9  ;;  %94 = vmatpush.msra.mxu1 %v81_v14  ;;  %v47_v31 = vld [vmem:[#allocation1] sm:$0xff] }
   0xd   :  { %v70_v34 = vld [vmem:[%s290_s3] sm:$0xff] }
   0xe   :  { %55 = vmatpush.msra.mxu0 %v31_v11  ;;  %95 = vmatpush.msra.mxu1 %v80_v16  ;;  %v138_v35 = vld [vmem:[%s291_s2] ss:$0 sm:$0xff] }
   0xf   :  { %v139_v39 = vld [vmem:[%s292_s4] ss:$0 sm:$0xff] }
  0x10   :  { %56 = vmatpush.msra.mxu0 %v30_v13  ;;  %96 = vmatpush.msra.mxu1 %v79_v18 }
  0x12   :  { %57 = vmatpush.msra.mxu0 %v29_v15  ;;  %97 = vmatpush.msra.mxu1 %v78_v20 }
  0x14   :  { %58 = vmatpush.msra.mxu0 %v28_v17  ;;  %98 = vmatpush.msra.mxu1 %v77_v22 }
  0x16   :  { %59 = vmatpush.msra.mxu0 %v27_v19  ;;  %99 = vmatpush.msra.mxu1 %v76_v24 }
  0x18   :  { %60 = vmatpush.msra.mxu0 %v26_v21  ;;  %100 = vmatpush.msra.mxu1 %v75_v26 }
  0x1a   :  { %61 = vmatpush.msra.mxu0 %v25_v23  ;;  %101 = vmatpush.msra.mxu1 %v74_v28 }
  0x1c   :  { %62 = vmatpush.msra.mxu0 %v24_v25  ;;  %102 = vmatpush.msra.mxu1 %v73_v30 }
  0x1e   :  { %63 = vmatpush.msra.mxu0 %v23_v27  ;;  %103 = vmatpush.msra.mxu1 %v72_v32 }
  0x20   :  { %64 = vmatpush.msra.mxu0 %v22_v29  ;;  %104 = vmatpush.msra.mxu1 %v71_v33 }
  0x21   :  { %65 = vmatmul.f32.vlgmr.msra.gmra.mxu0 %v47_v31 }
  0x22   :  { %105 = vmatpush.msra.mxu1 %v70_v34 }
  0x9e   :  { %v66_v36 = vpop.f32.mrf.mxu0 }
  0x9f   :  { %v67_v37 = vadd.f32 %v138_v35, %v66_v36 }
  0xa1   :  { %v69_v38 = vmax.f32 %v67_v37, 0.0 }
  0xa3   :  { %106 = vmatmul.f32.vlgmr.msra.gmra.mxu1 %v69_v38 }
 0x120   :  { %v107_v40 = vpop.f32.mrf.mxu1 }
 0x121   :  { %v108_v41 = vadd.f32 %v139_v39, %v107_v40 }
 0x123   :  { %v110_v42 = vsub.f32 0.0, %v108_v41 }
 0x125   :  { %v111_v43 = vmul.f32 1.442695, %v110_v42 }
 0x127   :  { %140 = vpow2.f32 %v111_v43 }
 0x12d   :  { %v141_v44 = vpop.eup %140 }
 0x12e   :  { %v113_v45 = vadd.f32 1.0, %v141_v44 }
 0x130   :  { %142 = vrcp.f32 %v113_v45  ;;  %v125_v49 = vand.u32 2147483648, %v113_v45  ;;  %v123_v51 = vand.u32 2147483647, %v113_v45  ;;  %vm119_vm1 = vweird.f32 %v113_v45 }
 0x132   :  { %v126_v53 = vor.u32 1.1754944e-38, %v125_v49  ;;  %vm124_vm3 = vcmp.eq.f32.partialorder %v123_v51, 8.507059e+37 }
 0x136   :  { %v143_v46 = vpop.eup %142 }
 0x137   :  { %v115_v47 = vmul.f32 %v143_v46, %v113_v45  ;;  %vm120_vm0 = vweird.f32 %v143_v46 }
 0x138   :  { %vm121_vm2 = vmor %vm119_vm1, %vm120_vm0 }
 0x139   :  { %v116_v48 = vsub.f32 1.0, %v115_v47 }
 0x13b   :  { %v117_v50 = vmul.f32 %v143_v46, %v116_v48 }
 0x13d   :  { %v118_v52 = vadd.f32 %v143_v46, %v117_v50 }
 0x13f   :  { %v122_v54 = vsel %vm121_vm2, %v143_v46, %v118_v52 }
 0x140   :  { %v127_v55 = vsel %vm124_vm3, %v126_v53, %v122_v54 }
 0x141   :  { %v130_v56 = vrot.slane %v127_v55, 1  ;;  %132 = vst [vmem:[%s293_s5] sm:$0x1] %v127_v55 }
 0x143   :  { %133 = vst [vmem:[%s293_s5 + $0x1] sm:$0x1] %v130_v56 }

// kernel: _lambda_.7
= control target key start
LH: loop header
LB: loop body
LE: loop exit
PB: predicated region body
PF: predicated region fallthrough
CT: control target
= control target key end

     0   :  { %s3069_s21 = smov 0   ;;  %s3071_s22 = smov 0   ;;  %s4764_s0 = inlined_call_operand.vmem [shape: f32[2,16,16,128], index: 0, kind: input, shape index: {}]   ;;  %s4765_s1 = inlined_call_operand.vmem [shape: f32[1,128], index: 1, kind: input, shape index: {}]   ;;  %s4766_s2 = inlined_call_operand.vmem [shape: f32[1,128], index: 2, kind: input, shape index: {}]   ;;  %s4767_s3 = inlined_call_operand.vmem [shape: f32[3,3,128], index: 3, kind: input, shape index: {}]   ;;  %s4768_s4 = inlined_call_operand.vmem [shape: f32[1,128], index: 4, kind: input, shape index: {}]   ;;  %s4769_s5 = inlined_call_operand.vmem [shape: f32[2,16,16,128], index: 5, kind: output, shape index: {0}]   ;;  %s4770_s6 = inlined_call_operand.vmem [shape: f32[2,2,128], index: 6, kind: output, shape index: {1}]  }
   0x1   :  { %s3073_s23 = smov 0  }
   0x2 LB: > { %s29_s24 = sadd.s32 1, %s3027_s22  ;;  %p2966_p0 = scmp.ge.s32.totalorder %s3031_s23, 1  ;;  %s3031_s23 = sphi %s3073_s23, %s17_s23   ;;  %s3027_s22 = sphi %s3071_s22, %s4772_s22   ;;  %s3023_s21 = sphi %s3069_s21, %s4771_s21  }
   0x3   : > { %p31_p1 = scmp.ge.s32.totalorder %s29_s24, 2  ;;  %p269_p2 = scmp.lt.s32.totalorder %s3031_s23, 3 }
   0x5   : > { %s4774_s24 = smov (%p31_p1, %s29_s24), 0  ;;  %p270_p3 = pnand %p2966_p0, %p269_p2 }
   0x6   : > { %p325_p4 = scmp.lt.s32.totalorder (!%p270_p3), %s3023_s21, 1 }
   0x7   : > { %273 = sbr.rel (%p270_p3) target bundleno = 441 (0x1b9), region = 40 }
   0xc   : > { %v3033_v0 = vmov 0.0   ;;  %s4776_s21 = smov (!%p325_p4, %s3023_s21), 1  ;;  %v3115_v1 = vld [vmem:[%s4765_s1] ss:$0 sm:$0xff]  ;;  %vm1114_vm0 = vcmask 1046528   ;;  %vm1291_vm1 = vcmask 1041408  }
   0xd   : > { %364 = vst [vmem:[#allocation2 + $0x18] sm:$0xff] %v3033_v0  ;;  %s2974_s25 = sshll.u32 %s4776_s21, 8  ;;  %v3127_v5 = vld [vmem:[%s4766_s2] ss:$0 sm:$0xff]  ;;  %vm1900_vm2 = vcmask 1045504   ;;  %vm2077_vm3 = vcmask 1040384  }
   0xe   : > { %361 = vst [vmem:[#allocation2] sm:$0xff] %v3033_v0  ;;  %s3108_s28 = scalar_lea.vmem %s4764_s0, %s2974_s25  ;;  %s3494_s19 = scalar_lea.vmem %s4769_s5, %s2974_s25 }
   0xf   : > { %363 = vst [vmem:[#allocation2 + $0x10] sm:$0x3] %v3033_v0  ;;  %v415_v2 = vld [vmem:[%s3108_s28] sm:$0xff]  ;;  %v416_v3 = vld [vmem:[%s3108_s28 + $0x8] sm:$0xff]  ;;  %v417_v7 = vld [vmem:[%s3108_s28 + $0x10] sm:$0xff]  ;;  %s2971_s8 = sshll.u32 %s4776_s21, 1 }
  0x10   : > { %365 = vst [vmem:[#allocation2 + $0x20] sm:$0xff] %v3033_v0  ;;  %v451_v4 = vmul.f32 %v3115_v1, %v415_v2  ;;  %v452_v6 = vmul.f32 %v3115_v1, %v416_v3  ;;  %v418_v8 = vld [vmem:[%s3108_s28 + $0x18] sm:$0xff]  ;;  %v453_v9 = vmul.f32 %v3115_v1, %v417_v7  ;;  %v419_v13 = vld [vmem:[%s3108_s28 + $0x20] sm:$0xff]  ;;  %v420_v14 = vld [vmem:[%s3108_s28 + $0x28] sm:$0xff]  ;;  %s360_s11 = scalar_lea.vmem %s4770_s6, %s2971_s8 }
  0x11   : > { %366 = vst [vmem:[#allocation2 + $0x28] sm:$0x3] %v3033_v0  ;;  %v454_v12 = vmul.f32 %v3115_v1, %v418_v8  ;;  %v421_v15 = vld [vmem:[%s3108_s28 + $0x30] sm:$0xff]  ;;  %v455_v17 = vmul.f32 %v3115_v1, %v419_v13  ;;  %v422_v18 = vld [vmem:[%s3108_s28 + $0x38] sm:$0xff]  ;;  %v423_v19 = vld [vmem:[%s3108_s28 + $0x40] sm:$0xff]  ;;  %v456_v25 = vmul.f32 %v3115_v1, %v420_v14 }
  0x12   : > { %367 = vst [vmem:[#allocation2 + $0x30] sm:$0xff] %v3033_v0  ;;  %v487_v10 = vadd.f32 %v3127_v5, %v451_v4  ;;  %v488_v11 = vadd.f32 %v3127_v5, %v452_v6  ;;  %v489_v16 = vadd.f32 %v3127_v5, %v453_v9  ;;  %v424_v23 = vld [vmem:[%s3108_s28 + $0x48] sm:$0xff]  ;;  %v425_v24 = vld [vmem:[%s3108_s28 + $0x50] sm:$0xff]  ;;  %v457_v26 = vmul.f32 %v3115_v1, %v421_v15  ;;  %v426_v27 = vld [vmem:[%s3108_s28 + $0x58] sm:$0xff] }
  0x13   : > { %368 = vst [vmem:[#allocation2 + $0x38] sm:$0xff] %v3033_v0  ;;  %v490_v22 = vadd.f32 %v3127_v5, %v454_v12  ;;  %v458_v28 = vmul.f32 %v3115_v1, %v422_v18  ;;  %v459_v29 = vmul.f32 %v3115_v1, %v423_v19  ;;  %v427_v30 = vld [vmem:[%s3108_s28 + $0x60] sm:$0xff]  ;;  %v428_v31 = vld [vmem:[%s3108_s28 + $0x68] sm:$0xff]  ;;  %v491_v33 = vadd.f32 %v3127_v5, %v455_v17  ;;  %v429_v36 = vld [vmem:[%s3108_s28 + $0x70] sm:$0xff] }
  0x14   : > { %369 = vst [vmem:[#allocation2 + $0x40] sm:$0x3] %v3033_v0  ;;  %v519_v20 = vmax.f32 %v487_v10, 0.0  ;;  %v520_v21 = vmax.f32 %v488_v11, 0.0  ;;  %v521_v32 = vmax.f32 %v489_v16, 0.0  ;;  %v460_v34 = vmul.f32 %v3115_v1, %v424_v23  ;;  %v430_v37 = vld [vmem:[%s3108_s28 + $0x78] sm:$0xff] }
  0x15   : > { %370 = vst [vmem:[#allocation2 + $0x48] sm:$0xff] %v3033_v0  ;;  %v461_v35 = vmul.f32 %v3115_v1, %v425_v24  ;;  %v522_v40 = vmax.f32 %v490_v22, 0.0  ;;  %v462_v41 = vmul.f32 %v3115_v1, %v426_v27  ;;  %v492_v42 = vadd.f32 %v3127_v5, %v456_v25  ;;  %v431_v54 = vld [vmem:[%s3108_s28 + $0x80] sm:$0xff]  ;;  %v432_v55 = vld [vmem:[%s3108_s28 + $0x88] sm:$0xff]  ;;  %v433_v9 = vld [vmem:[%s3108_s28 + $0x90] sm:$0xff] }
  0x16   : > { %371 = vst [vmem:[#allocation2 + $0x50] sm:$0xff] %v3033_v0  ;;  %v3170_v38 = vmin.f32 %v519_v20, 6.0  ;;  %v3172_v39 = vmin.f32 %v520_v21, 6.0  ;;  %v493_v43 = vadd.f32 %v3127_v5, %v457_v26  ;;  %v463_v44 = vmul.f32 %v3115_v1, %v427_v30  ;;  %v434_v10 = vld [vmem:[%s3108_s28 + $0x98] sm:$0xff]  ;;  %v670_v30 = vld [vmem:[%s4767_s3] sm:$0x7] }
  0x17   : > { %372 = vst [vmem:[#allocation2 + $0x58] sm:$0x3] %v3033_v0  ;;  %v464_v45 = vmul.f32 %v3115_v1, %v428_v31  ;;  %v494_v46 = vadd.f32 %v3127_v5, %v458_v28  ;;  %v495_v47 = vadd.f32 %v3127_v5, %v459_v29  ;;  %v465_v48 = vmul.f32 %v3115_v1, %v429_v36 }
  0x18   : > { %373 = vst [vmem:[#allocation2 + $0x60] sm:$0xff] %v3033_v0  ;;  %v466_v49 = vmul.f32 %v3115_v1, %v430_v37  ;;  %v3186_v50 = vmin.f32 %v521_v32, 6.0  ;;  %v523_v51 = vmax.f32 %v491_v33, 0.0  ;;  %v496_v52 = vadd.f32 %v3127_v5, %v460_v34  ;;  %v435_v33 = vld [vmem:[%s3108_s28 + $0xa0] sm:$0xff]  ;;  %v436_v34 = vld [vmem:[%s3108_s28 + $0xa8] sm:$0xff] }
  0x19   : > { %374 = vst [vmem:[#allocation2 + $0x68] sm:$0xff] %v3033_v0  ;;  %v497_v53 = vadd.f32 %v3127_v5, %v461_v35  ;;  %v3193_v56 = vmin.f32 %v522_v40, 6.0  ;;  %v498_v57 = vadd.f32 %v3127_v5, %v462_v41  ;;  %v467_v58 = vmul.f32 %v3115_v1, %v431_v54  ;;  %v437_v41 = vld [vmem:[%s3108_s28 + $0xb0] sm:$0xff] }
  0x1a   : > { %375 = vst [vmem:[#allocation2 + $0x70] sm:$0x3] %v3033_v0  ;;  %v468_v59 = vmul.f32 %v3115_v1, %v432_v55  ;;  %v524_v60 = vmax.f32 %v492_v42, 0.0  ;;  %v525_v61 = vmax.f32 %v493_v43, 0.0  ;;  %v499_v62 = vadd.f32 %v3127_v5, %v463_v44  ;;  %v438_v42 = vld [vmem:[%s3108_s28 + $0xb8] sm:$0xff] }
  0x1b   : > { %376 = vst [vmem:[#allocation2 + $0x78] sm:$0xff] %v3033_v0  ;;  %v500_v63 = vadd.f32 %v3127_v5, %v464_v45  ;;  %v526_v2 = vmax.f32 %v494_v46, 0.0  ;;  %v527_v3 = vmax.f32 %v495_v47, 0.0  ;;  %v501_v4 = vadd.f32 %v3127_v5, %v465_v48  ;;  %v671_v43 = vld [vmem:[%s4767_s3 + $0x4] sm:$0x7] }
  0x1c   : > { %377 = vst [vmem:[#allocation2 + $0x80] sm:$0xff] %v3033_v0  ;;  %v502_v6 = vadd.f32 %v3127_v5, %v466_v49  ;;  %v528_v7 = vmax.f32 %v496_v52, 0.0  ;;  %v529_v8 = vmax.f32 %v497_v53, 0.0  ;;  %v3208_v11 = vmin.f32 %v523_v51, 6.0  ;;  %v3264_v49 = vld [vmem:[#allocation2 + $0x10] sm:$0x3] }
  0x1d   : > { %378 = vst [vmem:[#allocation2 + $0x88] sm:$0x3] %v3033_v0  ;;  %v530_v12 = vmax.f32 %v498_v57, 0.0  ;;  %v503_v13 = vadd.f32 %v3127_v5, %v467_v58  ;;  %v504_v14 = vadd.f32 %v3127_v5, %v468_v59  ;;  %v3213_v15 = vmin.f32 %v524_v60, 6.0  ;;  %v672_v53 = vld [vmem:[%s4767_s3 + $0x8] sm:$0x7] }
  0x1e   : > { %379 = vst [vmem:[#allocation2 + $0x90] sm:$0xff] %v3033_v0  ;;  %v3215_v16 = vmin.f32 %v525_v61, 6.0  ;;  %v531_v17 = vmax.f32 %v499_v62, 0.0  ;;  %v532_v18 = vmax.f32 %v500_v63, 0.0  ;;  %v533_v19 = vmax.f32 %v501_v4, 0.0  ;;  %v439_v61 = vld [vmem:[%s3108_s28 + $0xc0] sm:$0xff] }
  0x1f   : > { %380 = vst [vmem:[#allocation2 + $0x98] sm:$0xff] %v3033_v0  ;;  %v534_v20 = vmax.f32 %v502_v6, 0.0  ;;  %v469_v21 = vmul.f32 %v3115_v1, %v433_v9  ;;  %v470_v22 = vmul.f32 %v3115_v1, %v434_v10  ;;  %v3221_v23 = vmin.f32 %v526_v2, 6.0  ;;  %v440_v62 = vld [vmem:[%s3108_s28 + $0xc8] sm:$0xff] }
  0x20   : > { %381 = vst [vmem:[#allocation2 + $0xa0] sm:$0x3] %v3033_v0  ;;  %v3223_v24 = vmin.f32 %v527_v3, 6.0  ;;  %v3225_v25 = vmin.f32 %v528_v7, 6.0  ;;  %v3227_v26 = vmin.f32 %v529_v8, 6.0  ;;  %v3230_v27 = vmin.f32 %v530_v12, 6.0 }
  0x21   : > { %382 = vst [vmem:[#allocation2 + $0xa8] sm:$0xff] %v3033_v0  ;;  %v535_v28 = vmax.f32 %v503_v13, 0.0  ;;  %v536_v29 = vmax.f32 %v504_v14, 0.0  ;;  %v3236_v31 = vmin.f32 %v531_v17, 6.0  ;;  %v3238_v32 = vmin.f32 %v532_v18, 6.0 }
  0x22   : > { %383 = vst [vmem:[#allocation2 + $0xb0] sm:$0xff] %v3033_v0  ;;  %v3243_v35 = vmin.f32 %v533_v19, 6.0  ;;  %v3245_v36 = vmin.f32 %v534_v20, 6.0  ;;  %v505_v37 = vadd.f32 %v3127_v5, %v469_v21  ;;  %v506_v40 = vadd.f32 %v3127_v5, %v470_v22  ;;  %v441_v20 = vld [vmem:[%s3108_s28 + $0xd0] sm:$0xff]  ;;  %v442_v21 = vld [vmem:[%s3108_s28 + $0xd8] sm:$0xff] }
  0x23   : > { %384 = vst [vmem:[#allocation2 + $0xb8] sm:$0x3] %v3033_v0  ;;  %v3255_v44 = vperm.slane %v670_v30, 1  ;;  %v3258_v45 = vmin.f32 %v535_v28, 6.0  ;;  %v3260_v46 = vmin.f32 %v536_v29, 6.0  ;;  %v471_v47 = vmul.f32 %v3115_v1, %v435_v33 }
  0x24   : > { %385 = vst [vmem:[#allocation2 + $0xc0] sm:$0xff] %v3033_v0  ;;  %v472_v48 = vmul.f32 %v3115_v1, %v436_v34  ;;  %v473_v51 = vmul.f32 %v3115_v1, %v437_v41  ;;  %v474_v52 = vmul.f32 %v3115_v1, %v438_v42  ;;  %v3272_v54 = vperm.slane %v670_v30, 0 }
  0x25   : > { %386 = vst [vmem:[#allocation2 + $0xc8] sm:$0xff] %v3033_v0  ;;  %v707_v55 = vmul.f32 0.0, %v3255_v44  ;;  %v537_v57 = vmax.f32 %v505_v37, 0.0  ;;  %v538_v58 = vmax.f32 %v506_v40, 0.0  ;;  %v3276_v59 = vperm.slane %v670_v30, 2 }
  0x26   : > { %387 = vst [vmem:[#allocation2 + $0xd0] sm:$0x3] %v3033_v0  ;;  %v3278_v60 = vperm.slane %v671_v43, 0  ;;  %v3283_v63 = vperm.slane %v671_v43, 1  ;;  %v3285_v2 = vperm.slane %v671_v43, 2  ;;  %v709_v3 = vmul.f32 %v3255_v44, %v3264_v49 }
  0x27   : > { %388 = vst [vmem:[#allocation2 + $0xd8] sm:$0xff] %v3033_v0  ;;  %v507_v4 = vadd.f32 %v3127_v5, %v471_v47  ;;  %v508_v6 = vadd.f32 %v3127_v5, %v472_v48  ;;  %v475_v7 = vmul.f32 %v3115_v1, %v439_v61  ;;  %v476_v8 = vmul.f32 %v3115_v1, %v440_v62 }
  0x28   : > { %389 = vst [vmem:[#allocation2 + $0xe0] sm:$0xff] %v3033_v0  ;;  %v509_v9 = vadd.f32 %v3127_v5, %v473_v51  ;;  %v510_v10 = vadd.f32 %v3127_v5, %v474_v52  ;;  %v3295_v12 = vperm.slane %v672_v53, 0  ;;  %v1115_v13 = vrot.slane %v707_v55, 1 }
  0x29   : > { %390 = vst [vmem:[#allocation2 + $0xe8] sm:$0x3] %v3033_v0  ;;  %v3298_v14 = vmin.f32 %v537_v57, 6.0  ;;  %v3300_v17 = vmin.f32 %v538_v58, 6.0  ;;  %v511_v18 = vadd.f32 %v3127_v5, %v475_v7  ;;  %v512_v19 = vadd.f32 %v3127_v5, %v476_v8 }
  0x2a   : > { %391 = vst [vmem:[#allocation2 + $0xf0] sm:$0xff] %v3033_v0  ;;  %v3307_v22 = vperm.slane %v672_v53, 1  ;;  %v1118_v28 = vrot.slane %v709_v3, 1  ;;  %v539_v29 = vmax.f32 %v507_v4, 0.0  ;;  %v477_v30 = vmul.f32 %v3115_v1, %v441_v20 }
  0x2b   : > { %392 = vst [vmem:[#allocation2 + $0xf8] sm:$0xff] %v3033_v0  ;;  %v478_v33 = vmul.f32 %v3115_v1, %v442_v21  ;;  %v541_v34 = vmax.f32 %v509_v9, 0.0  ;;  %v542_v37 = vmax.f32 %v510_v10, 0.0  ;;  %v543_v40 = vmax.f32 %v511_v18, 0.0 }
  0x2c   : > { %393 = vst [vmem:[#allocation2 + $0x100] sm:$0x3] %v3033_v0  ;;  %v544_v41 = vmax.f32 %v512_v19, 0.0  ;;  %v513_v42 = vadd.f32 %v3127_v5, %v477_v30  ;;  %v3319_v43 = vmul.f32 0.0, %v3276_v59  ;;  %v3321_v1 = vperm.slane %v672_v53, 2 }
  0x2d   : > { %394 = vst [vmem:[#allocation2 + $0x108] sm:$0xff] %v3033_v0  ;;  %v3325_v47 = vmin.f32 %v539_v29, 6.0  ;;  %v3338_v53 = vmul.f32 %v3276_v59, %v3264_v49 }
  0x2e   : > { %395 = vst [vmem:[#allocation2 + $0x110] sm:$0xff] %v3033_v0  ;;  %v545_v48 = vmax.f32 %v513_v42, 0.0  ;;  %v3343_v55 = vmin.f32 %v544_v41, 6.0 }
  0x2f   : > { %396 = vst [vmem:[#allocation2 + $0x118] sm:$0x3] %v3033_v0 }
  0x30   : > { %397 = vst [vmem:[#allocation2 + $0x120] sm:$0xff] %v3033_v0  ;;  %v3345_v57 = vmin.f32 %v545_v48, 6.0 }
  0x31   : > { %398 = vst [vmem:[#allocation2 + $0x128] sm:$0xff] %v3033_v0 }
  0x32   : > { %399 = vst [vmem:[#allocation2 + $0x130] sm:$0x3] %v3033_v0 }
  0x33   : > { %400 = vst [vmem:[#allocation2 + $0x138] sm:$0xff] %v3033_v0 }
  0x34   : > { %401 = vst [vmem:[#allocation2 + $0x140] sm:$0xff] %v3033_v0 }
  0x35   : > { %402 = vst [vmem:[#allocation2 + $0x148] sm:$0x3] %v3033_v0 }
  0x36   : > { %403 = vst [vmem:[#allocation2 + $0x150] sm:$0xff] %v3033_v0 }
  0x37   : > { %404 = vst [vmem:[#allocation2 + $0x158] sm:$0xff] %v3033_v0 }
  0x38   : > { %405 = vst [vmem:[#allocation2 + $0x160] sm:$0x3] %v3033_v0 }
  0x39   : > { %406 = vst [vmem:[#allocation2 + $0x168] sm:$0xff] %v3033_v0 }
  0x3a   : > { %407 = vst [vmem:[#allocation2 + $0x170] sm:$0xff] %v3033_v0 }
  0x3b   : > { %408 = vst [vmem:[#allocation2 + $0x178] sm:$0x3] %v3033_v0 }
  0x3c   : > { %409 = vst [vmem:[#allocation2 + $0x180] sm:$0xff] %v3033_v0 }
  0x3d   : > { %410 = vst [vmem:[#allocation2 + $0x188] sm:$0xff] %v3033_v0 }
  0x3e   : > { %411 = vst [vmem:[#allocation2 + $0x190] sm:$0x3] %v3033_v0 }
  0x3f   : > { %414 = vst [vmem:[#allocation2 + $0x1a8] sm:$0x3] %v3033_v0  ;;  %v540_v0 = vmax.f32 %v508_v6, 0.0 }
  0x40   : > { %584 = vst [vmem:[#allocation2 + $0x19] sm:$0xff] %v3170_v38  ;;  %v674_v38 = vmul.f32 0.0, %v3272_v54 }
  0x41   : > { %585 = vst [vmem:[#allocation2 + $0x21] sm:$0xff] %v3172_v39  ;;  %v514_v39 = vadd.f32 %v3127_v5, %v478_v33  ;;  %v3330_v5 = vmin.f32 %v541_v34, 6.0 }
  0x42   : > { %586 = vst [vmem:[#allocation2 + $0x31] sm:$0xff] %v3186_v50  ;;  %v1119_v50 = vsel %vm1114_vm0, %v1115_v13, %v1118_v28  ;;  %v3334_v52 = vadd.f32 %v1115_v13, %v674_v38 }
  0x43   : > { %587 = vst [vmem:[#allocation2 + $0x39] sm:$0xff] %v3193_v56  ;;  %v3327_v56 = vmin.f32 %v540_v0, 6.0  ;;  %v546_v51 = vmax.f32 %v514_v39, 0.0 }
  0x44   : > { %588 = vst [vmem:[#allocation2 + $0x49] sm:$0xff] %v3208_v11  ;;  %v3332_v11 = vmin.f32 %v542_v37, 6.0 }
  0x45   : > { %589 = vst [vmem:[#allocation2 + $0x51] sm:$0xff] %v3213_v15  ;;  %v3341_v15 = vmin.f32 %v543_v40, 6.0  ;;  %v3352_v61 = vmin.f32 %v546_v51, 6.0 }
  0x46   : > { %590 = vst [vmem:[#allocation2 + $0x61] sm:$0xff] %v3215_v16  ;;  %v3349_v16 = vadd.f32 %v1119_v50, %v674_v38 }
  0x47   : > { %591 = vst [vmem:[#allocation2 + $0x69] sm:$0xff] %v3221_v23  ;;  %v3347_v58 = vld [vmem:[#allocation2 + $0x18] sm:$0xff] }
  0x48   : > { %592 = vst [vmem:[#allocation2 + $0x79] sm:$0xff] %v3223_v24  ;;  %v3354_v62 = vld [vmem:[#allocation2 + $0x20] sm:$0xff]  ;;  %v3356_v49 = vld [vmem:[#allocation2 + $0x28] sm:$0x3]  ;;  %v805_v23 = vmul.f32 %v3278_v60, %v3347_v58  ;;  %v838_v3 = vmul.f32 %v3283_v63, %v3347_v58  ;;  %v887_v4 = vmul.f32 %v3285_v2, %v3347_v58 }
  0x49   : > { %v3364_v6 = vld [vmem:[#allocation2 + $0x30] sm:$0xff]  ;;  %593 = vst [vmem:[#allocation2 + $0x81] sm:$0xff] %v3225_v25  ;;  %v806_v24 = vmul.f32 %v3278_v60, %v3354_v62  ;;  %v839_v7 = vmul.f32 %v3283_v63, %v3354_v62  ;;  %v888_v8 = vmul.f32 %v3285_v2, %v3354_v62  ;;  %v889_v9 = vmul.f32 %v3285_v2, %v3356_v49 }
  0x4a   : > { %v3375_v10 = vld [vmem:[#allocation2 + $0x38] sm:$0xff]  ;;  %v3377_v13 = vld [vmem:[#allocation2 + $0x40] sm:$0x3]  ;;  %594 = vst [vmem:[#allocation2 + $0x91] sm:$0xff] %v3227_v26  ;;  %v936_v25 = vmul.f32 %v3295_v12, %v3364_v6  ;;  %v969_v18 = vmul.f32 %v3307_v22, %v3364_v6  ;;  %v1018_v19 = vmul.f32 %v3321_v1, %v3364_v6  ;;  %v1292_v20 = vrot.slane %v805_v23, 6 }
  0x4b   : > { %595 = vst [vmem:[#allocation2 + $0x99] sm:$0xff] %v3230_v27  ;;  %v937_v21 = vmul.f32 %v3295_v12, %v3375_v10  ;;  %v970_v28 = vmul.f32 %v3307_v22, %v3375_v10  ;;  %v971_v26 = vmul.f32 %v3307_v22, %v3377_v13  ;;  %v1019_v29 = vmul.f32 %v3321_v1, %v3375_v10 }
  0x4c   : > { %596 = vst [vmem:[#allocation2 + $0xa9] sm:$0xff] %v3236_v31  ;;  %v1293_v0 = vrot.slane %v806_v24, 6  ;;  %v1388_v30 = vadd.f32 %v1292_v20, %v3319_v43  ;;  %v1484_v33 = vrot.slane %v887_v4, 1  ;;  %v840_v27 = vmul.f32 %v3283_v63, %v3356_v49 }
  0x4d   : > { %597 = vst [vmem:[#allocation2 + $0xb1] sm:$0xff] %v3238_v32  ;;  %v1485_v34 = vrot.slane %v888_v8, 1  ;;  %v1487_v37 = vrot.slane %v889_v9, 1  ;;  %v1708_v38 = vrot.slane %v969_v18, 1  ;;  %v1709_v40 = vrot.slane %v970_v28, 1 }
  0x4e   : > { %598 = vst [vmem:[#allocation2 + $0xc1] sm:$0xff] %v3243_v35  ;;  %v1294_v41 = vsel %vm1291_vm1, %v1292_v20, %v1293_v0  ;;  %v1711_v42 = vrot.slane %v971_v26, 1  ;;  %v1901_v39 = vrot.slane %v1388_v30, 2  ;;  %v1020_v31 = vmul.f32 %v3321_v1, %v3377_v13 }
  0x4f   : > { %599 = vst [vmem:[#allocation2 + $0xc9] sm:$0xff] %v3245_v36  ;;  %v1389_v50 = vadd.f32 %v1294_v41, %v3319_v43  ;;  %v1486_v48 = vsel %vm1114_vm0, %v1484_v33, %v1485_v34  ;;  %v1488_v32 = vsel %vm1114_vm0, %v1485_v34, %v1487_v37  ;;  %v1710_v51 = vsel %vm1114_vm0, %v1708_v38, %v1709_v40 }
  0x50   : > { %600 = vst [vmem:[#allocation2 + $0xd9] sm:$0xff] %v3258_v45  ;;  %v1612_v35 = vadd.f32 %v1486_v48, %v838_v3  ;;  %v1712_v23 = vsel %vm1114_vm0, %v1709_v40, %v1711_v42  ;;  %v1820_v4 = vadd.f32 %v1710_v51, %v936_v25  ;;  %v3413_v24 = vmul.f32 %v3272_v54, %v3347_v58  ;;  %v3444_v40 = vld [vmem:[#allocation2 + $0x50] sm:$0xff] }
  0x51   : > { %601 = vst [vmem:[#allocation2 + $0xe1] sm:$0xff] %v3260_v46  ;;  %v1821_v36 = vadd.f32 %v1712_v23, %v937_v21  ;;  %v1902_v43 = vrot.slane %v1389_v50, 2  ;;  %v2462_v8 = vrot.slane %v1018_v19, 2  ;;  %v2463_v9 = vrot.slane %v1019_v29, 2 }
  0x52   : > { %602 = vst [vmem:[#allocation2 + $0xf1] sm:$0xff] %v3298_v14  ;;  %v1613_v18 = vadd.f32 %v1488_v32, %v839_v7  ;;  %v2078_v20 = vrot.slane %v1820_v4, 7  ;;  %v1390_v45 = vadd.f32 %v1293_v0, %v3338_v53  ;;  %v2465_v3 = vrot.slane %v1020_v31, 2  ;;  %v3432_v0 = vld [vmem:[#allocation2 + $0x48] sm:$0xff] }
  0x53   : > { %603 = vst [vmem:[#allocation2 + $0xf9] sm:$0xff] %v3300_v17  ;;  %v1903_v25 = vsel %vm1900_vm2, %v1901_v39, %v1902_v43  ;;  %v2079_v28 = vrot.slane %v1821_v36, 7  ;;  %v2464_v26 = vsel %vm1900_vm2, %v2462_v8, %v2463_v9  ;;  %v1614_v30 = vadd.f32 %v1487_v37, %v840_v27 }
  0x54   : > { %604 = vst [vmem:[#allocation2 + $0x109] sm:$0xff] %v3325_v47  ;;  %v2013_v46 = vadd.f32 %v1903_v25, %v3334_v52  ;;  %v2174_v19 = vadd.f32 %v2078_v20, %v1612_v35  ;;  %v1904_v21 = vrot.slane %v1390_v45, 2  ;;  %v710_v14 = vmul.f32 %v3255_v44, %v3347_v58  ;;  %v3479_v35 = vld [vmem:[%s4768_s4] ss:$0 sm:$0xff] }
  0x55   : > { %605 = vst [vmem:[#allocation2 + $0x111] sm:$0xff] %v3327_v56  ;;  %v2080_v53 = vsel %vm2077_vm3, %v2078_v20, %v2079_v28  ;;  %v2176_v17 = vadd.f32 %v2079_v28, %v1614_v30  ;;  %v2466_v7 = vsel %vm1900_vm2, %v2463_v9, %v2465_v3  ;;  %v3430_v29 = vmul.f32 %v3255_v44, %v3354_v62 }
  0x56   : > { %606 = vst [vmem:[#allocation2 + $0x121] sm:$0xff] %v3330_v5  ;;  %v2175_v47 = vadd.f32 %v2080_v53, %v1613_v18  ;;  %v2270_v52 = vrot.slane %v2174_v19, 1  ;;  %v1905_v33 = vsel %vm1900_vm2, %v1902_v43, %v1904_v21  ;;  %v759_v56 = vmul.f32 %v3276_v59, %v3347_v58  ;;  %v3446_v5 = vld [vmem:[#allocation2 + $0x58] sm:$0x3] }
  0x57   : > { %607 = vst [vmem:[#allocation2 + $0x129] sm:$0xff] %v3332_v11  ;;  %v2014_v27 = vadd.f32 %v1905_v33, %v3349_v16  ;;  %v2273_v34 = vrot.slane %v2176_v17, 1  ;;  %v760_v37 = vmul.f32 %v3276_v59, %v3354_v62  ;;  %v807_v38 = vmul.f32 %v3278_v60, %v3364_v6 }
  0x58   : > { %608 = vst [vmem:[#allocation2 + $0x139] sm:$0xff] %v3341_v15  ;;  %v2271_v41 = vrot.slane %v2175_v47, 1  ;;  %v3451_v58 = vmul.f32 %v3278_v60, %v3375_v10  ;;  %v841_v11 = vmul.f32 %v3283_v63, %v3364_v6  ;;  %v842_v16 = vmul.f32 %v3283_v63, %v3375_v10 }
  0x59   : > { %609 = vst [vmem:[#allocation2 + $0x141] sm:$0xff] %v3343_v55  ;;  %v890_v42 = vmul.f32 %v3285_v2, %v3364_v6  ;;  %v891_v39 = vmul.f32 %v3285_v2, %v3375_v10  ;;  %v3464_v15 = vmul.f32 %v3285_v2, %v3377_v13  ;;  %v938_v31 = vmul.f32 %v3295_v12, %v3432_v0 }
  0x5a   : > { %610 = vst [vmem:[#allocation2 + $0x151] sm:$0xff] %v3345_v57  ;;  %v2272_v50 = vsel %vm1114_vm0, %v2270_v52, %v2271_v41  ;;  %v2274_v48 = vsel %vm1114_vm0, %v2271_v41, %v2273_v34  ;;  %v939_v55 = vmul.f32 %v3295_v12, %v3444_v40  ;;  %v972_v32 = vmul.f32 %v3307_v22, %v3432_v0 }
  0x5b   : > { %611 = vst [vmem:[#allocation2 + $0x159] sm:$0xff] %v3352_v61  ;;  %v2382_v51 = vadd.f32 %v2272_v50, %v2013_v46  ;;  %v2383_v57 = vadd.f32 %v2274_v48, %v2014_v27  ;;  %v973_v23 = vmul.f32 %v3307_v22, %v3444_v40  ;;  %v974_v4 = vmul.f32 %v3307_v22, %v3446_v5 }
  0x5c   : > { %v1021_v36 = vmul.f32 %v3321_v1, %v3432_v0  ;;  %v1120_v43 = vrot.slane %v710_v14, 1  ;;  %v1121_v8 = vrot.slane %v3430_v29, 1  ;;  %v1295_v61 = vrot.slane %v807_v38, 6 }
  0x5d   : > { %v2574_v9 = vadd.f32 %v2464_v26, %v2382_v51  ;;  %v2575_v18 = vadd.f32 %v2466_v7, %v2383_v57  ;;  %v1296_v20 = vrot.slane %v3451_v58, 6  ;;  %v1489_v45 = vrot.slane %v890_v42, 1 }
  0x5e   : > { %v1022_v3 = vmul.f32 %v3321_v1, %v3444_v40  ;;  %v1122_v25 = vsel %vm1114_vm0, %v1120_v43, %v1121_v8  ;;  %v1490_v28 = vrot.slane %v891_v39, 1  ;;  %v1492_v26 = vrot.slane %v3464_v15, 1 }
  0x5f   : > { %v2610_v30 = vadd.f32 %v3479_v35, %v2574_v9  ;;  %v2611_v46 = vadd.f32 %v3479_v35, %v2575_v18  ;;  %v1297_v19 = vsel %vm1291_vm1, %v1295_v61, %v1296_v20  ;;  %v1391_v21 = vadd.f32 %v1295_v61, %v759_v56 }
  0x60   : > { %v1392_v14 = vadd.f32 %v1297_v19, %v760_v37  ;;  %v1491_v53 = vsel %vm1114_vm0, %v1489_v45, %v1490_v28  ;;  %v1493_v17 = vsel %vm1114_vm0, %v1490_v28, %v1492_v26  ;;  %v1713_v7 = vrot.slane %v972_v32, 1 }
  0x61   : > { %2642 = vst [vmem:[%s3494_s19] sm:$0xff] %v2610_v30  ;;  %v2712_v29 = vmul.f32 %v2610_v30, %v2610_v30  ;;  %v3506_v47 = vadd.f32 %v2611_v46, %v2610_v30  ;;  %v2713_v52 = vmul.f32 %v2611_v46, %v2611_v46  ;;  %v1229_v33 = vadd.f32 %v1122_v25, %v3413_v24 }
  0x62   : > { %2643 = vst [vmem:[%s3494_s19 + $0x8] sm:$0xff] %v2611_v46  ;;  %v1615_v27 = vadd.f32 %v1491_v53, %v841_v11  ;;  %v1616_v34 = vadd.f32 %v1493_v17, %v842_v16  ;;  %v1714_v38 = vrot.slane %v973_v23, 1  ;;  %v1716_v41 = vrot.slane %v974_v4, 1 }
  0x63   : > { %v3510_v58 = vadd.f32 %v2713_v52, %v2712_v29  ;;  %v1906_v56 = vrot.slane %v1391_v21, 2  ;;  %v1907_v37 = vrot.slane %v1392_v14, 2  ;;  %v2467_v42 = vrot.slane %v1021_v36, 2  ;;  %v3542_v29 = vld [vmem:[#allocation2 + $0x60] sm:$0xff]  ;;  %v3544_v52 = vld [vmem:[#allocation2 + $0x68] sm:$0xff] }
  0x64   : > { %v1715_v39 = vsel %vm1114_vm0, %v1713_v7, %v1714_v38  ;;  %v1717_v15 = vsel %vm1114_vm0, %v1714_v38, %v1716_v41  ;;  %v2468_v50 = vrot.slane %v1022_v3, 2  ;;  %v712_v48 = vmul.f32 %v3255_v44, %v3356_v49  ;;  %v3556_v41 = vld [vmem:[#allocation2 + $0x70] sm:$0x3] }
  0x65   : > { %v1822_v32 = vadd.f32 %v1715_v39, %v938_v31  ;;  %v1823_v24 = vadd.f32 %v1717_v15, %v939_v55  ;;  %v1908_v11 = vsel %vm1900_vm2, %v1906_v56, %v1907_v37  ;;  %v761_v16 = vmul.f32 %v3276_v59, %v3356_v49 }
  0x66   : > { %v2015_v51 = vadd.f32 %v1908_v11, %v1229_v33  ;;  %v677_v57 = vmul.f32 %v3272_v54, %v3354_v62  ;;  %v843_v23 = vmul.f32 %v3283_v63, %v3377_v13  ;;  %v1023_v4 = vmul.f32 %v3321_v1, %v3446_v5 }
  0x67   : > { %v2081_v36 = vrot.slane %v1822_v32, 7  ;;  %v2082_v43 = vrot.slane %v1823_v24, 7  ;;  %v1123_v61 = vrot.slane %v712_v48, 1  ;;  %v1393_v31 = vadd.f32 %v1296_v20, %v761_v16 }
  0x68   : > { %v2469_v55 = vsel %vm1900_vm2, %v2467_v42, %v2468_v50  ;;  %v1617_v9 = vadd.f32 %v1492_v26, %v843_v23  ;;  %v2470_v18 = vrot.slane %v1023_v4, 2  ;;  %v3528_v49 = vmul.f32 %v3272_v54, %v3364_v6 }
  0x69   : > { %v2083_v62 = vsel %vm2077_vm3, %v2081_v36, %v2082_v43  ;;  %v2177_v45 = vadd.f32 %v2081_v36, %v1615_v27  ;;  %v1124_v3 = vsel %vm1114_vm0, %v1121_v8, %v1123_v61  ;;  %v1909_v25 = vrot.slane %v1393_v31, 2 }
  0x6a   : > { %v2178_v28 = vadd.f32 %v2083_v62, %v1616_v34  ;;  %v1230_v30 = vadd.f32 %v1124_v3, %v677_v57  ;;  %v2179_v46 = vadd.f32 %v2082_v43, %v1617_v9  ;;  %v713_v20 = vmul.f32 %v3255_v44, %v3364_v6 }
  0x6b   : > { %v2275_v19 = vrot.slane %v2177_v45, 1  ;;  %v1910_v26 = vsel %vm1900_vm2, %v1907_v37, %v1909_v25  ;;  %v2471_v21 = vsel %vm1900_vm2, %v2468_v50, %v2470_v18  ;;  %v3538_v14 = vmul.f32 %v3255_v44, %v3375_v10 }
  0x6c   : > { %v2276_v53 = vrot.slane %v2178_v28, 1  ;;  %v2016_v17 = vadd.f32 %v1910_v26, %v1230_v30  ;;  %v2278_v7 = vrot.slane %v2179_v46, 1  ;;  %v762_v8 = vmul.f32 %v3276_v59, %v3364_v6 }
  0x6d   : > { %v763_v33 = vmul.f32 %v3276_v59, %v3375_v10  ;;  %v809_v27 = vmul.f32 %v3278_v60, %v3432_v0  ;;  %v3552_v34 = vmul.f32 %v3278_v60, %v3444_v40  ;;  %v844_v38 = vmul.f32 %v3283_v63, %v3432_v0 }
  0x6e   : > { %v2277_v6 = vsel %vm1114_vm0, %v2275_v19, %v2276_v53  ;;  %v2279_v56 = vsel %vm1114_vm0, %v2276_v53, %v2278_v7  ;;  %v845_v37 = vmul.f32 %v3283_v63, %v3444_v40  ;;  %v893_v42 = vmul.f32 %v3285_v2, %v3432_v0 }
  0x6f   : > { %v2384_v39 = vadd.f32 %v2277_v6, %v2015_v51  ;;  %v2385_v15 = vadd.f32 %v2279_v56, %v2016_v17  ;;  %v894_v50 = vmul.f32 %v3285_v2, %v3444_v40  ;;  %v895_v48 = vmul.f32 %v3285_v2, %v3446_v5 }
  0x70   : > { %v940_v32 = vmul.f32 %v3295_v12, %v3542_v29  ;;  %v941_v24 = vmul.f32 %v3295_v12, %v3544_v52  ;;  %v975_v11 = vmul.f32 %v3307_v22, %v3542_v29  ;;  %v976_v16 = vmul.f32 %v3307_v22, %v3544_v52 }
  0x71   : > { %v2576_v51 = vadd.f32 %v2469_v55, %v2384_v39  ;;  %v2577_v57 = vadd.f32 %v2471_v21, %v2385_v15  ;;  %v977_v23 = vmul.f32 %v3307_v22, %v3556_v41  ;;  %v1024_v4 = vmul.f32 %v3321_v1, %v3542_v29 }
  0x72   : > { %v1125_v36 = vrot.slane %v713_v20, 1  ;;  %v1126_v43 = vrot.slane %v3538_v14, 1  ;;  %v1298_v61 = vrot.slane %v809_v27, 6  ;;  %v1299_v31 = vrot.slane %v3552_v34, 6 }
  0x73   : > { %v2612_v9 = vadd.f32 %v3479_v35, %v2576_v51  ;;  %v2613_v18 = vadd.f32 %v3479_v35, %v2577_v57  ;;  %v1494_v55 = vrot.slane %v893_v42, 1  ;;  %v1495_v62 = vrot.slane %v894_v50, 1 }
  0x74   : > { %v1127_v45 = vsel %vm1114_vm0, %v1125_v36, %v1126_v43  ;;  %v1300_v3 = vsel %vm1291_vm1, %v1298_v61, %v1299_v31  ;;  %v1394_v25 = vadd.f32 %v1298_v61, %v762_v8  ;;  %v1497_v28 = vrot.slane %v895_v48, 1 }
  0x75   : > { %2644 = vst [vmem:[%s3494_s19 + $0x10] sm:$0xff] %v2612_v9  ;;  %v2675_v30 = vadd.f32 %v3506_v47, %v2612_v9  ;;  %v2714_v46 = vmul.f32 %v2612_v9, %v2612_v9  ;;  %v2715_v20 = vmul.f32 %v2613_v18, %v2613_v18  ;;  %v1025_v19 = vmul.f32 %v3321_v1, %v3544_v52 }
  0x76   : > { %2645 = vst [vmem:[%s3494_s19 + $0x18] sm:$0xff] %v2613_v18  ;;  %v1395_v26 = vadd.f32 %v1300_v3, %v763_v33  ;;  %v1496_v21 = vsel %vm1114_vm0, %v1494_v55, %v1495_v62  ;;  %v1498_v14 = vsel %vm1114_vm0, %v1495_v62, %v1497_v28  ;;  %v1718_v53 = vrot.slane %v975_v11, 1 }
  0x77   : > { %v2745_v17 = vadd.f32 %v3510_v58, %v2714_v46  ;;  %v3594_v7 = vadd.f32 %v2675_v30, %v2613_v18  ;;  %v1231_v8 = vadd.f32 %v1127_v45, %v3528_v49  ;;  %v1618_v27 = vadd.f32 %v1496_v21, %v844_v38 }
  0x78   : > { %v1719_v47 = vrot.slane %v976_v16, 1  ;;  %v1721_v34 = vrot.slane %v977_v23, 1  ;;  %v1911_v6 = vrot.slane %v1394_v25, 2  ;;  %v1912_v56 = vrot.slane %v1395_v26, 2 }
  0x79   : > { %v3597_v42 = vadd.f32 %v2745_v17, %v2715_v20  ;;  %v1619_v39 = vadd.f32 %v1498_v14, %v845_v37  ;;  %v2472_v33 = vrot.slane %v1024_v4, 2  ;;  %v2473_v15 = vrot.slane %v1025_v19, 2  ;;  %v3631_v17 = vld [vmem:[#allocation2 + $0x78] sm:$0xff] }
  0x7a   : > { %v1720_v50 = vsel %vm1114_vm0, %v1718_v53, %v1719_v47  ;;  %v1722_v48 = vsel %vm1114_vm0, %v1719_v47, %v1721_v34  ;;  %v1913_v58 = vsel %vm1900_vm2, %v1911_v6, %v1912_v56  ;;  %v715_v11 = vmul.f32 %v3255_v44, %v3377_v13 }
  0x7b   : > { %v1824_v49 = vadd.f32 %v1720_v50, %v940_v32  ;;  %v1825_v38 = vadd.f32 %v1722_v48, %v941_v24  ;;  %v2017_v16 = vadd.f32 %v1913_v58, %v1231_v8  ;;  %v679_v51 = vmul.f32 %v3272_v54, %v3375_v10  ;;  %v3633_v8 = vld [vmem:[#allocation2 + $0x80] sm:$0xff] }
  0x7c   : > { %v764_v37 = vmul.f32 %v3276_v59, %v3377_v13  ;;  %v846_v57 = vmul.f32 %v3283_v63, %v3446_v5  ;;  %v1026_v23 = vmul.f32 %v3321_v1, %v3556_v41  ;;  %v1128_v4 = vrot.slane %v715_v11, 1 }
  0x7d   : > { %v2084_v36 = vrot.slane %v1824_v49, 7  ;;  %v2085_v61 = vrot.slane %v1825_v38, 7  ;;  %v2474_v9 = vsel %vm1900_vm2, %v2472_v33, %v2473_v15  ;;  %v680_v32 = vmul.f32 %v3272_v54, %v3432_v0 }
  0x7e   : > { %v1129_v24 = vsel %vm1114_vm0, %v1126_v43, %v1128_v4  ;;  %v1396_v10 = vadd.f32 %v1299_v31, %v764_v37  ;;  %v1620_v18 = vadd.f32 %v1497_v28, %v846_v57  ;;  %v2475_v55 = vrot.slane %v1026_v23, 2 }
  0x7f   : > { %v2086_v13 = vsel %vm2077_vm3, %v2084_v36, %v2085_v61  ;;  %v2180_v62 = vadd.f32 %v2084_v36, %v1618_v27  ;;  %v1232_v45 = vadd.f32 %v1129_v24, %v679_v51  ;;  %v716_v3 = vmul.f32 %v3255_v44, %v3432_v0  ;;  %v3635_v27 = vld [vmem:[#allocation2 + $0x88] sm:$0x3] }
  0x80   : > { %v2181_v25 = vadd.f32 %v2086_v13, %v1619_v39  ;;  %v1914_v30 = vrot.slane %v1396_v10, 2  ;;  %v2182_v46 = vadd.f32 %v2085_v61, %v1620_v18  ;;  %v3621_v20 = vmul.f32 %v3255_v44, %v3444_v40 }
  0x81   : > { %v2280_v19 = vrot.slane %v2180_v62, 1  ;;  %v2476_v43 = vsel %vm1900_vm2, %v2473_v15, %v2475_v55  ;;  %v765_v31 = vmul.f32 %v3276_v59, %v3432_v0  ;;  %v766_v28 = vmul.f32 %v3276_v59, %v3444_v40 }
  0x82   : > { %v2281_v26 = vrot.slane %v2181_v25, 1  ;;  %v1915_v21 = vsel %vm1900_vm2, %v1912_v56, %v1914_v30  ;;  %v2283_v14 = vrot.slane %v2182_v46, 1  ;;  %v811_v53 = vmul.f32 %v3278_v60, %v3542_v29 }
  0x83   : > { %v2018_v47 = vadd.f32 %v1915_v21, %v1232_v45  ;;  %v3639_v0 = vmul.f32 %v3278_v60, %v3544_v52  ;;  %v847_v34 = vmul.f32 %v3283_v63, %v3542_v29  ;;  %v848_v6 = vmul.f32 %v3283_v63, %v3544_v52 }
  0x84   : > { %v2282_v56 = vsel %vm1114_vm0, %v2280_v19, %v2281_v26  ;;  %v2284_v39 = vsel %vm1114_vm0, %v2281_v26, %v2283_v14  ;;  %v896_v33 = vmul.f32 %v3285_v2, %v3542_v29  ;;  %v897_v15 = vmul.f32 %v3285_v2, %v3544_v52 }
  0x85   : > { %v2386_v50 = vadd.f32 %v2282_v56, %v2017_v16  ;;  %v2387_v48 = vadd.f32 %v2284_v39, %v2018_v47  ;;  %v3653_v58 = vmul.f32 %v3285_v2, %v3556_v41  ;;  %v942_v11 = vmul.f32 %v3295_v12, %v3631_v17 }
  0x86   : > { %v943_v49 = vmul.f32 %v3295_v12, %v3633_v8  ;;  %v978_v38 = vmul.f32 %v3307_v22, %v3631_v17  ;;  %v979_v51 = vmul.f32 %v3307_v22, %v3633_v8  ;;  %v980_v16 = vmul.f32 %v3307_v22, %v3635_v27 }
  0x87   : > { %v2578_v37 = vadd.f32 %v2474_v9, %v2386_v50  ;;  %v2579_v57 = vadd.f32 %v2476_v43, %v2387_v48  ;;  %v1027_v23 = vmul.f32 %v3321_v1, %v3631_v17  ;;  %v1130_v4 = vrot.slane %v716_v3, 1 }
  0x88   : > { %v1131_v36 = vrot.slane %v3621_v20, 1  ;;  %v1301_v61 = vrot.slane %v811_v53, 6  ;;  %v1302_v24 = vrot.slane %v3639_v0, 6  ;;  %v1499_v10 = vrot.slane %v896_v33, 1 }
  0x89   : > { %v2614_v18 = vadd.f32 %v3479_v35, %v2578_v37  ;;  %v2615_v55 = vadd.f32 %v3479_v35, %v2579_v57  ;;  %v1500_v13 = vrot.slane %v897_v15, 1  ;;  %v1502_v9 = vrot.slane %v3653_v58, 1 }
  0x8a   : > { %v1132_v62 = vsel %vm1114_vm0, %v1130_v4, %v1131_v36  ;;  %v1303_v45 = vsel %vm1291_vm1, %v1301_v61, %v1302_v24  ;;  %v1397_v25 = vadd.f32 %v1301_v61, %v765_v31  ;;  %v1723_v3 = vrot.slane %v978_v38, 1 }
  0x8b   : > { %2646 = vst [vmem:[%s3494_s19 + $0x20] sm:$0xff] %v2614_v18  ;;  %v2677_v30 = vadd.f32 %v3594_v7, %v2614_v18  ;;  %v2716_v46 = vmul.f32 %v2614_v18, %v2614_v18  ;;  %v2717_v20 = vmul.f32 %v2615_v55, %v2615_v55  ;;  %v1028_v19 = vmul.f32 %v3321_v1, %v3633_v8 }
  0x8c   : > { %2647 = vst [vmem:[%s3494_s19 + $0x28] sm:$0xff] %v2615_v55  ;;  %v1233_v43 = vadd.f32 %v1132_v62, %v680_v32  ;;  %v1398_v26 = vadd.f32 %v1303_v45, %v766_v28  ;;  %v1501_v21 = vsel %vm1114_vm0, %v1499_v10, %v1500_v13  ;;  %v1724_v14 = vrot.slane %v979_v51, 1 }
  0x8d   : > { %v2747_v53 = vadd.f32 %v3597_v42, %v2716_v46  ;;  %v3681_v47 = vadd.f32 %v2677_v30, %v2615_v55  ;;  %v1503_v31 = vsel %vm1114_vm0, %v1500_v13, %v1502_v9  ;;  %v1621_v0 = vadd.f32 %v1501_v21, %v847_v34 }
  0x8e   : > { %v1725_v7 = vsel %vm1114_vm0, %v1723_v3, %v1724_v14  ;;  %v1726_v56 = vrot.slane %v980_v16, 1  ;;  %v1916_v39 = vrot.slane %v1397_v25, 2  ;;  %v1917_v33 = vrot.slane %v1398_v26, 2 }
  0x8f   : > { %v3685_v15 = vadd.f32 %v2747_v53, %v2717_v20  ;;  %v1826_v50 = vadd.f32 %v1725_v7, %v942_v11  ;;  %v2477_v32 = vrot.slane %v1027_v23, 2  ;;  %v2478_v28 = vrot.slane %v1028_v19, 2  ;;  %v3722_v53 = vld [vmem:[#allocation2 + $0x90] sm:$0xff] }
  0x90   : > { %v1622_v48 = vadd.f32 %v1503_v31, %v848_v6  ;;  %v1727_v58 = vsel %vm1114_vm0, %v1724_v14, %v1726_v56  ;;  %v1918_v42 = vsel %vm1900_vm2, %v1916_v39, %v1917_v33  ;;  %v718_v38 = vmul.f32 %v3255_v44, %v3446_v5  ;;  %v3724_v31 = vld [vmem:[#allocation2 + $0x98] sm:$0xff] }
  0x91   : > { %v1827_v51 = vadd.f32 %v1727_v58, %v943_v49  ;;  %v2019_v34 = vadd.f32 %v1918_v42, %v1233_v43  ;;  %v2087_v37 = vrot.slane %v1826_v50, 7  ;;  %v681_v16 = vmul.f32 %v3272_v54, %v3444_v40 }
  0x92   : > { %v767_v57 = vmul.f32 %v3276_v59, %v3446_v5  ;;  %v849_v11 = vmul.f32 %v3283_v63, %v3556_v41  ;;  %v1029_v6 = vmul.f32 %v3321_v1, %v3635_v27  ;;  %v1133_v23 = vrot.slane %v718_v38, 1 }
  0x93   : > { %v2088_v4 = vrot.slane %v1827_v51, 7  ;;  %v2183_v61 = vadd.f32 %v2087_v37, %v1621_v0  ;;  %v2479_v10 = vsel %vm1900_vm2, %v2477_v32, %v2478_v28  ;;  %v682_v49 = vmul.f32 %v3272_v54, %v3542_v29  ;;  %v3726_v0 = vld [vmem:[#allocation2 + $0xa0] sm:$0x3] }
  0x94   : > { %v1134_v18 = vsel %vm1114_vm0, %v1131_v36, %v1133_v23  ;;  %v1399_v40 = vadd.f32 %v1302_v24, %v767_v57  ;;  %v1623_v55 = vadd.f32 %v1502_v9, %v849_v11  ;;  %v2480_v13 = vrot.slane %v1029_v6, 2 }
  0x95   : > { %v2089_v5 = vsel %vm2077_vm3, %v2087_v37, %v2088_v4  ;;  %v2285_v62 = vrot.slane %v2183_v61, 1  ;;  %v1234_v45 = vadd.f32 %v1134_v18, %v681_v16  ;;  %v719_v25 = vmul.f32 %v3255_v44, %v3542_v29 }
  0x96   : > { %v2184_v3 = vadd.f32 %v2089_v5, %v1622_v48  ;;  %v1919_v30 = vrot.slane %v1399_v40, 2  ;;  %v2185_v46 = vadd.f32 %v2088_v4, %v1623_v55  ;;  %v3708_v20 = vmul.f32 %v3255_v44, %v3544_v52 }
  0x97   : > { %v2481_v19 = vsel %vm1900_vm2, %v2478_v28, %v2480_v13  ;;  %v768_v36 = vmul.f32 %v3276_v59, %v3542_v29  ;;  %v769_v24 = vmul.f32 %v3276_v59, %v3544_v52  ;;  %v813_v9 = vmul.f32 %v3278_v60, %v3631_v17 }
  0x98   : > { %v2286_v43 = vrot.slane %v2184_v3, 1  ;;  %v1920_v26 = vsel %vm1900_vm2, %v1917_v33, %v1919_v30  ;;  %v2288_v21 = vrot.slane %v2185_v46, 1  ;;  %v3720_v14 = vmul.f32 %v3278_v60, %v3633_v8 }
  0x99   : > { %v2020_v29 = vadd.f32 %v1920_v26, %v1234_v45  ;;  %v850_v7 = vmul.f32 %v3283_v63, %v3631_v17  ;;  %v851_v56 = vmul.f32 %v3283_v63, %v3633_v8  ;;  %v899_v39 = vmul.f32 %v3285_v2, %v3631_v17 }
  0x9a   : > { %v2287_v33 = vsel %vm1114_vm0, %v2285_v62, %v2286_v43  ;;  %v2289_v50 = vsel %vm1114_vm0, %v2286_v43, %v2288_v21  ;;  %v900_v32 = vmul.f32 %v3285_v2, %v3633_v8  ;;  %v3740_v28 = vmul.f32 %v3285_v2, %v3635_v27 }
  0x9b   : > { %v2388_v48 = vadd.f32 %v2287_v33, %v2019_v34  ;;  %v2389_v58 = vadd.f32 %v2289_v50, %v2020_v29  ;;  %v944_v42 = vmul.f32 %v3295_v12, %v3722_v53  ;;  %v945_v38 = vmul.f32 %v3295_v12, %v3724_v31 }
  0x9c   : > { %v981_v51 = vmul.f32 %v3307_v22, %v3722_v53  ;;  %v982_v37 = vmul.f32 %v3307_v22, %v3724_v31  ;;  %v983_v16 = vmul.f32 %v3307_v22, %v3726_v0  ;;  %v1030_v57 = vmul.f32 %v3321_v1, %v3722_v53 }
  0x9d   : > { %v2580_v34 = vadd.f32 %v2479_v10, %v2388_v48  ;;  %v2581_v11 = vadd.f32 %v2481_v19, %v2389_v58  ;;  %v1135_v6 = vrot.slane %v719_v25, 1  ;;  %v1136_v23 = vrot.slane %v3708_v20, 1 }
  0x9e   : > { %v1304_v4 = vrot.slane %v813_v9, 6  ;;  %v1305_v61 = vrot.slane %v3720_v14, 6  ;;  %v1504_v18 = vrot.slane %v899_v39, 1  ;;  %v1505_v40 = vrot.slane %v900_v32, 1 }
  0x9f   : > { %v2616_v55 = vadd.f32 %v3479_v35, %v2580_v34  ;;  %v2617_v13 = vadd.f32 %v3479_v35, %v2581_v11  ;;  %v1137_v5 = vsel %vm1114_vm0, %v1135_v6, %v1136_v23  ;;  %v1507_v62 = vrot.slane %v3740_v28, 1 }
  0xa0   : > { %v1031_v10 = vmul.f32 %v3321_v1, %v3724_v31  ;;  %v1306_v45 = vsel %vm1291_vm1, %v1304_v4, %v1305_v61  ;;  %v1400_v25 = vadd.f32 %v1304_v4, %v768_v36  ;;  %v1506_v3 = vsel %vm1114_vm0, %v1504_v18, %v1505_v40 }
  0xa1   : > { %2648 = vst [vmem:[%s3494_s19 + $0x30] sm:$0xff] %v2616_v55  ;;  %v2679_v30 = vadd.f32 %v3681_v47, %v2616_v55  ;;  %v2718_v46 = vmul.f32 %v2616_v55, %v2616_v55  ;;  %v1235_v20 = vadd.f32 %v1137_v5, %v682_v49  ;;  %v1401_v19 = vadd.f32 %v1306_v45, %v769_v24 }
  0xa2   : > { %2649 = vst [vmem:[%s3494_s19 + $0x38] sm:$0xff] %v2617_v13  ;;  %v2719_v9 = vmul.f32 %v2617_v13, %v2617_v13  ;;  %v1508_v43 = vsel %vm1114_vm0, %v1505_v40, %v1507_v62  ;;  %v1728_v26 = vrot.slane %v981_v51, 1  ;;  %v1729_v21 = vrot.slane %v982_v37, 1 }
  0xa3   : > { %v2749_v14 = vadd.f32 %v3685_v15, %v2718_v46  ;;  %v3769_v29 = vadd.f32 %v2679_v30, %v2617_v13  ;;  %v1624_v39 = vadd.f32 %v1506_v3, %v850_v7  ;;  %v1731_v36 = vrot.slane %v983_v16, 1 }
  0xa4   : > { %v1730_v33 = vsel %vm1114_vm0, %v1728_v26, %v1729_v21  ;;  %v1921_v50 = vrot.slane %v1400_v25, 2  ;;  %v1922_v32 = vrot.slane %v1401_v19, 2  ;;  %v2482_v47 = vrot.slane %v1030_v57, 2 }
  0xa5   : > { %v3772_v28 = vadd.f32 %v2749_v14, %v2719_v9  ;;  %v1732_v49 = vsel %vm1114_vm0, %v1729_v21, %v1731_v36  ;;  %v1828_v24 = vadd.f32 %v1730_v33, %v944_v42  ;;  %v2483_v48 = vrot.slane %v1031_v10, 2  ;;  %v3805_v21 = vld [vmem:[#allocation2 + $0xa8] sm:$0xff]  ;;  %v3807_v14 = vld [vmem:[#allocation2 + $0xb0] sm:$0xff] }
  0xa6   : > { %v1829_v58 = vadd.f32 %v1732_v49, %v945_v38  ;;  %v1923_v51 = vsel %vm1900_vm2, %v1921_v50, %v1922_v32  ;;  %v721_v15 = vmul.f32 %v3255_v44, %v3556_v41  ;;  %v1625_v37 = vadd.f32 %v1508_v43, %v851_v56 }
  0xa7   : > { %v2090_v7 = vrot.slane %v1828_v24, 7  ;;  %v683_v16 = vmul.f32 %v3272_v54, %v3544_v52  ;;  %v770_v57 = vmul.f32 %v3276_v59, %v3556_v41  ;;  %v852_v11 = vmul.f32 %v3283_v63, %v3635_v27 }
  0xa8   : > { %v2091_v34 = vrot.slane %v1829_v58, 7  ;;  %v1032_v42 = vmul.f32 %v3321_v1, %v3726_v0  ;;  %v1138_v38 = vrot.slane %v721_v15, 1  ;;  %v2021_v6 = vadd.f32 %v1923_v51, %v1235_v20 }
  0xa9   : > { %v2186_v4 = vadd.f32 %v2090_v7, %v1624_v39  ;;  %v2484_v18 = vsel %vm1900_vm2, %v2482_v47, %v2483_v48  ;;  %v1402_v56 = vadd.f32 %v1305_v61, %v770_v57  ;;  %v1626_v55 = vadd.f32 %v1507_v62, %v852_v11  ;;  %v3809_v39 = vld [vmem:[#allocation2 + $0xb8] sm:$0x3] }
  0xaa   : > { %v2092_v40 = vsel %vm2077_vm3, %v2090_v7, %v2091_v34  ;;  %v1139_v52 = vsel %vm1114_vm0, %v1136_v23, %v1138_v38  ;;  %v2485_v13 = vrot.slane %v1032_v42, 2  ;;  %v684_v30 = vmul.f32 %v3272_v54, %v3631_v17 }
  0xab   : > { %v2187_v41 = vadd.f32 %v2092_v40, %v1625_v37  ;;  %v2290_v5 = vrot.slane %v2186_v4, 1  ;;  %v1236_v10 = vadd.f32 %v1139_v52, %v683_v16  ;;  %v1924_v45 = vrot.slane %v1402_v56, 2 }
  0xac   : > { %v2188_v25 = vadd.f32 %v2091_v34, %v1626_v55  ;;  %v2486_v3 = vsel %vm1900_vm2, %v2483_v48, %v2485_v13  ;;  %v722_v46 = vmul.f32 %v3255_v44, %v3631_v17  ;;  %v3797_v23 = vmul.f32 %v3255_v44, %v3633_v8 }
  0xad   : > { %v2291_v61 = vrot.slane %v2187_v41, 1  ;;  %v1925_v20 = vsel %vm1900_vm2, %v1922_v32, %v1924_v45  ;;  %v771_v62 = vmul.f32 %v3276_v59, %v3631_v17  ;;  %v772_v43 = vmul.f32 %v3276_v59, %v3633_v8 }
  0xae   : > { %v2022_v19 = vadd.f32 %v1925_v20, %v1236_v10  ;;  %v2293_v9 = vrot.slane %v2188_v25, 1  ;;  %v815_v26 = vmul.f32 %v3278_v60, %v3722_v53  ;;  %v3814_v33 = vmul.f32 %v3278_v60, %v3724_v31 }
  0xaf   : > { %v2292_v36 = vsel %vm1114_vm0, %v2290_v5, %v2291_v61  ;;  %v853_v17 = vmul.f32 %v3283_v63, %v3722_v53  ;;  %v854_v50 = vmul.f32 %v3283_v63, %v3724_v31  ;;  %v902_v49 = vmul.f32 %v3285_v2, %v3722_v53 }
  0xb0   : > { %v2390_v32 = vadd.f32 %v2292_v36, %v2021_v6  ;;  %v2294_v47 = vsel %vm1114_vm0, %v2291_v61, %v2293_v9  ;;  %v903_v24 = vmul.f32 %v3285_v2, %v3724_v31  ;;  %v904_v58 = vmul.f32 %v3285_v2, %v3726_v0 }
  0xb1   : > { %v2391_v48 = vadd.f32 %v2294_v47, %v2022_v19  ;;  %v946_v51 = vmul.f32 %v3295_v12, %v3805_v21  ;;  %v947_v15 = vmul.f32 %v3295_v12, %v3807_v14  ;;  %v984_v7 = vmul.f32 %v3307_v22, %v3805_v21 }
  0xb2   : > { %v2582_v37 = vadd.f32 %v2484_v18, %v2390_v32  ;;  %v985_v16 = vmul.f32 %v3307_v22, %v3807_v14  ;;  %v986_v57 = vmul.f32 %v3307_v22, %v3809_v39  ;;  %v1140_v11 = vrot.slane %v722_v46, 1 }
  0xb3   : > { %v2583_v34 = vadd.f32 %v2486_v3, %v2391_v48  ;;  %v1141_v42 = vrot.slane %v3797_v23, 1  ;;  %v1307_v38 = vrot.slane %v815_v26, 6  ;;  %v1308_v4 = vrot.slane %v3814_v33, 6 }
  0xb4   : > { %v2618_v6 = vadd.f32 %v3479_v35, %v2582_v37  ;;  %v1509_v18 = vrot.slane %v902_v49, 1  ;;  %v1510_v56 = vrot.slane %v903_v24, 1  ;;  %v1512_v13 = vrot.slane %v904_v58, 1  ;;  %v443_v58 = vld [vmem:[%s3108_s28 + $0xe0] sm:$0xff] }
  0xb5   : > { %v2619_v40 = vadd.f32 %v3479_v35, %v2583_v34  ;;  %v1142_v52 = vsel %vm1114_vm0, %v1140_v11, %v1141_v42  ;;  %v1403_v55 = vadd.f32 %v1307_v38, %v771_v62  ;;  %v1033_v10 = vmul.f32 %v3321_v1, %v3805_v21 }
  0xb6   : > { %2650 = vst [vmem:[%s3494_s19 + $0x40] sm:$0xff] %v2618_v6  ;;  %v2681_v41 = vadd.f32 %v3769_v29, %v2618_v6  ;;  %v2720_v5 = vmul.f32 %v2618_v6, %v2618_v6  ;;  %v1309_v45 = vsel %vm1291_vm1, %v1307_v38, %v1308_v4  ;;  %v1034_v25 = vmul.f32 %v3321_v1, %v3807_v14 }
  0xb7   : > { %2651 = vst [vmem:[%s3494_s19 + $0x48] sm:$0xff] %v2619_v40  ;;  %v1404_v3 = vadd.f32 %v1309_v45, %v772_v43  ;;  %v1511_v46 = vsel %vm1114_vm0, %v1509_v18, %v1510_v56  ;;  %v1513_v61 = vsel %vm1114_vm0, %v1510_v56, %v1512_v13  ;;  %v2721_v29 = vmul.f32 %v2619_v40, %v2619_v40 }
  0xb8   : > { %v2751_v20 = vadd.f32 %v3772_v28, %v2720_v5  ;;  %v3853_v23 = vadd.f32 %v2681_v41, %v2619_v40  ;;  %v1237_v62 = vadd.f32 %v1142_v52, %v684_v30  ;;  %v1733_v19 = vrot.slane %v984_v7, 1  ;;  %v3884_v5 = vld [vmem:[%s4766_s2] ss:$0 sm:$0xff] }
  0xb9   : > { %v1734_v9 = vrot.slane %v985_v16, 1  ;;  %v1736_v26 = vrot.slane %v986_v57, 1  ;;  %v1926_v36 = vrot.slane %v1403_v55, 2  ;;  %v1627_v32 = vadd.f32 %v1511_v46, %v853_v17  ;;  %v444_v57 = vld [vmem:[%s3108_s28 + $0xe8] sm:$0xff] }
  0xba   : > { %v3855_v33 = vadd.f32 %v2751_v20, %v2721_v29  ;;  %v1628_v43 = vadd.f32 %v1513_v61, %v854_v50  ;;  %v1927_v47 = vrot.slane %v1404_v3, 2  ;;  %v2487_v28 = vrot.slane %v1033_v10, 2 }
  0xbb   : > { %v1735_v49 = vsel %vm1114_vm0, %v1733_v19, %v1734_v9  ;;  %v1737_v24 = vsel %vm1114_vm0, %v1734_v9, %v1736_v26  ;;  %v724_v48 = vmul.f32 %v3255_v44, %v3635_v27  ;;  %v2488_v7 = vrot.slane %v1034_v25, 2 }
  0xbc   : > { %v1830_v30 = vadd.f32 %v1735_v49, %v946_v51  ;;  %v1831_v37 = vadd.f32 %v1737_v24, %v947_v15  ;;  %v685_v16 = vmul.f32 %v3272_v54, %v3633_v8  ;;  %v1928_v17 = vsel %vm1900_vm2, %v1926_v36, %v1927_v47  ;;  %v3875_v15 = vld [vmem:[%s4765_s1] ss:$0 sm:$0xff] }
  0xbd   : > { %v773_v50 = vmul.f32 %v3276_v59, %v3635_v27  ;;  %v855_v34 = vmul.f32 %v3283_v63, %v3726_v0  ;;  %v1035_v11 = vmul.f32 %v3321_v1, %v3809_v39  ;;  %v1143_v51 = vrot.slane %v724_v48, 1 }
  0xbe   : > { %v2093_v38 = vrot.slane %v1830_v30, 7  ;;  %v2094_v6 = vrot.slane %v1831_v37, 7  ;;  %v479_v8 = vmul.f32 %v3875_v15, %v443_v58  ;;  %v480_v27 = vmul.f32 %v3875_v15, %v444_v57  ;;  %v3901_v37 = vld [vmem:[#allocation2 + $0xc0] sm:$0xff] }
  0xbf   : > { %v1405_v18 = vadd.f32 %v1308_v4, %v773_v50  ;;  %v1629_v56 = vadd.f32 %v1512_v13, %v855_v34  ;;  %v2490_v40 = vrot.slane %v1035_v11, 2  ;;  %v1144_v41 = vsel %vm1114_vm0, %v1141_v42, %v1143_v51  ;;  %v3913_v50 = vld [vmem:[#allocation2 + $0xc8] sm:$0xff]  ;;  %v3915_v34 = vld [vmem:[#allocation2 + $0xd0] sm:$0x3] }
  0xc0   : > { %v2095_v52 = vsel %vm2077_vm3, %v2093_v38, %v2094_v6  ;;  %v2189_v55 = vadd.f32 %v2093_v38, %v1627_v32  ;;  %v515_v10 = vadd.f32 %v3884_v5, %v479_v8  ;;  %v1238_v25 = vadd.f32 %v1144_v41, %v685_v16 }
  0xc1   : > { %v2190_v45 = vadd.f32 %v2095_v52, %v1628_v43  ;;  %v1929_v3 = vrot.slane %v1405_v18, 2  ;;  %v2191_v4 = vadd.f32 %v2094_v6, %v1629_v56  ;;  %v2023_v13 = vadd.f32 %v1928_v17, %v1237_v62 }
  0xc2   : > { %v2295_v46 = vrot.slane %v2189_v55, 1  ;;  %v547_v61 = vmax.f32 %v515_v10, 0.0  ;;  %v516_v20 = vadd.f32 %v3884_v5, %v480_v27  ;;  %v2489_v19 = vsel %vm1900_vm2, %v2487_v28, %v2488_v7 }
  0xc3   : > { %v2296_v29 = vrot.slane %v2190_v45, 1  ;;  %v1930_v42 = vsel %vm1900_vm2, %v1927_v47, %v1929_v3  ;;  %v2298_v9 = vrot.slane %v2191_v4, 1  ;;  %v2491_v36 = vsel %vm1900_vm2, %v2488_v7, %v2490_v40 }
  0xc4   : > { %v2024_v26 = vadd.f32 %v1930_v42, %v1238_v25  ;;  %v579_v32 = vmin.f32 %v547_v61, 6.0  ;;  %v548_v49 = vmax.f32 %v516_v20, 0.0  ;;  %v686_v62 = vmul.f32 %v3272_v54, %v3722_v53 }
  0xc5   : > { %v2297_v43 = vsel %vm1114_vm0, %v2295_v46, %v2296_v29  ;;  %v2299_v24 = vsel %vm1114_vm0, %v2296_v29, %v2298_v9  ;;  %v725_v48 = vmul.f32 %v3255_v44, %v3722_v53  ;;  %v3899_v30 = vmul.f32 %v3255_v44, %v3724_v31 }
  0xc6   : > { %v2392_v58 = vadd.f32 %v2297_v43, %v2023_v13  ;;  %v2393_v28 = vadd.f32 %v2299_v24, %v2024_v26  ;;  %612 = vst [vmem:[#allocation2 + $0x169] sm:$0xff] %v579_v32  ;;  %v580_v47 = vmin.f32 %v548_v49, 6.0  ;;  %v774_v7 = vmul.f32 %v3276_v59, %v3722_v53 }
  0xc7   : > { %v775_v16 = vmul.f32 %v3276_v59, %v3724_v31  ;;  %v817_v57 = vmul.f32 %v3278_v60, %v3805_v21  ;;  %v3911_v17 = vmul.f32 %v3278_v60, %v3807_v14  ;;  %v856_v53 = vmul.f32 %v3283_v63, %v3805_v21 }
  0xc8   : > { %v2584_v11 = vadd.f32 %v2489_v19, %v2392_v58  ;;  %v2585_v38 = vadd.f32 %v2491_v36, %v2393_v28  ;;  %613 = vst [vmem:[#allocation2 + $0x171] sm:$0xff] %v580_v47  ;;  %v857_v6 = vmul.f32 %v3283_v63, %v3807_v14  ;;  %v905_v51 = vmul.f32 %v3285_v2, %v3805_v21 }
  0xc9   : > { %v906_v8 = vmul.f32 %v3285_v2, %v3807_v14  ;;  %v907_v18 = vmul.f32 %v3285_v2, %v3809_v39  ;;  %v948_v56 = vmul.f32 %v3295_v12, %v3901_v37  ;;  %v949_v52 = vmul.f32 %v3295_v12, %v3913_v50 }
  0xca   : > { %v2620_v40 = vadd.f32 %v3479_v35, %v2584_v11  ;;  %v2621_v27 = vadd.f32 %v3479_v35, %v2585_v38  ;;  %v987_v55 = vmul.f32 %v3307_v22, %v3901_v37  ;;  %v988_v41 = vmul.f32 %v3307_v22, %v3913_v50 }
  0xcb   : > { %v989_v10 = vmul.f32 %v3307_v22, %v3915_v34  ;;  %v1145_v45 = vrot.slane %v725_v48, 1  ;;  %v1146_v25 = vrot.slane %v3899_v30, 1  ;;  %v3944_v35 = vmul.f32 %v3321_v1, %v3901_v37 }
  0xcc   : > { %2652 = vst [vmem:[%s3494_s19 + $0x50] sm:$0xff] %v2620_v40  ;;  %v2683_v3 = vadd.f32 %v3853_v23, %v2620_v40  ;;  %v2722_v4 = vmul.f32 %v2620_v40, %v2620_v40  ;;  %v1310_v13 = vrot.slane %v817_v57, 6  ;;  %v2723_v46 = vmul.f32 %v2621_v27, %v2621_v27 }
  0xcd   : > { %2653 = vst [vmem:[%s3494_s19 + $0x58] sm:$0xff] %v2621_v27  ;;  %v1311_v61 = vrot.slane %v3911_v17, 6  ;;  %v1514_v20 = vrot.slane %v905_v51, 1  ;;  %v1515_v29 = vrot.slane %v906_v8, 1  ;;  %v1147_v9 = vsel %vm1114_vm0, %v1145_v45, %v1146_v25 }
  0xce   : > { %v2753_v19 = vadd.f32 %v3855_v33, %v2722_v4  ;;  %v3949_v42 = vadd.f32 %v2683_v3, %v2621_v27  ;;  %v1406_v26 = vadd.f32 %v1310_v13, %v774_v7  ;;  %v1517_v32 = vrot.slane %v907_v18, 1  ;;  %v445_v18 = vld [vmem:[%s3108_s28 + $0xf0] sm:$0xff] }
  0xcf   : > { %v1312_v23 = vsel %vm1291_vm1, %v1310_v13, %v1311_v61  ;;  %v1516_v36 = vsel %vm1114_vm0, %v1514_v20, %v1515_v29  ;;  %v1738_v49 = vrot.slane %v987_v55, 1  ;;  %v1037_v24 = vmul.f32 %v3321_v1, %v3913_v50  ;;  %v446_v55 = vld [vmem:[%s3108_s28 + $0xf8] sm:$0xff] }
  0xd0   : > { %v3954_v43 = vadd.f32 %v2753_v19, %v2723_v46  ;;  %v1407_v48 = vadd.f32 %v1312_v23, %v775_v16  ;;  %v1739_v58 = vrot.slane %v988_v41, 1  ;;  %v1239_v33 = vadd.f32 %v1147_v9, %v686_v62 }
  0xd1   : > { %v1518_v28 = vsel %vm1114_vm0, %v1515_v29, %v1517_v32  ;;  %v1741_v47 = vrot.slane %v989_v10, 1  ;;  %v1931_v30 = vrot.slane %v1406_v26, 2  ;;  %v1630_v7 = vadd.f32 %v1516_v36, %v856_v53 }
  0xd2   : > { %v1740_v57 = vsel %vm1114_vm0, %v1738_v49, %v1739_v58  ;;  %v1932_v17 = vrot.slane %v1407_v48, 2  ;;  %v2492_v11 = vrot.slane %v3944_v35, 2  ;;  %v1631_v38 = vadd.f32 %v1518_v28, %v857_v6 }
  0xd3   : > { %v1742_v51 = vsel %vm1114_vm0, %v1739_v58, %v1741_v47  ;;  %v1832_v8 = vadd.f32 %v1740_v57, %v948_v56  ;;  %v727_v16 = vmul.f32 %v3255_v44, %v3726_v0  ;;  %v2493_v40 = vrot.slane %v1037_v24, 2 }
  0xd4   : > { %v1833_v62 = vadd.f32 %v1742_v51, %v949_v52  ;;  %v687_v27 = vmul.f32 %v3272_v54, %v3724_v31  ;;  %v776_v53 = vmul.f32 %v3276_v59, %v3726_v0  ;;  %v1933_v41 = vsel %vm1900_vm2, %v1931_v30, %v1932_v17 }
  0xd5   : > { %v2096_v10 = vrot.slane %v1832_v8, 7  ;;  %v858_v6 = vmul.f32 %v3283_v63, %v3809_v39  ;;  %v1038_v56 = vmul.f32 %v3321_v1, %v3915_v34  ;;  %v1148_v3 = vrot.slane %v727_v16, 1 }
  0xd6   : > { %v2097_v45 = vrot.slane %v1833_v62, 7  ;;  %v1408_v52 = vadd.f32 %v1311_v61, %v776_v53  ;;  %v481_v4 = vmul.f32 %v3875_v15, %v445_v18  ;;  %v482_v0 = vmul.f32 %v3875_v15, %v446_v55  ;;  %v3998_v18 = vld [vmem:[#allocation2 + $0xe0] sm:$0xff]  ;;  %v4000_v62 = vld [vmem:[#allocation2 + $0xe8] sm:$0x3] }
  0xd7   : > { %v2192_v35 = vadd.f32 %v2096_v10, %v1630_v7  ;;  %v1632_v31 = vadd.f32 %v1517_v32, %v858_v6  ;;  %v2495_v13 = vrot.slane %v1038_v56, 2  ;;  %v1149_v20 = vsel %vm1114_vm0, %v1146_v25, %v1148_v3 }
  0xd8   : > { %v2098_v46 = vsel %vm2077_vm3, %v2096_v10, %v2097_v45  ;;  %v1934_v29 = vrot.slane %v1408_v52, 2  ;;  %v517_v19 = vadd.f32 %v3884_v5, %v481_v4  ;;  %v1240_v23 = vadd.f32 %v1149_v20, %v687_v27  ;;  %v4027_v4 = vld [vmem:[%s4768_s4] ss:$0 sm:$0xff] }
  0xd9   : > { %v2193_v9 = vadd.f32 %v2098_v46, %v1631_v38  ;;  %v2300_v26 = vrot.slane %v2192_v35, 1  ;;  %v2194_v36 = vadd.f32 %v2097_v45, %v1632_v31  ;;  %v2025_v49 = vadd.f32 %v1933_v41, %v1239_v33 }
  0xda   : > { %v1935_v61 = vsel %vm1900_vm2, %v1932_v17, %v1934_v29  ;;  %v549_v24 = vmax.f32 %v517_v19, 0.0  ;;  %v518_v32 = vadd.f32 %v3884_v5, %v482_v0  ;;  %v2494_v15 = vsel %vm1900_vm2, %v2492_v11, %v2493_v40  ;;  %v3994_v11 = vld [vmem:[#allocation2 + $0xd8] sm:$0xff] }
  0xdb   : > { %v2301_v48 = vrot.slane %v2193_v9, 1  ;;  %v2026_v58 = vadd.f32 %v1935_v61, %v1240_v23  ;;  %v2303_v28 = vrot.slane %v2194_v36, 1  ;;  %v2496_v25 = vsel %vm1900_vm2, %v2493_v40, %v2495_v13 }
  0xdc   : > { %v581_v47 = vmin.f32 %v549_v24, 6.0  ;;  %v550_v30 = vmax.f32 %v518_v32, 0.0  ;;  %v688_v7 = vmul.f32 %v3272_v54, %v3805_v21  ;;  %v728_v17 = vmul.f32 %v3255_v44, %v3805_v21 }
  0xdd   : > { %v2302_v57 = vsel %vm1114_vm0, %v2300_v26, %v2301_v48  ;;  %v2304_v33 = vsel %vm1114_vm0, %v2301_v48, %v2303_v28  ;;  %v3992_v5 = vmul.f32 %v3255_v44, %v3807_v14  ;;  %v777_v16 = vmul.f32 %v3276_v59, %v3805_v21 }
  0xde   : > { %v2394_v38 = vadd.f32 %v2302_v57, %v2025_v49  ;;  %v2395_v51 = vadd.f32 %v2304_v33, %v2026_v58  ;;  %614 = vst [vmem:[#allocation2 + $0x181] sm:$0xff] %v581_v47  ;;  %v582_v8 = vmin.f32 %v550_v30, 6.0  ;;  %v778_v40 = vmul.f32 %v3276_v59, %v3807_v14 }
  0xdf   : > { %v819_v27 = vmul.f32 %v3278_v60, %v3901_v37  ;;  %v4008_v53 = vmul.f32 %v3278_v60, %v3913_v50  ;;  %v859_v55 = vmul.f32 %v3283_v63, %v3901_v37  ;;  %v860_v21 = vmul.f32 %v3283_v63, %v3913_v50 }
  0xe0   : > { %v2586_v41 = vadd.f32 %v2494_v15, %v2394_v38  ;;  %v2587_v10 = vadd.f32 %v2496_v25, %v2395_v51  ;;  %615 = vst [vmem:[#allocation2 + $0x189] sm:$0xff] %v582_v8  ;;  %v908_v6 = vmul.f32 %v3285_v2, %v3901_v37  ;;  %v909_v56 = vmul.f32 %v3285_v2, %v3913_v50 }
  0xe1   : > { %v910_v45 = vmul.f32 %v3285_v2, %v3915_v34  ;;  %v950_v3 = vmul.f32 %v3295_v12, %v3994_v11  ;;  %v990_v52 = vmul.f32 %v3307_v22, %v3994_v11  ;;  %v991_v13 = vmul.f32 %v3307_v22, %v3998_v18 }
  0xe2   : > { %v2622_v35 = vadd.f32 %v4027_v4, %v2586_v41  ;;  %v2623_v31 = vadd.f32 %v4027_v4, %v2587_v10  ;;  %v992_v0 = vmul.f32 %v3307_v22, %v4000_v62  ;;  %v1039_v46 = vmul.f32 %v3321_v1, %v3994_v11 }
  0xe3   : > { %v1150_v20 = vrot.slane %v728_v17, 1  ;;  %v1151_v29 = vrot.slane %v3992_v5, 1  ;;  %v1313_v19 = vrot.slane %v819_v27, 6  ;;  %v1040_v23 = vmul.f32 %v3321_v1, %v3998_v18 }
  0xe4   : > { %2654 = vst [vmem:[%s3494_s19 + $0x60] sm:$0xff] %v2622_v35  ;;  %v2685_v9 = vadd.f32 %v3949_v42, %v2622_v35  ;;  %v2724_v26 = vmul.f32 %v2622_v35, %v2622_v35  ;;  %v1314_v36 = vrot.slane %v4008_v53, 6  ;;  %v2725_v49 = vmul.f32 %v2623_v31, %v2623_v31 }
  0xe5   : > { %2655 = vst [vmem:[%s3494_s19 + $0x68] sm:$0xff] %v2623_v31  ;;  %v1409_v61 = vadd.f32 %v1313_v19, %v777_v16  ;;  %v1519_v24 = vrot.slane %v908_v6, 1  ;;  %v1520_v32 = vrot.slane %v909_v56, 1  ;;  %v1152_v58 = vsel %vm1114_vm0, %v1150_v20, %v1151_v29 }
  0xe6   : > { %v2755_v48 = vadd.f32 %v3954_v43, %v2724_v26  ;;  %v4045_v15 = vadd.f32 %v2685_v9, %v2623_v31  ;;  %v1315_v28 = vsel %vm1291_vm1, %v1313_v19, %v1314_v36  ;;  %v951_v42 = vmul.f32 %v3295_v12, %v3998_v18 }
  0xe7   : > { %v1410_v25 = vadd.f32 %v1315_v28, %v778_v40  ;;  %v1522_v47 = vrot.slane %v910_v45, 1  ;;  %v1743_v30 = vrot.slane %v990_v52, 1  ;;  %v1521_v33 = vsel %vm1114_vm0, %v1519_v24, %v1520_v32 }
  0xe8   : > { %v4051_v57 = vadd.f32 %v2755_v48, %v2725_v49  ;;  %v1744_v17 = vrot.slane %v991_v13, 1  ;;  %v1746_v5 = vrot.slane %v992_v0, 1  ;;  %v1241_v38 = vadd.f32 %v1152_v58, %v688_v7 }
  0xe9   : > { %v1523_v43 = vsel %vm1114_vm0, %v1520_v32, %v1522_v47  ;;  %v1936_v51 = vrot.slane %v1409_v61, 2  ;;  %v1937_v8 = vrot.slane %v1410_v25, 2  ;;  %v2497_v53 = vrot.slane %v1039_v46, 2 }
  0xea   : > { %v1745_v16 = vsel %vm1114_vm0, %v1743_v30, %v1744_v17  ;;  %v1747_v27 = vsel %vm1114_vm0, %v1744_v17, %v1746_v5  ;;  %v2498_v41 = vrot.slane %v1040_v23, 2  ;;  %v1633_v40 = vadd.f32 %v1521_v33, %v859_v55  ;;  %v4085_v17 = vld [vmem:[#allocation2 + $0xf0] sm:$0xff]  ;;  %v4087_v5 = vld [vmem:[#allocation2 + $0xf8] sm:$0xff] }
  0xeb   : > { %v1834_v10 = vadd.f32 %v1745_v16, %v950_v3  ;;  %v1835_v6 = vadd.f32 %v1747_v27, %v951_v42  ;;  %v1938_v56 = vsel %vm1900_vm2, %v1936_v51, %v1937_v8  ;;  %v1634_v45 = vadd.f32 %v1523_v43, %v860_v21 }
  0xec   : > { %v689_v52 = vmul.f32 %v3272_v54, %v3807_v14  ;;  %v730_v7 = vmul.f32 %v3255_v44, %v3809_v39  ;;  %v779_v35 = vmul.f32 %v3276_v59, %v3809_v39  ;;  %v861_v0 = vmul.f32 %v3283_v63, %v3915_v34 }
  0xed   : > { %v2099_v31 = vrot.slane %v1834_v10, 7  ;;  %v2100_v13 = vrot.slane %v1835_v6, 7  ;;  %v1041_v55 = vmul.f32 %v3321_v1, %v4000_v62  ;;  %v2027_v3 = vadd.f32 %v1938_v56, %v1241_v38 }
  0xee   : > { %v2499_v21 = vsel %vm1900_vm2, %v2497_v53, %v2498_v41  ;;  %v1153_v46 = vrot.slane %v730_v7, 1  ;;  %v1411_v20 = vadd.f32 %v1314_v36, %v779_v35  ;;  %v1635_v9 = vadd.f32 %v1522_v47, %v861_v0 }
  0xef   : > { %v2101_v14 = vsel %vm2077_vm3, %v2099_v31, %v2100_v13  ;;  %v2195_v19 = vadd.f32 %v2099_v31, %v1633_v40  ;;  %v2500_v26 = vrot.slane %v1041_v55, 2  ;;  %v690_v61 = vmul.f32 %v3272_v54, %v3901_v37 }
  0xf0   : > { %v2196_v23 = vadd.f32 %v2101_v14, %v1634_v45  ;;  %v1154_v39 = vsel %vm1114_vm0, %v1151_v29, %v1153_v46  ;;  %v1939_v49 = vrot.slane %v1411_v20, 2  ;;  %v2197_v48 = vadd.f32 %v2100_v13, %v1635_v9 }
  0xf1   : > { %v2305_v24 = vrot.slane %v2195_v19, 1  ;;  %v1242_v32 = vadd.f32 %v1154_v39, %v689_v52  ;;  %v731_v58 = vmul.f32 %v3255_v44, %v3901_v37  ;;  %v2501_v42 = vsel %vm1900_vm2, %v2498_v41, %v2500_v26 }
  0xf2   : > { %v2306_v28 = vrot.slane %v2196_v23, 1  ;;  %v1940_v36 = vsel %vm1900_vm2, %v1937_v8, %v1939_v49  ;;  %v4079_v25 = vmul.f32 %v3255_v44, %v3913_v50  ;;  %v2308_v47 = vrot.slane %v2197_v48, 1 }
  0xf3   : > { %v2028_v29 = vadd.f32 %v1940_v36, %v1242_v32  ;;  %v780_v30 = vmul.f32 %v3276_v59, %v3901_v37  ;;  %v781_v33 = vmul.f32 %v3276_v59, %v3913_v50  ;;  %v821_v43 = vmul.f32 %v3278_v60, %v3994_v11  ;;  %v4098_v37 = vld [vmem:[#allocation2 + $0x100] sm:$0x3] }
  0xf4   : > { %v2307_v38 = vsel %vm1114_vm0, %v2305_v24, %v2306_v28  ;;  %v4094_v51 = vmul.f32 %v3278_v60, %v3998_v18  ;;  %v862_v8 = vmul.f32 %v3283_v63, %v3994_v11  ;;  %v2309_v27 = vsel %vm1114_vm0, %v2306_v28, %v2308_v47 }
  0xf5   : > { %v2396_v16 = vadd.f32 %v2307_v38, %v2027_v3  ;;  %v863_v53 = vmul.f32 %v3283_v63, %v3998_v18  ;;  %v911_v41 = vmul.f32 %v3285_v2, %v3994_v11  ;;  %v2397_v40 = vadd.f32 %v2309_v27, %v2028_v29 }
  0xf6   : > { %v912_v10 = vmul.f32 %v3285_v2, %v3998_v18  ;;  %v913_v6 = vmul.f32 %v3285_v2, %v4000_v62  ;;  %v952_v56 = vmul.f32 %v3295_v12, %v4085_v17  ;;  %v953_v52 = vmul.f32 %v3295_v12, %v4087_v5 }
  0xf7   : > { %v2588_v45 = vadd.f32 %v2499_v21, %v2396_v16  ;;  %v993_v7 = vmul.f32 %v3307_v22, %v4085_v17  ;;  %v994_v35 = vmul.f32 %v3307_v22, %v4087_v5  ;;  %v2589_v31 = vadd.f32 %v2501_v42, %v2397_v40 }
  0xf8   : > { %v995_v13 = vmul.f32 %v3307_v22, %v4098_v37  ;;  %v1155_v0 = vrot.slane %v731_v58, 1  ;;  %v1156_v55 = vrot.slane %v4079_v25, 1  ;;  %v1316_v21 = vrot.slane %v821_v43, 6 }
  0xf9   : > { %v2624_v3 = vadd.f32 %v4027_v4, %v2588_v45  ;;  %v1317_v46 = vrot.slane %v4094_v51, 6  ;;  %v1524_v20 = vrot.slane %v911_v41, 1  ;;  %v2625_v14 = vadd.f32 %v4027_v4, %v2589_v31 }
  0xfa   : > { %v1157_v19 = vsel %vm1114_vm0, %v1155_v0, %v1156_v55  ;;  %v1525_v9 = vrot.slane %v912_v10, 1  ;;  %v1527_v26 = vrot.slane %v913_v6, 1  ;;  %v1042_v49 = vmul.f32 %v3321_v1, %v4085_v17 }
  0xfb   : > { %2656 = vst [vmem:[%s3494_s19 + $0x70] sm:$0xff] %v2624_v3  ;;  %v2687_v23 = vadd.f32 %v4045_v15, %v2624_v3  ;;  %v2726_v39 = vmul.f32 %v2624_v3, %v2624_v3  ;;  %v1318_v24 = vsel %vm1291_vm1, %v1316_v21, %v1317_v46  ;;  %v1043_v32 = vmul.f32 %v3321_v1, %v4087_v5 }
  0xfc   : > { %2657 = vst [vmem:[%s3494_s19 + $0x78] sm:$0xff] %v2625_v14  ;;  %v1412_v48 = vadd.f32 %v1316_v21, %v780_v30  ;;  %v1413_v58 = vadd.f32 %v1318_v24, %v781_v33  ;;  %v1526_v28 = vsel %vm1114_vm0, %v1524_v20, %v1525_v9  ;;  %v2727_v25 = vmul.f32 %v2625_v14, %v2625_v14 }
  0xfd   : > { %v2757_v36 = vadd.f32 %v4051_v57, %v2726_v39  ;;  %v4134_v42 = vadd.f32 %v2687_v23, %v2625_v14  ;;  %v1243_v15 = vadd.f32 %v1157_v19, %v690_v61  ;;  %v1528_v29 = vsel %vm1114_vm0, %v1525_v9, %v1527_v26 }
  0xfe   : > { %v1748_v47 = vrot.slane %v993_v7, 1  ;;  %v1749_v38 = vrot.slane %v994_v35, 1  ;;  %v1751_v43 = vrot.slane %v995_v13, 1  ;;  %v1636_v16 = vadd.f32 %v1526_v28, %v862_v8 }
  0xff   : > { %v4137_v51 = vadd.f32 %v2757_v36, %v2727_v25  ;;  %v1941_v27 = vrot.slane %v1412_v48, 2  ;;  %v1942_v41 = vrot.slane %v1413_v58, 2  ;;  %v2502_v40 = vrot.slane %v1042_v49, 2 }
 0x100   : > { %v1750_v30 = vsel %vm1114_vm0, %v1748_v47, %v1749_v38  ;;  %v1752_v33 = vsel %vm1114_vm0, %v1749_v38, %v1751_v43  ;;  %v2503_v57 = vrot.slane %v1043_v32, 2  ;;  %v733_v45 = vmul.f32 %v3255_v44, %v3915_v34  ;;  %v4171_v47 = vld [vmem:[#allocation2 + $0x108] sm:$0xff]  ;;  %v4173_v38 = vld [vmem:[#allocation2 + $0x110] sm:$0xff] }
 0x101   : > { %v1836_v10 = vadd.f32 %v1750_v30, %v952_v56  ;;  %v1837_v6 = vadd.f32 %v1752_v33, %v953_v52  ;;  %v1943_v61 = vsel %vm1900_vm2, %v1941_v27, %v1942_v41  ;;  %v1637_v7 = vadd.f32 %v1528_v29, %v863_v53 }
 0x102   : > { %v691_v35 = vmul.f32 %v3272_v54, %v3913_v50  ;;  %v782_v8 = vmul.f32 %v3276_v59, %v3915_v34  ;;  %v864_v31 = vmul.f32 %v3283_v63, %v4000_v62  ;;  %v1044_v56 = vmul.f32 %v3321_v1, %v4098_v37 }
 0x103   : > { %v2102_v13 = vrot.slane %v1836_v10, 7  ;;  %v2103_v0 = vrot.slane %v1837_v6, 7  ;;  %v1158_v52 = vrot.slane %v733_v45, 1  ;;  %v2029_v3 = vadd.f32 %v1943_v61, %v1243_v15 }
 0x104   : > { %v2504_v21 = vsel %vm1900_vm2, %v2502_v40, %v2503_v57  ;;  %v1414_v20 = vadd.f32 %v1317_v46, %v782_v8  ;;  %v1638_v53 = vadd.f32 %v1527_v26, %v864_v31  ;;  %v2505_v34 = vrot.slane %v1044_v56, 2 }
 0x105   : > { %v2104_v14 = vsel %vm2077_vm3, %v2102_v13, %v2103_v0  ;;  %v2198_v50 = vadd.f32 %v2102_v13, %v1636_v16  ;;  %v1159_v19 = vsel %vm1114_vm0, %v1156_v55, %v1158_v52  ;;  %v692_v48 = vmul.f32 %v3272_v54, %v3994_v11 }
 0x106   : > { %v2199_v9 = vadd.f32 %v2104_v14, %v1637_v7  ;;  %v1244_v23 = vadd.f32 %v1159_v19, %v691_v35  ;;  %v1944_v39 = vrot.slane %v1414_v20, 2  ;;  %v2200_v49 = vadd.f32 %v2103_v0, %v1638_v53 }
 0x107   : > { %v2310_v24 = vrot.slane %v2198_v50, 1  ;;  %v2506_v32 = vsel %vm1900_vm2, %v2503_v57, %v2505_v34  ;;  %v734_v46 = vmul.f32 %v3255_v44, %v3994_v11  ;;  %v4163_v55 = vmul.f32 %v3255_v44, %v3998_v18 }
 0x108   : > { %v2311_v26 = vrot.slane %v2199_v9, 1  ;;  %v1945_v58 = vsel %vm1900_vm2, %v1942_v41, %v1944_v39  ;;  %v2313_v28 = vrot.slane %v2200_v49, 1  ;;  %v783_v25 = vmul.f32 %v3276_v59, %v3994_v11  ;;  %v4183_v41 = vld [vmem:[#allocation2 + $0x118] sm:$0x3] }
 0x109   : > { %v2030_v36 = vadd.f32 %v1945_v58, %v1244_v23  ;;  %v784_v15 = vmul.f32 %v3276_v59, %v3998_v18  ;;  %v823_v29 = vmul.f32 %v3278_v60, %v4085_v17  ;;  %v4179_v27 = vmul.f32 %v3278_v60, %v4087_v5 }
 0x10a   : > { %v2312_v43 = vsel %vm1114_vm0, %v2310_v24, %v2311_v26  ;;  %v2314_v16 = vsel %vm1114_vm0, %v2311_v26, %v2313_v28  ;;  %v865_v11 = vmul.f32 %v3283_v63, %v4085_v17  ;;  %v866_v40 = vmul.f32 %v3283_v63, %v4087_v5 }
 0x10b   : > { %v2398_v30 = vadd.f32 %v2312_v43, %v2029_v3  ;;  %v2399_v33 = vadd.f32 %v2314_v16, %v2030_v36  ;;  %v914_v57 = vmul.f32 %v3285_v2, %v4085_v17  ;;  %v915_v10 = vmul.f32 %v3285_v2, %v4087_v5 }
 0x10c   : > { %v916_v6 = vmul.f32 %v3285_v2, %v4098_v37  ;;  %v954_v61 = vmul.f32 %v3295_v12, %v4171_v47  ;;  %v955_v45 = vmul.f32 %v3295_v12, %v4173_v38  ;;  %v996_v8 = vmul.f32 %v3307_v22, %v4171_v47 }
 0x10d   : > { %v2590_v7 = vadd.f32 %v2504_v21, %v2398_v30  ;;  %v2591_v35 = vadd.f32 %v2506_v32, %v2399_v33  ;;  %v997_v31 = vmul.f32 %v3307_v22, %v4173_v38  ;;  %v998_v13 = vmul.f32 %v3307_v22, %v4183_v41 }
 0x10e   : > { %v1160_v0 = vrot.slane %v734_v46, 1  ;;  %v1161_v56 = vrot.slane %v4163_v55, 1  ;;  %v1319_v52 = vrot.slane %v823_v29, 6  ;;  %v1320_v20 = vrot.slane %v4179_v27, 6 }
 0x10f   : > { %v2626_v3 = vadd.f32 %v4027_v4, %v2590_v7  ;;  %v2627_v21 = vadd.f32 %v4027_v4, %v2591_v35  ;;  %v1529_v53 = vrot.slane %v914_v57, 1  ;;  %v1530_v19 = vrot.slane %v915_v10, 1 }
 0x110   : > { %v1162_v14 = vsel %vm1114_vm0, %v1160_v0, %v1161_v56  ;;  %v1415_v50 = vadd.f32 %v1319_v52, %v783_v25  ;;  %v1532_v34 = vrot.slane %v916_v6, 1  ;;  %v1045_v39 = vmul.f32 %v3321_v1, %v4171_v47 }
 0x111   : > { %2658 = vst [vmem:[%s3494_s19 + $0x80] sm:$0xff] %v2626_v3  ;;  %v2689_v9 = vadd.f32 %v4134_v42, %v2626_v3  ;;  %v2728_v23 = vmul.f32 %v2626_v3, %v2626_v3  ;;  %v1046_v49 = vmul.f32 %v3321_v1, %v4173_v38  ;;  %v2729_v24 = vmul.f32 %v2627_v21, %v2627_v21 }
 0x112   : > { %2659 = vst [vmem:[%s3494_s19 + $0x88] sm:$0xff] %v2627_v21  ;;  %v1245_v32 = vadd.f32 %v1162_v14, %v692_v48  ;;  %v1321_v46 = vsel %vm1291_vm1, %v1319_v52, %v1320_v20  ;;  %v1753_v26 = vrot.slane %v996_v8, 1  ;;  %v1531_v42 = vsel %vm1114_vm0, %v1529_v53, %v1530_v19 }
 0x113   : > { %v2759_v58 = vadd.f32 %v4137_v51, %v2728_v23  ;;  %v4217_v28 = vadd.f32 %v2689_v9, %v2627_v21  ;;  %v1416_v55 = vadd.f32 %v1321_v46, %v784_v15  ;;  %v1533_v36 = vsel %vm1114_vm0, %v1530_v19, %v1532_v34 }
 0x114   : > { %v1754_v25 = vrot.slane %v997_v31, 1  ;;  %v1756_v29 = vrot.slane %v998_v13, 1  ;;  %v1946_v43 = vrot.slane %v1415_v50, 2  ;;  %v2507_v30 = vrot.slane %v1045_v39, 2 }
 0x115   : > { %v4221_v16 = vadd.f32 %v2759_v58, %v2729_v24  ;;  %v1947_v27 = vrot.slane %v1416_v55, 2  ;;  %v2508_v48 = vrot.slane %v1046_v49, 2  ;;  %v1639_v33 = vadd.f32 %v1531_v42, %v865_v11  ;;  %v4251_v58 = vld [vmem:[#allocation2 + $0x120] sm:$0xff] }
 0x116   : > { %v1755_v57 = vsel %vm1114_vm0, %v1753_v26, %v1754_v25  ;;  %v1757_v51 = vsel %vm1114_vm0, %v1754_v25, %v1756_v29  ;;  %v736_v15 = vmul.f32 %v3255_v44, %v4000_v62  ;;  %v1640_v10 = vadd.f32 %v1533_v36, %v866_v40  ;;  %v4261_v29 = vld [vmem:[#allocation2 + $0x128] sm:$0xff] }
 0x117   : > { %v1838_v6 = vadd.f32 %v1755_v57, %v954_v61  ;;  %v1839_v7 = vadd.f32 %v1757_v51, %v955_v45  ;;  %v1948_v35 = vsel %vm1900_vm2, %v1946_v43, %v1947_v27  ;;  %v693_v8 = vmul.f32 %v3272_v54, %v3998_v18  ;;  %v4263_v43 = vld [vmem:[#allocation2 + $0x130] sm:$0x3] }
 0x118   : > { %v785_v31 = vmul.f32 %v3276_v59, %v4000_v62  ;;  %v867_v11 = vmul.f32 %v3283_v63, %v4098_v37  ;;  %v1047_v13 = vmul.f32 %v3321_v1, %v4183_v41  ;;  %v2509_v40 = vsel %vm1900_vm2, %v2507_v30, %v2508_v48 }
 0x119   : > { %v2105_v0 = vrot.slane %v1838_v6, 7  ;;  %v2106_v52 = vrot.slane %v1839_v7, 7  ;;  %v1163_v61 = vrot.slane %v736_v15, 1  ;;  %v2031_v45 = vadd.f32 %v1948_v35, %v1245_v32 }
 0x11a   : > { %v1417_v3 = vadd.f32 %v1320_v20, %v785_v31  ;;  %v1641_v21 = vadd.f32 %v1532_v34, %v867_v11  ;;  %v2510_v53 = vrot.slane %v1047_v13, 2  ;;  %v694_v50 = vmul.f32 %v3272_v54, %v4085_v17 }
 0x11b   : > { %v2107_v18 = vsel %vm2077_vm3, %v2105_v0, %v2106_v52  ;;  %v2201_v14 = vadd.f32 %v2105_v0, %v1639_v33  ;;  %v1164_v62 = vsel %vm1114_vm0, %v1161_v56, %v1163_v61  ;;  %v737_v20 = vmul.f32 %v3255_v44, %v4085_v17 }
 0x11c   : > { %v2202_v19 = vadd.f32 %v2107_v18, %v1640_v10  ;;  %v1246_v9 = vadd.f32 %v1164_v62, %v693_v8  ;;  %v1949_v23 = vrot.slane %v1417_v3, 2  ;;  %v2203_v39 = vadd.f32 %v2106_v52, %v1641_v21 }
 0x11d   : > { %v2315_v49 = vrot.slane %v2201_v14, 1  ;;  %v2511_v24 = vsel %vm1900_vm2, %v2508_v48, %v2510_v53  ;;  %v4246_v34 = vmul.f32 %v3255_v44, %v4087_v5  ;;  %v786_v26 = vmul.f32 %v3276_v59, %v4085_v17 }
 0x11e   : > { %v2316_v32 = vrot.slane %v2202_v19, 1  ;;  %v1950_v56 = vsel %vm1900_vm2, %v1947_v27, %v1949_v23  ;;  %v2318_v46 = vrot.slane %v2203_v39, 1  ;;  %v787_v42 = vmul.f32 %v3276_v59, %v4087_v5 }
 0x11f   : > { %v2032_v55 = vadd.f32 %v1950_v56, %v1246_v9  ;;  %v825_v36 = vmul.f32 %v3278_v60, %v4171_v47  ;;  %v4259_v25 = vmul.f32 %v3278_v60, %v4173_v38  ;;  %v868_v30 = vmul.f32 %v3283_v63, %v4171_v47 }
 0x120   : > { %v2317_v27 = vsel %vm1114_vm0, %v2315_v49, %v2316_v32  ;;  %v2319_v17 = vsel %vm1114_vm0, %v2316_v32, %v2318_v46  ;;  %v869_v48 = vmul.f32 %v3283_v63, %v4173_v38  ;;  %v917_v51 = vmul.f32 %v3285_v2, %v4171_v47 }
 0x121   : > { %v2400_v33 = vadd.f32 %v2317_v27, %v2031_v45  ;;  %v2401_v57 = vadd.f32 %v2319_v17, %v2032_v55  ;;  %v918_v15 = vmul.f32 %v3285_v2, %v4173_v38  ;;  %v919_v10 = vmul.f32 %v3285_v2, %v4183_v41 }
 0x122   : > { %v956_v6 = vmul.f32 %v3295_v12, %v4251_v58  ;;  %v957_v7 = vmul.f32 %v3295_v12, %v4261_v29  ;;  %v999_v35 = vmul.f32 %v3307_v22, %v4251_v58  ;;  %v1000_v11 = vmul.f32 %v3307_v22, %v4261_v29 }
 0x123   : > { %v2592_v8 = vadd.f32 %v2509_v40, %v2400_v33  ;;  %v2593_v31 = vadd.f32 %v2511_v24, %v2401_v57  ;;  %v1001_v13 = vmul.f32 %v3307_v22, %v4263_v43  ;;  %v1165_v0 = vrot.slane %v737_v20, 1 }
 0x124   : > { %v1166_v52 = vrot.slane %v4246_v34, 1  ;;  %v1322_v61 = vrot.slane %v825_v36, 6  ;;  %v1323_v45 = vrot.slane %v4259_v25, 6  ;;  %v1534_v40 = vrot.slane %v917_v51, 1 }
 0x125   : > { %v2628_v3 = vadd.f32 %v4027_v4, %v2592_v8  ;;  %v2629_v21 = vadd.f32 %v4027_v4, %v2593_v31  ;;  %v1535_v53 = vrot.slane %v918_v15, 1  ;;  %v1537_v19 = vrot.slane %v919_v10, 1 }
 0x126   : > { %v1167_v18 = vsel %vm1114_vm0, %v1165_v0, %v1166_v52  ;;  %v1324_v14 = vsel %vm1291_vm1, %v1322_v61, %v1323_v45  ;;  %v1418_v62 = vadd.f32 %v1322_v61, %v786_v26  ;;  %v1048_v39 = vmul.f32 %v3321_v1, %v4251_v58 }
 0x127   : > { %2660 = vst [vmem:[%s3494_s19 + $0x90] sm:$0xff] %v2628_v3  ;;  %v2691_v9 = vadd.f32 %v4217_v28, %v2628_v3  ;;  %v2730_v23 = vmul.f32 %v2628_v3, %v2628_v3  ;;  %v1049_v49 = vmul.f32 %v3321_v1, %v4261_v29  ;;  %v2731_v24 = vmul.f32 %v2629_v21, %v2629_v21 }
 0x128   : > { %2661 = vst [vmem:[%s3494_s19 + $0x98] sm:$0xff] %v2629_v21  ;;  %v1419_v20 = vadd.f32 %v1324_v14, %v787_v42  ;;  %v1536_v34 = vsel %vm1114_vm0, %v1534_v40, %v1535_v53  ;;  %v1758_v32 = vrot.slane %v999_v35, 1  ;;  %v1247_v26 = vadd.f32 %v1167_v18, %v694_v50 }
 0x129   : > { %v2761_v56 = vadd.f32 %v4221_v16, %v2730_v23  ;;  %v4302_v46 = vadd.f32 %v2691_v9, %v2629_v21  ;;  %v1538_v28 = vsel %vm1114_vm0, %v1535_v53, %v1537_v19  ;;  %v1759_v55 = vrot.slane %v1000_v11, 1 }
 0x12a   : > { %v1761_v36 = vrot.slane %v1001_v13, 1  ;;  %v1951_v25 = vrot.slane %v1418_v62, 2  ;;  %v1952_v27 = vrot.slane %v1419_v20, 2  ;;  %v1642_v33 = vadd.f32 %v1536_v34, %v868_v30 }
 0x12b   : > { %v4305_v17 = vadd.f32 %v2761_v56, %v2731_v24  ;;  %v2512_v57 = vrot.slane %v1048_v39, 2  ;;  %v2513_v51 = vrot.slane %v1049_v49, 2  ;;  %v1760_v42 = vsel %vm1114_vm0, %v1758_v32, %v1759_v55  ;;  %v4337_v56 = vld [vmem:[#allocation2 + $0x138] sm:$0xff] }
 0x12c   : > { %v1762_v15 = vsel %vm1114_vm0, %v1759_v55, %v1761_v36  ;;  %v1953_v16 = vsel %vm1900_vm2, %v1951_v25, %v1952_v27  ;;  %v739_v50 = vmul.f32 %v3255_v44, %v4098_v37  ;;  %v1643_v10 = vadd.f32 %v1538_v28, %v869_v48  ;;  %v4349_v25 = vld [vmem:[#allocation2 + $0x148] sm:$0x3] }
 0x12d   : > { %v1840_v35 = vadd.f32 %v1760_v42, %v956_v6  ;;  %v1841_v8 = vadd.f32 %v1762_v15, %v957_v7  ;;  %v695_v31 = vmul.f32 %v3272_v54, %v4087_v5  ;;  %v788_v30 = vmul.f32 %v3276_v59, %v4098_v37 }
 0x12e   : > { %v870_v11 = vmul.f32 %v3283_v63, %v4183_v41  ;;  %v1050_v13 = vmul.f32 %v3321_v1, %v4263_v43  ;;  %v1168_v0 = vrot.slane %v739_v50, 1  ;;  %v2033_v61 = vadd.f32 %v1953_v16, %v1247_v26  ;;  %v4339_v26 = vld [vmem:[#allocation2 + $0x140] sm:$0xff] }
 0x12f   : > { %v2108_v3 = vrot.slane %v1840_v35, 7  ;;  %v2109_v21 = vrot.slane %v1841_v8, 7  ;;  %v2514_v48 = vsel %vm1900_vm2, %v2512_v57, %v2513_v51  ;;  %v1420_v7 = vadd.f32 %v1323_v45, %v788_v30 }
 0x130   : > { %v1169_v6 = vsel %vm1114_vm0, %v1166_v52, %v1168_v0  ;;  %v1644_v40 = vadd.f32 %v1537_v19, %v870_v11  ;;  %v2515_v5 = vrot.slane %v1050_v13, 2  ;;  %v696_v14 = vmul.f32 %v3272_v54, %v4171_v47 }
 0x131   : > { %v2110_v53 = vsel %vm2077_vm3, %v2108_v3, %v2109_v21  ;;  %v2204_v37 = vadd.f32 %v2108_v3, %v1642_v33  ;;  %v1248_v18 = vadd.f32 %v1169_v6, %v695_v31  ;;  %v1954_v9 = vrot.slane %v1420_v7, 2 }
 0x132   : > { %v2205_v62 = vadd.f32 %v2110_v53, %v1643_v10  ;;  %v2206_v23 = vadd.f32 %v2109_v21, %v1644_v40  ;;  %v740_v39 = vmul.f32 %v3255_v44, %v4171_v47  ;;  %v2516_v24 = vsel %vm1900_vm2, %v2513_v51, %v2515_v5 }
 0x133   : > { %v2320_v49 = vrot.slane %v2204_v37, 1  ;;  %v4330_v52 = vmul.f32 %v3255_v44, %v4173_v38  ;;  %v789_v45 = vmul.f32 %v3276_v59, %v4171_v47  ;;  %v1955_v20 = vsel %vm1900_vm2, %v1952_v27, %v1954_v9 }
 0x134   : > { %v2321_v19 = vrot.slane %v2205_v62, 1  ;;  %v2323_v34 = vrot.slane %v2206_v23, 1  ;;  %v790_v32 = vmul.f32 %v3276_v59, %v4173_v38  ;;  %v2034_v28 = vadd.f32 %v1955_v20, %v1248_v18 }
 0x135   : > { %v827_v55 = vmul.f32 %v3278_v60, %v4251_v58  ;;  %v4345_v36 = vmul.f32 %v3278_v60, %v4261_v29  ;;  %v871_v47 = vmul.f32 %v3283_v63, %v4251_v58  ;;  %v872_v57 = vmul.f32 %v3283_v63, %v4261_v29 }
 0x136   : > { %v2322_v27 = vsel %vm1114_vm0, %v2320_v49, %v2321_v19  ;;  %v2324_v33 = vsel %vm1114_vm0, %v2321_v19, %v2323_v34  ;;  %v920_v51 = vmul.f32 %v3285_v2, %v4251_v58  ;;  %v921_v16 = vmul.f32 %v3285_v2, %v4261_v29 }
 0x137   : > { %v2402_v42 = vadd.f32 %v2322_v27, %v2033_v61  ;;  %v2403_v15 = vadd.f32 %v2324_v33, %v2034_v28  ;;  %v922_v50 = vmul.f32 %v3285_v2, %v4263_v43  ;;  %v958_v10 = vmul.f32 %v3295_v12, %v4337_v56 }
 0x138   : > { %v959_v35 = vmul.f32 %v3295_v12, %v4339_v26  ;;  %v1002_v8 = vmul.f32 %v3307_v22, %v4337_v56  ;;  %v1003_v31 = vmul.f32 %v3307_v22, %v4339_v26  ;;  %v1004_v13 = vmul.f32 %v3307_v22, %v4349_v25 }
 0x139   : > { %v2594_v30 = vadd.f32 %v2514_v48, %v2402_v42  ;;  %v2595_v11 = vadd.f32 %v2516_v24, %v2403_v15  ;;  %v1170_v0 = vrot.slane %v740_v39, 1  ;;  %v1171_v61 = vrot.slane %v4330_v52, 1 }
 0x13a   : > { %v1325_v3 = vrot.slane %v827_v55, 6  ;;  %v1326_v21 = vrot.slane %v4345_v36, 6  ;;  %v1539_v6 = vrot.slane %v920_v51, 1  ;;  %v1540_v5 = vrot.slane %v921_v16, 1 }
 0x13b   : > { %v2630_v7 = vadd.f32 %v4027_v4, %v2594_v30  ;;  %v2631_v40 = vadd.f32 %v4027_v4, %v2595_v11  ;;  %v1542_v53 = vrot.slane %v922_v50, 1  ;;  %v1172_v48 = vsel %vm1114_vm0, %v1170_v0, %v1171_v61 }
 0x13c   : > { %v1327_v37 = vsel %vm1291_vm1, %v1325_v3, %v1326_v21  ;;  %v1421_v18 = vadd.f32 %v1325_v3, %v789_v45  ;;  %v1763_v62 = vrot.slane %v1002_v8, 1  ;;  %v1051_v39 = vmul.f32 %v3321_v1, %v4337_v56 }
 0x13d   : > { %2662 = vst [vmem:[%s3494_s19 + $0xa0] sm:$0xff] %v2630_v7  ;;  %v2693_v9 = vadd.f32 %v4302_v46, %v2630_v7  ;;  %v2732_v23 = vmul.f32 %v2630_v7, %v2630_v7  ;;  %v1052_v49 = vmul.f32 %v3321_v1, %v4339_v26  ;;  %v1422_v24 = vadd.f32 %v1327_v37, %v790_v32 }
 0x13e   : > { %2663 = vst [vmem:[%s3494_s19 + $0xa8] sm:$0xff] %v2631_v40  ;;  %v1541_v52 = vsel %vm1114_vm0, %v1539_v6, %v1540_v5  ;;  %v1543_v19 = vsel %vm1114_vm0, %v1540_v5, %v1542_v53  ;;  %v1764_v20 = vrot.slane %v1003_v31, 1  ;;  %v2733_v28 = vmul.f32 %v2631_v40, %v2631_v40 }
 0x13f   : > { %v2763_v45 = vadd.f32 %v4305_v17, %v2732_v23  ;;  %v4387_v34 = vadd.f32 %v2693_v9, %v2631_v40  ;;  %v1249_v46 = vadd.f32 %v1172_v48, %v696_v14  ;;  %v1766_v36 = vrot.slane %v1004_v13, 1 }
 0x140   : > { %v1765_v55 = vsel %vm1114_vm0, %v1763_v62, %v1764_v20  ;;  %v1956_v27 = vrot.slane %v1421_v18, 2  ;;  %v1957_v33 = vrot.slane %v1422_v24, 2  ;;  %v1645_v42 = vadd.f32 %v1541_v52, %v871_v47 }
 0x141   : > { %v4390_v51 = vadd.f32 %v2763_v45, %v2733_v28  ;;  %v1646_v32 = vadd.f32 %v1543_v19, %v872_v57  ;;  %v1842_v15 = vadd.f32 %v1765_v55, %v958_v10  ;;  %v1767_v16 = vsel %vm1114_vm0, %v1764_v20, %v1766_v36  ;;  %v4421_v19 = vld [vmem:[#allocation2 + $0x150] sm:$0xff]  ;;  %v4423_v20 = vld [vmem:[#allocation2 + $0x158] sm:$0xff] }
 0x142   : > { %v2517_v50 = vrot.slane %v1051_v39, 2  ;;  %v2518_v8 = vrot.slane %v1052_v49, 2  ;;  %v742_v17 = vmul.f32 %v3255_v44, %v4183_v41  ;;  %v1843_v31 = vadd.f32 %v1767_v16, %v959_v35 }
 0x143   : > { %v1958_v14 = vsel %vm1900_vm2, %v1956_v27, %v1957_v33  ;;  %v2111_v30 = vrot.slane %v1842_v15, 7  ;;  %v697_v11 = vmul.f32 %v3272_v54, %v4173_v38  ;;  %v791_v13 = vmul.f32 %v3276_v59, %v4183_v41 }
 0x144   : > { %v873_v47 = vmul.f32 %v3283_v63, %v4263_v43  ;;  %v1053_v57 = vmul.f32 %v3321_v1, %v4349_v25  ;;  %v1173_v10 = vrot.slane %v742_v17, 1  ;;  %v2112_v0 = vrot.slane %v1843_v31, 7 }
 0x145   : > { %v2207_v3 = vadd.f32 %v2111_v30, %v1645_v42  ;;  %v1423_v6 = vadd.f32 %v1326_v21, %v791_v13  ;;  %v2035_v5 = vadd.f32 %v1958_v14, %v1249_v46  ;;  %v2519_v48 = vsel %vm1900_vm2, %v2517_v50, %v2518_v8  ;;  %v4445_v50 = vld [vmem:[#allocation2 + $0x160] sm:$0x3] }
 0x146   : > { %v1174_v35 = vsel %vm1114_vm0, %v1171_v61, %v1173_v10  ;;  %v1647_v7 = vadd.f32 %v1542_v53, %v873_v47  ;;  %v2520_v40 = vrot.slane %v1053_v57, 2  ;;  %v2113_v38 = vsel %vm2077_vm3, %v2111_v30, %v2112_v0 }
 0x147   : > { %v1250_v41 = vadd.f32 %v1174_v35, %v697_v11  ;;  %v2208_v37 = vadd.f32 %v2113_v38, %v1646_v32  ;;  %v2325_v18 = vrot.slane %v2207_v3, 1  ;;  %v1959_v62 = vrot.slane %v1423_v6, 2 }
 0x148   : > { %v2209_v9 = vadd.f32 %v2112_v0, %v1647_v7  ;;  %v2521_v23 = vsel %vm1900_vm2, %v2518_v8, %v2520_v40  ;;  %v4410_v39 = vmul.f32 %v3272_v54, %v4251_v58  ;;  %v743_v61 = vmul.f32 %v3255_v44, %v4251_v58 }
 0x149   : > { %v4416_v21 = vmul.f32 %v3255_v44, %v4261_v29  ;;  %v2326_v53 = vrot.slane %v2208_v37, 1  ;;  %v1960_v49 = vsel %vm1900_vm2, %v1957_v33, %v1959_v62  ;;  %v792_v52 = vmul.f32 %v3276_v59, %v4251_v58 }
 0x14a   : > { %v2328_v24 = vrot.slane %v2209_v9, 1  ;;  %v2036_v45 = vadd.f32 %v1960_v49, %v1250_v41  ;;  %v793_v28 = vmul.f32 %v3276_v59, %v4261_v29  ;;  %v829_v46 = vmul.f32 %v3278_v60, %v4337_v56 }
 0x14b   : > { %v4431_v55 = vmul.f32 %v3278_v60, %v4339_v26  ;;  %v2327_v36 = vsel %vm1114_vm0, %v2325_v18, %v2326_v53  ;;  %v923_v58 = vmul.f32 %v3285_v2, %v4337_v56  ;;  %v924_v33 = vmul.f32 %v3285_v2, %v4339_v26 }
 0x14c   : > { %v2329_v27 = vsel %vm1114_vm0, %v2326_v53, %v2328_v24  ;;  %v2404_v42 = vadd.f32 %v2327_v36, %v2035_v5  ;;  %v874_v15 = vmul.f32 %v3283_v63, %v4337_v56  ;;  %v4443_v16 = vmul.f32 %v3285_v2, %v4349_v25 }
 0x14d   : > { %v2405_v32 = vadd.f32 %v2329_v27, %v2036_v45  ;;  %v875_v8 = vmul.f32 %v3283_v63, %v4339_v26  ;;  %v960_v17 = vmul.f32 %v3295_v12, %v4421_v19  ;;  %v1005_v31 = vmul.f32 %v3307_v22, %v4421_v19 }
 0x14e   : > { %v1006_v14 = vmul.f32 %v3307_v22, %v4423_v20  ;;  %v2596_v30 = vadd.f32 %v2519_v48, %v2404_v42  ;;  %v1175_v13 = vrot.slane %v743_v61, 1  ;;  %v1176_v47 = vrot.slane %v4416_v21, 1 }
 0x14f   : > { %v2597_v11 = vadd.f32 %v2521_v23, %v2405_v32  ;;  %v1328_v57 = vrot.slane %v829_v46, 6  ;;  %v1329_v10 = vrot.slane %v4431_v55, 6  ;;  %v1544_v0 = vrot.slane %v923_v58, 1 }
 0x150   : > { %v1545_v3 = vrot.slane %v924_v33, 1  ;;  %v2632_v35 = vadd.f32 %v4027_v4, %v2596_v30  ;;  %v1007_v7 = vmul.f32 %v3307_v22, %v4445_v50  ;;  %v1547_v40 = vrot.slane %v4443_v16, 1 }
 0x151   : > { %v2633_v6 = vadd.f32 %v4027_v4, %v2597_v11  ;;  %v961_v5 = vmul.f32 %v3295_v12, %v4423_v20  ;;  %v1054_v38 = vmul.f32 %v3321_v1, %v4421_v19  ;;  %v1330_v48 = vsel %vm1291_vm1, %v1328_v57, %v1329_v10 }
 0x152   : > { %v1424_v41 = vadd.f32 %v1328_v57, %v792_v52  ;;  %2664 = vst [vmem:[%s3494_s19 + $0xb0] sm:$0xff] %v2632_v35  ;;  %v2695_v37 = vadd.f32 %v4387_v34, %v2632_v35  ;;  %v2734_v18 = vmul.f32 %v2632_v35, %v2632_v35  ;;  %v1425_v62 = vadd.f32 %v1330_v48, %v793_v28 }
 0x153   : > { %v1546_v4 = vsel %vm1114_vm0, %v1544_v0, %v1545_v3  ;;  %2665 = vst [vmem:[%s3494_s19 + $0xb8] sm:$0xff] %v2633_v6  ;;  %v2735_v9 = vmul.f32 %v2633_v6, %v2633_v6  ;;  %v1177_v23 = vsel %vm1114_vm0, %v1175_v13, %v1176_v47  ;;  %v1768_v61 = vrot.slane %v1005_v31, 1 }
 0x154   : > { %v1769_v21 = vrot.slane %v1006_v14, 1  ;;  %v2765_v53 = vadd.f32 %v4390_v51, %v2734_v18  ;;  %v4473_v49 = vadd.f32 %v2695_v37, %v2633_v6  ;;  %v1548_v24 = vsel %vm1114_vm0, %v1545_v3, %v1547_v40 }
 0x155   : > { %v1771_v52 = vrot.slane %v1007_v7, 1  ;;  %v1055_v34 = vmul.f32 %v3321_v1, %v4423_v20  ;;  %v1648_v45 = vadd.f32 %v1546_v4, %v874_v15  ;;  %v1961_v46 = vrot.slane %v1424_v41, 2 }
 0x156   : > { %v1770_v28 = vsel %vm1114_vm0, %v1768_v61, %v1769_v21  ;;  %v4479_v55 = vadd.f32 %v2765_v53, %v2735_v9  ;;  %v1962_v58 = vrot.slane %v1425_v62, 2  ;;  %v1251_v51 = vadd.f32 %v1177_v23, %v4410_v39 }
 0x157   : > { %v1772_v36 = vsel %vm1114_vm0, %v1769_v21, %v1771_v52  ;;  %v1844_v27 = vadd.f32 %v1770_v28, %v960_v17  ;;  %v1649_v33 = vadd.f32 %v1548_v24, %v875_v8  ;;  %v745_v32 = vmul.f32 %v3255_v44, %v4263_v43 }
 0x158   : > { %v1845_v42 = vadd.f32 %v1772_v36, %v961_v5  ;;  %v2522_v31 = vrot.slane %v1054_v38, 2  ;;  %v699_v15 = vmul.f32 %v3272_v54, %v4261_v29  ;;  %v794_v14 = vmul.f32 %v3276_v59, %v4263_v43  ;;  %v4521_v36 = vld [vmem:[#allocation2 + $0x170] sm:$0xff] }
 0x159   : > { %v2114_v16 = vrot.slane %v1844_v27, 7  ;;  %v876_v17 = vmul.f32 %v3283_v63, %v4349_v25  ;;  %v1056_v39 = vmul.f32 %v3321_v1, %v4445_v50  ;;  %v1178_v8 = vrot.slane %v745_v32, 1  ;;  %v4523_v27 = vld [vmem:[#allocation2 + $0x178] sm:$0x3] }
 0x15a   : > { %v2115_v30 = vrot.slane %v1845_v42, 7  ;;  %v1963_v11 = vsel %vm1900_vm2, %v1961_v46, %v1962_v58  ;;  %v2523_v57 = vrot.slane %v1055_v34, 2  ;;  %v1426_v0 = vadd.f32 %v1329_v10, %v794_v14  ;;  %v4535_v14 = vld [vmem:[%s4768_s4] ss:$0 sm:$0xff] }
 0x15b   : > { %v2210_v13 = vadd.f32 %v2114_v16, %v1648_v45  ;;  %v1179_v29 = vsel %vm1114_vm0, %v1176_v47, %v1178_v8  ;;  %v1650_v35 = vadd.f32 %v1547_v40, %v876_v17  ;;  %v2525_v6 = vrot.slane %v1056_v39, 2  ;;  %v4501_v40 = vld [vmem:[#allocation2 + $0x168] sm:$0xff] }
 0x15c   : > { %v2116_v3 = vsel %vm2077_vm3, %v2114_v16, %v2115_v30  ;;  %v1252_v5 = vadd.f32 %v1179_v29, %v699_v15  ;;  %v1964_v38 = vrot.slane %v1426_v0, 2  ;;  %v2037_v48 = vadd.f32 %v1963_v11, %v1251_v51 }
 0x15d   : > { %v2211_v43 = vadd.f32 %v2116_v3, %v1649_v33  ;;  %v2330_v7 = vrot.slane %v2210_v13, 1  ;;  %v2212_v41 = vadd.f32 %v2115_v30, %v1650_v35  ;;  %v2524_v18 = vsel %vm1900_vm2, %v2522_v31, %v2523_v57 }
 0x15e   : > { %v1965_v62 = vsel %vm1900_vm2, %v1962_v58, %v1964_v38  ;;  %v2526_v10 = vsel %vm1900_vm2, %v2523_v57, %v2525_v6  ;;  %v746_v47 = vmul.f32 %v3255_v44, %v4337_v56  ;;  %v4506_v61 = vmul.f32 %v3255_v44, %v4339_v26 }
 0x15f   : > { %v2331_v37 = vrot.slane %v2211_v43, 1  ;;  %v2038_v4 = vadd.f32 %v1965_v62, %v1252_v5  ;;  %v2333_v9 = vrot.slane %v2212_v41, 1  ;;  %v831_v21 = vmul.f32 %v3278_v60, %v4421_v19 }
 0x160   : > { %v4512_v53 = vmul.f32 %v3278_v60, %v4423_v20  ;;  %v926_v34 = vmul.f32 %v3285_v2, %v4421_v19  ;;  %v927_v45 = vmul.f32 %v3285_v2, %v4423_v20  ;;  %v928_v46 = vmul.f32 %v3285_v2, %v4445_v50 }
 0x161   : > { %v2332_v23 = vsel %vm1114_vm0, %v2330_v7, %v2331_v37  ;;  %v2334_v52 = vsel %vm1114_vm0, %v2331_v37, %v2333_v9  ;;  %v795_v51 = vmul.f32 %v3276_v59, %v4337_v56  ;;  %v796_v33 = vmul.f32 %v3276_v59, %v4339_v26 }
 0x162   : > { %v2406_v24 = vadd.f32 %v2332_v23, %v2037_v48  ;;  %v2407_v28 = vadd.f32 %v2334_v52, %v2038_v4  ;;  %v1008_v42 = vmul.f32 %v3307_v22, %v4501_v40  ;;  %v1180_v16 = vrot.slane %v746_v47, 1 }
 0x163   : > { %v1181_v31 = vrot.slane %v4506_v61, 1  ;;  %v1331_v15 = vrot.slane %v831_v21, 6  ;;  %v1332_v17 = vrot.slane %v4512_v53, 6  ;;  %v1549_v39 = vrot.slane %v926_v34, 1 }
 0x164   : > { %v2598_v58 = vadd.f32 %v2524_v18, %v2406_v24  ;;  %v2599_v32 = vadd.f32 %v2526_v10, %v2407_v28  ;;  %v1550_v8 = vrot.slane %v927_v45, 1  ;;  %v1009_v13 = vmul.f32 %v3307_v22, %v4521_v36 }
 0x165   : > { %v1010_v57 = vmul.f32 %v3307_v22, %v4523_v27  ;;  %v1552_v0 = vrot.slane %v928_v46, 1  ;;  %v700_v3 = vmul.f32 %v3272_v54, %v4337_v56  ;;  %v1333_v29 = vsel %vm1291_vm1, %v1331_v15, %v1332_v17 }
 0x166   : > { %v2634_v30 = vadd.f32 %v4535_v14, %v2598_v58  ;;  %v4540_v11 = vadd.f32 %v4535_v14, %v2599_v32  ;;  %v1427_v35 = vadd.f32 %v1331_v15, %v795_v51  ;;  %v877_v6 = vmul.f32 %v3283_v63, %v4421_v19 }
 0x167   : > { %v1182_v43 = vsel %vm1114_vm0, %v1180_v16, %v1181_v31  ;;  %v1428_v7 = vadd.f32 %v1333_v29, %v796_v33  ;;  %v878_v5 = vmul.f32 %v3283_v63, %v4423_v20  ;;  %v962_v38 = vmul.f32 %v3295_v12, %v4501_v40 }
 0x168   : > { %2666 = vst [vmem:[%s3494_s19 + $0xc0] sm:$0xff] %v2634_v30  ;;  %v963_v56 = vmul.f32 %v3295_v12, %v4521_v36  ;;  %v1551_v48 = vsel %vm1114_vm0, %v1549_v39, %v1550_v8  ;;  %v1553_v41 = vsel %vm1114_vm0, %v1550_v8, %v1552_v0  ;;  %v1773_v37 = vrot.slane %v1008_v42, 1 }
 0x169   : > { %2667 = vst [vmem:[%s3494_s19 + $0xc8] sm:$0xff] %v4540_v11  ;;  %v1774_v18 = vrot.slane %v1009_v13, 1  ;;  %v1776_v62 = vrot.slane %v1010_v57, 1  ;;  %v1057_v4 = vmul.f32 %v3321_v1, %v4501_v40  ;;  %v1058_v9 = vmul.f32 %v3321_v1, %v4521_v36 }
 0x16a   : > { %v1253_v10 = vadd.f32 %v1182_v43, %v700_v3  ;;  %v1966_v47 = vrot.slane %v1427_v35, 2  ;;  %v1967_v21 = vrot.slane %v1428_v7, 2  ;;  %v748_v53 = vmul.f32 %v3255_v44, %v4349_v25 }
 0x16b   : > { %v1775_v23 = vsel %vm1114_vm0, %v1773_v37, %v1774_v18  ;;  %v1777_v61 = vsel %vm1114_vm0, %v1774_v18, %v1776_v62  ;;  %v1651_v24 = vadd.f32 %v1551_v48, %v877_v6  ;;  %v1652_v52 = vadd.f32 %v1553_v41, %v878_v5 }
 0x16c   : > { %v1846_v34 = vadd.f32 %v1775_v23, %v962_v38  ;;  %v1847_v45 = vadd.f32 %v1777_v61, %v963_v56  ;;  %v701_v28 = vmul.f32 %v3272_v54, %v4339_v26  ;;  %v797_v46 = vmul.f32 %v3276_v59, %v4349_v25 }
 0x16d   : > { %v879_v58 = vmul.f32 %v3283_v63, %v4445_v50  ;;  %v1059_v51 = vmul.f32 %v3321_v1, %v4523_v27  ;;  %v2527_v32 = vrot.slane %v1057_v4, 2  ;;  %v1183_v16 = vrot.slane %v748_v53, 1  ;;  %v4594_v4 = vld [vmem:[#allocation2 + $0x180] sm:$0xff] }
 0x16e   : > { %v2117_v33 = vrot.slane %v1846_v34, 7  ;;  %v2118_v42 = vrot.slane %v1847_v45, 7  ;;  %v1968_v15 = vsel %vm1900_vm2, %v1966_v47, %v1967_v21  ;;  %v2528_v39 = vrot.slane %v1058_v9, 2 }
 0x16f   : > { %v1429_v8 = vadd.f32 %v1332_v17, %v797_v46  ;;  %v1653_v13 = vadd.f32 %v1552_v0, %v879_v58  ;;  %v1184_v25 = vsel %vm1114_vm0, %v1181_v31, %v1183_v16  ;;  %v2530_v3 = vrot.slane %v1059_v51, 2  ;;  %v4613_v46 = vld [vmem:[#allocation2 + $0x188] sm:$0xff]  ;;  %v4615_v58 = vld [vmem:[#allocation2 + $0x190] sm:$0x3] }
 0x170   : > { %v2119_v26 = vsel %vm2077_vm3, %v2117_v33, %v2118_v42  ;;  %v2213_v57 = vadd.f32 %v2117_v33, %v1651_v24  ;;  %v1254_v35 = vadd.f32 %v1184_v25, %v701_v28  ;;  %v2697_v7 = vadd.f32 %v4473_v49, %v2634_v30 }
 0x171   : > { %v2214_v29 = vadd.f32 %v2119_v26, %v1652_v52  ;;  %v1969_v6 = vrot.slane %v1429_v8, 2  ;;  %v2215_v43 = vadd.f32 %v2118_v42, %v1653_v13  ;;  %v2736_v5 = vmul.f32 %v2634_v30, %v2634_v30 }
 0x172   : > { %v2039_v38 = vadd.f32 %v1968_v15, %v1253_v10  ;;  %v2335_v56 = vrot.slane %v2213_v57, 1  ;;  %v2529_v41 = vsel %vm1900_vm2, %v2527_v32, %v2528_v39  ;;  %v2531_v18 = vsel %vm1900_vm2, %v2528_v39, %v2530_v3 }
 0x173   : > { %v2336_v48 = vrot.slane %v2214_v29, 1  ;;  %v1970_v17 = vsel %vm1900_vm2, %v1967_v21, %v1969_v6  ;;  %v2338_v0 = vrot.slane %v2215_v43, 1  ;;  %v749_v31 = vmul.f32 %v3255_v44, %v4421_v19 }
 0x174   : > { %v2040_v37 = vadd.f32 %v1970_v17, %v1254_v35  ;;  %v4590_v62 = vmul.f32 %v3255_v44, %v4423_v20  ;;  %v833_v9 = vmul.f32 %v3278_v60, %v4501_v40  ;;  %v4600_v10 = vmul.f32 %v3278_v60, %v4521_v36 }
 0x175   : > { %v2337_v49 = vsel %vm1114_vm0, %v2335_v56, %v2336_v48  ;;  %v2339_v30 = vsel %vm1114_vm0, %v2336_v48, %v2338_v0  ;;  %v929_v61 = vmul.f32 %v3285_v2, %v4501_v40  ;;  %v930_v21 = vmul.f32 %v3285_v2, %v4521_v36 }
 0x176   : > { %v2408_v47 = vadd.f32 %v2337_v49, %v2039_v38  ;;  %v2409_v23 = vadd.f32 %v2339_v30, %v2040_v37  ;;  %v2767_v53 = vadd.f32 %v4479_v55, %v2736_v5  ;;  %v2737_v24 = vmul.f32 %v4540_v11, %v4540_v11 }
 0x177   : > { %v798_v52 = vmul.f32 %v3276_v59, %v4421_v19  ;;  %v931_v34 = vmul.f32 %v3285_v2, %v4523_v27  ;;  %v799_v51 = vmul.f32 %v3276_v59, %v4423_v20  ;;  %v1011_v55 = vmul.f32 %v3307_v22, %v4594_v4 }
 0x178   : > { %v2600_v45 = vadd.f32 %v2529_v41, %v2408_v47  ;;  %v2601_v28 = vadd.f32 %v2531_v18, %v2409_v23  ;;  %v1185_v33 = vrot.slane %v749_v31, 1  ;;  %v1186_v42 = vrot.slane %v4590_v62, 1 }
 0x179   : > { %v1334_v32 = vrot.slane %v833_v9, 6  ;;  %v1335_v16 = vrot.slane %v4600_v10, 6  ;;  %v1554_v8 = vrot.slane %v929_v61, 1  ;;  %v1555_v13 = vrot.slane %v930_v21, 1 }
 0x17a   : > { %v4624_v15 = vadd.f32 %v4535_v14, %v2600_v45  ;;  %v4627_v39 = vadd.f32 %v4535_v14, %v2601_v28  ;;  %v1012_v26 = vmul.f32 %v3307_v22, %v4613_v46  ;;  %v1013_v57 = vmul.f32 %v3307_v22, %v4615_v58 }
 0x17b   : > { %v1336_v25 = vsel %vm1291_vm1, %v1334_v32, %v1335_v16  ;;  %v1557_v3 = vrot.slane %v931_v34, 1  ;;  %v2698_v29 = vadd.f32 %v2697_v7, %v4540_v11  ;;  %v702_v35 = vmul.f32 %v3272_v54, %v4421_v19 }
 0x17c   : > { %2668 = vst [vmem:[%s3494_s19 + $0xd0] sm:$0xff] %v4624_v15  ;;  %v880_v6 = vmul.f32 %v3283_v63, %v4501_v40  ;;  %v1430_v43 = vadd.f32 %v1334_v32, %v798_v52  ;;  %v1187_v5 = vsel %vm1114_vm0, %v1185_v33, %v1186_v42  ;;  %v1431_v38 = vadd.f32 %v1336_v25, %v799_v51 }
 0x17d   : > { %2669 = vst [vmem:[%s3494_s19 + $0xd8] sm:$0xff] %v4627_v39  ;;  %v1556_v56 = vsel %vm1114_vm0, %v1554_v8, %v1555_v13  ;;  %v1778_v48 = vrot.slane %v1011_v55, 1  ;;  %v4645_v41 = vadd.f32 %v2767_v53, %v2737_v24  ;;  %v881_v11 = vmul.f32 %v3283_v63, %v4521_v36 }
 0x17e   : > { %v964_v19 = vmul.f32 %v3295_v12, %v4594_v4  ;;  %v965_v7 = vmul.f32 %v3295_v12, %v4613_v46  ;;  %v1060_v17 = vmul.f32 %v3321_v1, %v4594_v4  ;;  %v1558_v0 = vsel %vm1114_vm0, %v1555_v13, %v1557_v3 }
 0x17f   : > { %v1779_v37 = vrot.slane %v1012_v26, 1  ;;  %v1781_v18 = vrot.slane %v1013_v57, 1  ;;  %v1061_v31 = vmul.f32 %v3321_v1, %v4613_v46  ;;  %v1255_v62 = vadd.f32 %v1187_v5, %v702_v35 }
 0x180   : > { %v1654_v49 = vadd.f32 %v1556_v56, %v880_v6  ;;  %v1971_v30 = vrot.slane %v1430_v43, 2  ;;  %v1972_v47 = vrot.slane %v1431_v38, 2  ;;  %v751_v23 = vmul.f32 %v3255_v44, %v4445_v50 }
 0x181   : > { %v1780_v9 = vsel %vm1114_vm0, %v1778_v48, %v1779_v37  ;;  %v1782_v10 = vsel %vm1114_vm0, %v1779_v37, %v1781_v18  ;;  %v1655_v61 = vadd.f32 %v1558_v0, %v881_v11  ;;  %v703_v24 = vmul.f32 %v3272_v54, %v4423_v20  ;;  %v669_v0 = vld [vmem:[#allocation2 + $0x1a8] sm:$0x3] }
 0x182   : > { %v1848_v21 = vadd.f32 %v1780_v9, %v964_v19  ;;  %v1849_v53 = vadd.f32 %v1782_v10, %v965_v7  ;;  %v800_v52 = vmul.f32 %v3276_v59, %v4445_v50  ;;  %v882_v34 = vmul.f32 %v3283_v63, %v4523_v27 }
 0x183   : > { %v1062_v45 = vmul.f32 %v3321_v1, %v4615_v58  ;;  %v1188_v28 = vrot.slane %v751_v23, 1  ;;  %v2532_v33 = vrot.slane %v1060_v17, 2  ;;  %v2533_v32 = vrot.slane %v1061_v31, 2 }
 0x184   : > { %v2120_v51 = vrot.slane %v1848_v21, 7  ;;  %v2121_v55 = vrot.slane %v1849_v53, 7  ;;  %v1973_v8 = vsel %vm1900_vm2, %v1971_v30, %v1972_v47  ;;  %v1432_v26 = vadd.f32 %v1335_v16, %v800_v52  ;;  %v3008_v21 = vld [vmem:[#allocation2] sm:$0xff] }
 0x185   : > { %v1189_v13 = vsel %vm1114_vm0, %v1186_v42, %v1188_v28  ;;  %v1656_v20 = vadd.f32 %v1557_v3, %v882_v34  ;;  %v2535_v35 = vrot.slane %v1062_v45, 2  ;;  %v2699_v6 = vadd.f32 %v2698_v29, %v4624_v15 }
 0x186   : > { %v2122_v57 = vsel %vm2077_vm3, %v2120_v51, %v2121_v55  ;;  %v2216_v50 = vadd.f32 %v2120_v51, %v1654_v49  ;;  %v1256_v25 = vadd.f32 %v1189_v13, %v703_v24  ;;  %v1974_v5 = vrot.slane %v1432_v26, 2 }
 0x187   : > { %v2217_v43 = vadd.f32 %v2122_v57, %v1655_v61  ;;  %v2218_v38 = vadd.f32 %v2121_v55, %v1656_v20  ;;  %v2041_v56 = vadd.f32 %v1973_v8, %v1255_v62  ;;  %v2534_v11 = vsel %vm1900_vm2, %v2532_v33, %v2533_v32 }
 0x188   : > { %v2340_v48 = vrot.slane %v2216_v50, 1  ;;  %v752_v19 = vmul.f32 %v3255_v44, %v4501_v40  ;;  %v1975_v16 = vsel %vm1900_vm2, %v1972_v47, %v1974_v5  ;;  %v4680_v7 = vmul.f32 %v3255_v44, %v4521_v36 }
 0x189   : > { %v2341_v42 = vrot.slane %v2217_v43, 1  ;;  %v2343_v3 = vrot.slane %v2218_v38, 1  ;;  %v2042_v17 = vadd.f32 %v1975_v16, %v1256_v25  ;;  %v2536_v29 = vsel %vm1900_vm2, %v2533_v32, %v2535_v35 }
 0x18a   : > { %v835_v37 = vmul.f32 %v3278_v60, %v4594_v4  ;;  %v836_v18 = vmul.f32 %v3278_v60, %v4613_v46  ;;  %v932_v49 = vmul.f32 %v3285_v2, %v4594_v4  ;;  %v933_v30 = vmul.f32 %v3285_v2, %v4613_v46 }
 0x18b   : > { %v2342_v31 = vsel %vm1114_vm0, %v2340_v48, %v2341_v42  ;;  %v2344_v62 = vsel %vm1114_vm0, %v2341_v42, %v2343_v3  ;;  %v2738_v9 = vmul.f32 %v4624_v15, %v4624_v15  ;;  %v934_v23 = vmul.f32 %v3285_v2, %v4615_v58 }
 0x18c   : > { %v2410_v10 = vadd.f32 %v2342_v31, %v2041_v56  ;;  %v2411_v47 = vadd.f32 %v2344_v62, %v2042_v17  ;;  %v801_v60 = vmul.f32 %v3276_v59, %v4501_v40  ;;  %v802_v61 = vmul.f32 %v3276_v59, %v4521_v36 }
 0x18d   : > { %v1014_v53 = vmul.f32 %v3008_v21, %v3307_v22  ;;  %v1016_v24 = vmul.f32 %v3307_v22, %v669_v0  ;;  %v1337_v15 = vrot.slane %v835_v37, 6  ;;  %v1338_v45 = vrot.slane %v836_v18, 6 }
 0x18e   : > { %v2602_v52 = vadd.f32 %v2534_v11, %v2410_v10  ;;  %v2603_v34 = vadd.f32 %v2536_v29, %v2411_v47  ;;  %v1190_v28 = vrot.slane %v752_v19, 1  ;;  %v1191_v51 = vrot.slane %v4680_v7, 1 }
 0x18f   : > { %v1559_v2 = vrot.slane %v932_v49, 1  ;;  %v1560_v55 = vrot.slane %v933_v30, 1  ;;  %v1339_v8 = vsel %vm1291_vm1, %v1337_v15, %v1338_v45  ;;  %v1562_v13 = vrot.slane %v934_v23, 1 }
 0x190   : > { %v2638_v33 = vadd.f32 %v4535_v14, %v2602_v52  ;;  %v4706_v32 = vadd.f32 %v4535_v14, %v2603_v34  ;;  %v2769_v22 = vadd.f32 %v4645_v41, %v2738_v9  ;;  %v2739_v26 = vmul.f32 %v4627_v39, %v4627_v39 }
 0x191   : > { %v1433_v20 = vadd.f32 %v1337_v15, %v801_v60  ;;  %v1434_v57 = vadd.f32 %v1339_v8, %v802_v61  ;;  %v704_v50 = vmul.f32 %v3272_v54, %v4501_v40  ;;  %v883_v25 = vmul.f32 %v3283_v63, %v4594_v4 }
 0x192   : > { %2670 = vst [vmem:[%s3494_s19 + $0xe0] sm:$0xff] %v2638_v33  ;;  %v884_v35 = vmul.f32 %v3283_v63, %v4613_v46  ;;  %v966_v43 = vmul.f32 %v3008_v21, %v3295_v12  ;;  %v1192_v41 = vsel %vm1114_vm0, %v1190_v28, %v1191_v51  ;;  %v1561_v5 = vsel %vm1114_vm0, %v1559_v2, %v1560_v55 }
 0x193   : > { %2671 = vst [vmem:[%s3494_s19 + $0xe8] sm:$0xff] %v4706_v32  ;;  %v1783_v38 = vrot.slane %v1014_v53, 1  ;;  %v1786_v56 = vrot.slane %v1016_v24, 1  ;;  %v2700_v48 = vadd.f32 %v2699_v6, %v4627_v39  ;;  %v1063_v40 = vmul.f32 %v3008_v21, %v3321_v1 }
 0x194   : > { %v1563_v11 = vsel %vm1114_vm0, %v1560_v55, %v1562_v13  ;;  %v1976_v4 = vrot.slane %v1433_v20, 2  ;;  %v1977_v46 = vrot.slane %v1434_v57, 2  ;;  %v754_v12 = vmul.f32 %v3255_v44, %v4523_v27 }
 0x195   : > { %v1787_v19 = vsel %vm1114_vm0, %v1783_v38, %v1786_v56  ;;  %v1257_v42 = vadd.f32 %v1192_v41, %v704_v50  ;;  %v1657_v16 = vadd.f32 %v1561_v5, %v883_v25  ;;  %v1850_v3 = vadd.f32 %v1783_v38, %v966_v43 }
 0x196   : > { %v1851_v7 = vadd.f32 %v1787_v19, %v966_v43  ;;  %v1658_v17 = vadd.f32 %v1563_v11, %v884_v35  ;;  %v705_v29 = vmul.f32 %v3272_v54, %v4521_v36  ;;  %v803_v39 = vmul.f32 %v3276_v59, %v4523_v27 }
 0x197   : > { %v885_v6 = vmul.f32 %v3283_v63, %v4615_v58  ;;  %v2123_v37 = vrot.slane %v1850_v3, 7  ;;  %v1065_v31 = vmul.f32 %v3321_v1, %v669_v0  ;;  %v1193_v62 = vrot.slane %v754_v12, 1 }
 0x198   : > { %v2124_v18 = vrot.slane %v1851_v7, 7  ;;  %v1978_v44 = vsel %vm1900_vm2, %v1976_v4, %v1977_v46  ;;  %v2537_v49 = vrot.slane %v1063_v40, 2  ;;  %v1435_v30 = vadd.f32 %v1338_v45, %v803_v39 }
 0x199   : > { %v1659_v9 = vadd.f32 %v1562_v13, %v885_v6  ;;  %v2219_v47 = vadd.f32 %v2123_v37, %v1657_v16  ;;  %v1194_v54 = vsel %vm1114_vm0, %v1191_v51, %v1193_v62  ;;  %v2540_v36 = vrot.slane %v1065_v31, 2 }
 0x19a   : > { %v2125_v10 = vsel %vm2077_vm3, %v2123_v37, %v2124_v18  ;;  %v1258_v27 = vadd.f32 %v1194_v54, %v705_v29  ;;  %v1979_v23 = vrot.slane %v1435_v30, 2  ;;  %v2770_v58 = vadd.f32 %v2769_v22, %v2739_v26 }
 0x19b   : > { %v2220_v59 = vadd.f32 %v2125_v10, %v1658_v17  ;;  %v2221_v63 = vadd.f32 %v2124_v18, %v1659_v9  ;;  %v2043_v60 = vadd.f32 %v1978_v44, %v1257_v42  ;;  %v2345_v61 = vrot.slane %v2219_v47, 1 }
 0x19c   : > { %v1980_v0 = vsel %vm1900_vm2, %v1977_v46, %v1979_v23  ;;  %v2701_v53 = vadd.f32 %v2700_v48, %v2638_v33  ;;  %v2740_v24 = vmul.f32 %v2638_v33, %v2638_v33  ;;  %v2541_v45 = vsel %vm1900_vm2, %v2537_v49, %v2540_v36 }
 0x19d   : > { %v2346_v1 = vrot.slane %v2220_v59, 1  ;;  %v2348_v21 = vrot.slane %v2221_v63, 1  ;;  %v2044_v52 = vadd.f32 %v1980_v0, %v1258_v27  ;;  %v2741_v8 = vmul.f32 %v4706_v32, %v4706_v32 }
 0x19e   : > { %v2771_v28 = vadd.f32 %v2770_v58, %v2740_v24  ;;  %v2702_v55 = vadd.f32 %v2701_v53, %v4706_v32 }
 0x19f   : > { %v2347_v34 = vsel %vm1114_vm0, %v2345_v61, %v2346_v1  ;;  %v2349_v15 = vsel %vm1114_vm0, %v2346_v1, %v2348_v21 }
 0x1a0   : > { %v2412_v51 = vadd.f32 %v2347_v34, %v2043_v60  ;;  %v2413_v2 = vadd.f32 %v2349_v15, %v2044_v52  ;;  %v2772_v26 = vadd.f32 %v2771_v28, %v2741_v8 }
 0x1a2   : > { %v2604_v13 = vadd.f32 %v2537_v49, %v2412_v51  ;;  %v2605_v22 = vadd.f32 %v2541_v45, %v2413_v2 }
 0x1a4   : > { %v2640_v33 = vadd.f32 %v4535_v14, %v2604_v13  ;;  %v2641_v20 = vadd.f32 %v4535_v14, %v2605_v22 }
 0x1a6   : > { %2672 = vst [vmem:[%s3494_s19 + $0xf0] sm:$0xff] %v2640_v33  ;;  %v2703_v57 = vadd.f32 %v2702_v55, %v2640_v33  ;;  %v2742_v50 = vmul.f32 %v2640_v33, %v2640_v33  ;;  %v2743_v25 = vmul.f32 %v2641_v20, %v2641_v20 }
 0x1a7   : > { %2673 = vst [vmem:[%s3494_s19 + $0xf8] sm:$0xff] %v2641_v20 }
 0x1a8   : > { %v2704_v35 = vadd.f32 %v2703_v57, %v2641_v20  ;;  %v2773_v43 = vadd.f32 %v2772_v26, %v2742_v50 }
 0x1aa   : > { %v2705_v41 = vrot.slane %v2704_v35, 4  ;;  %v2774_v5 = vadd.f32 %v2773_v43, %v2743_v25 }
 0x1ac   : > { %v2706_v38 = vadd.f32 %v2705_v41, %v2704_v35  ;;  %v2775_v56 = vrot.slane %v2774_v5, 4 }
 0x1ae   : > { %v2707_v32 = vrot.slane %v2706_v38, 2  ;;  %v2776_v48 = vadd.f32 %v2775_v56, %v2774_v5 }
 0x1b0   : > { %v2708_v40 = vadd.f32 %v2707_v32, %v2706_v38  ;;  %v2777_v11 = vrot.slane %v2776_v48, 2 }
 0x1b2   : > { %v2709_v4 = vrot.slane %v2708_v40, 1  ;;  %v2778_v19 = vadd.f32 %v2777_v11, %v2776_v48 }
 0x1b4   : > { %v2710_v14 = vadd.f32 %v2709_v4, %v2708_v40  ;;  %v2779_v46 = vrot.slane %v2778_v19, 1 }
 0x1b6   : > { %2711 = vst [vmem:[%s360_s11] sm:$0x1] %v2710_v14  ;;  %v2780_v12 = vadd.f32 %v2779_v46, %v2778_v19 }
 0x1b8   : > { %2781 = vst [vmem:[%s360_s11 + $0x1] sm:$0x1] %v2780_v12 }
 0x1b9 PF: > { %s17_s23 = sadd.s32 1, %s3031_s23   ;;  %s4771_s21 = smov %s3027_s22 }
 0x1ba   : > { %p14_p5 = scmp.ge.s32.totalorder %s17_s23, 4   ;;  %s4772_s22 = smov %s4774_s24 }
 0x1bc   :  { %16 = sbr.rel (!%p14_p5) target bundleno = 2 (0x2), region = 95 }

// kernel: _lambda_.11
= control target key start
LH: loop header
LB: loop body
LE: loop exit
PB: predicated region body
PF: predicated region fallthrough
CT: control target
= control target key end

     0   :  { %s1154_s0 = inlined_call_operand.vmem [shape: f32[512,128], index: 0, kind: input, shape index: {}]   ;;  %s1155_s1 = inlined_call_operand.vmem [shape: f32[1,128], index: 1, kind: input, shape index: {}]   ;;  %s1156_s2 = inlined_call_operand.vmem [shape: f32[1,128], index: 2, kind: input, shape index: {}]   ;;  %s1157_s3 = inlined_call_operand.vmem [shape: f32[512,128], index: 3, kind: input, shape index: {}]   ;;  %s1158_s4 = inlined_call_operand.vmem [shape: f32[512,128], index: 4, kind: output, shape index: {}]  }
   0x1   :  { %v17_v0 = vld [vmem:[%s1154_s0] sm:$0xff]  ;;  %v18_v4 = vld [vmem:[%s1154_s0 + $0x8] sm:$0xff]  ;;  %v19_v5 = vld [vmem:[%s1154_s0 + $0x10] sm:$0xff] }
   0x2   :  { %v446_v1 = vld [vmem:[%s1155_s1] ss:$0 sm:$0xff]  ;;  %v218_v8 = vld [vmem:[%s1157_s3 + $0x8] sm:$0xff]  ;;  %v20_v10 = vld [vmem:[%s1154_s0 + $0x18] sm:$0xff] }
   0x3   :  { %v451_v2 = vld [vmem:[%s1156_s2] ss:$0 sm:$0xff]  ;;  %v85_v3 = vmul.f32 %v446_v1, %v17_v0  ;;  %v86_v7 = vmul.f32 %v446_v1, %v18_v4  ;;  %v87_v9 = vmul.f32 %v446_v1, %v19_v5  ;;  %v219_v12 = vld [vmem:[%s1157_s3 + $0x10] sm:$0xff]  ;;  %v88_v13 = vmul.f32 %v446_v1, %v20_v10  ;;  %v22_v15 = vld [vmem:[%s1154_s0 + $0x28] sm:$0xff] }
   0x4   :  { %v217_v6 = vld [vmem:[%s1157_s3] sm:$0xff]  ;;  %v220_v18 = vld [vmem:[%s1157_s3 + $0x18] sm:$0xff]  ;;  %v90_v21 = vmul.f32 %v446_v1, %v22_v15  ;;  %v23_v22 = vld [vmem:[%s1154_s0 + $0x30] sm:$0xff] }
   0x5   :  { %v153_v11 = vadd.f32 %v451_v2, %v85_v3  ;;  %v21_v14 = vld [vmem:[%s1154_s0 + $0x20] sm:$0xff]  ;;  %v154_v16 = vadd.f32 %v451_v2, %v86_v7  ;;  %v155_v17 = vadd.f32 %v451_v2, %v87_v9  ;;  %v156_v24 = vadd.f32 %v451_v2, %v88_v13  ;;  %v222_v25 = vld [vmem:[%s1157_s3 + $0x28] sm:$0xff]  ;;  %v24_v27 = vld [vmem:[%s1154_s0 + $0x38] sm:$0xff] }
   0x6   :  { %v89_v19 = vmul.f32 %v446_v1, %v21_v14  ;;  %v221_v20 = vld [vmem:[%s1157_s3 + $0x20] sm:$0xff]  ;;  %v91_v26 = vmul.f32 %v446_v1, %v23_v22  ;;  %v158_v32 = vadd.f32 %v451_v2, %v90_v21  ;;  %v223_v33 = vld [vmem:[%s1157_s3 + $0x30] sm:$0xff]  ;;  %v26_v34 = vld [vmem:[%s1154_s0 + $0x48] sm:$0xff]  ;;  %v92_v37 = vmul.f32 %v446_v1, %v24_v27 }
   0x7   :  { %v281_v23 = vadd.f32 %v217_v6, %v153_v11  ;;  %v25_v28 = vld [vmem:[%s1154_s0 + $0x40] sm:$0xff]  ;;  %v282_v29 = vadd.f32 %v218_v8, %v154_v16  ;;  %v283_v30 = vadd.f32 %v219_v12, %v155_v17  ;;  %v284_v35 = vadd.f32 %v220_v18, %v156_v24  ;;  %v27_v39 = vld [vmem:[%s1154_s0 + $0x50] sm:$0xff]  ;;  %v28_v40 = vld [vmem:[%s1154_s0 + $0x58] sm:$0xff] }
   0x8   :  { %v157_v31 = vadd.f32 %v451_v2, %v89_v19  ;;  %v159_v36 = vadd.f32 %v451_v2, %v91_v26  ;;  %v93_v38 = vmul.f32 %v446_v1, %v25_v28  ;;  %v286_v42 = vadd.f32 %v222_v25, %v158_v32  ;;  %v224_v43 = vld [vmem:[%s1157_s3 + $0x38] sm:$0xff]  ;;  %v225_v44 = vld [vmem:[%s1157_s3 + $0x40] sm:$0xff]  ;;  %v226_v51 = vld [vmem:[%s1157_s3 + $0x48] sm:$0xff] }
   0x9   :  { %345 = vst [vmem:[%s1158_s4] sm:$0xff] %v281_v23  ;;  %v94_v45 = vmul.f32 %v446_v1, %v26_v34  ;;  %v95_v46 = vmul.f32 %v446_v1, %v27_v39  ;;  %v29_v47 = vld [vmem:[%s1154_s0 + $0x60] sm:$0xff]  ;;  %v160_v49 = vadd.f32 %v451_v2, %v92_v37  ;;  %v96_v52 = vmul.f32 %v446_v1, %v28_v40  ;;  %v30_v53 = vld [vmem:[%s1154_s0 + $0x68] sm:$0xff]  ;;  %v31_v54 = vld [vmem:[%s1154_s0 + $0x70] sm:$0xff] }
   0xa   :  { %346 = vst [vmem:[%s1158_s4 + $0x8] sm:$0xff] %v282_v29  ;;  %v285_v41 = vadd.f32 %v221_v20, %v157_v31  ;;  %v287_v48 = vadd.f32 %v223_v33, %v159_v36  ;;  %v161_v50 = vadd.f32 %v451_v2, %v93_v38  ;;  %v227_v57 = vld [vmem:[%s1157_s3 + $0x50] sm:$0xff]  ;;  %v97_v58 = vmul.f32 %v446_v1, %v29_v47  ;;  %v32_v60 = vld [vmem:[%s1154_s0 + $0x78] sm:$0xff]  ;;  %v33_v4 = vld [vmem:[%s1154_s0 + $0x80] sm:$0xff] }
   0xb   :  { %347 = vst [vmem:[%s1158_s4 + $0x10] sm:$0xff] %v283_v30  ;;  %v162_v55 = vadd.f32 %v451_v2, %v94_v45  ;;  %v163_v56 = vadd.f32 %v451_v2, %v95_v46  ;;  %v98_v59 = vmul.f32 %v446_v1, %v30_v53  ;;  %v288_v61 = vadd.f32 %v224_v43, %v160_v49  ;;  %v228_v0 = vld [vmem:[%s1157_s3 + $0x58] sm:$0xff]  ;;  %v34_v5 = vld [vmem:[%s1154_s0 + $0x88] sm:$0xff]  ;;  %v229_v8 = vld [vmem:[%s1157_s3 + $0x60] sm:$0xff] }
   0xc   :  { %348 = vst [vmem:[%s1158_s4 + $0x18] sm:$0xff] %v284_v35  ;;  %v289_v62 = vadd.f32 %v225_v44, %v161_v50  ;;  %v164_v63 = vadd.f32 %v451_v2, %v96_v52  ;;  %v99_v3 = vmul.f32 %v446_v1, %v31_v54  ;;  %v165_v7 = vadd.f32 %v451_v2, %v97_v58  ;;  %v35_v10 = vld [vmem:[%s1154_s0 + $0x90] sm:$0xff]  ;;  %v230_v12 = vld [vmem:[%s1157_s3 + $0x68] sm:$0xff]  ;;  %v36_v16 = vld [vmem:[%s1154_s0 + $0x98] sm:$0xff] }
   0xd   :  { %349 = vst [vmem:[%s1158_s4 + $0x20] sm:$0xff] %v285_v41  ;;  %v290_v6 = vadd.f32 %v226_v51, %v162_v55  ;;  %v166_v9 = vadd.f32 %v451_v2, %v98_v59  ;;  %v291_v11 = vadd.f32 %v227_v57, %v163_v56  ;;  %v100_v14 = vmul.f32 %v446_v1, %v32_v60  ;;  %v37_v17 = vld [vmem:[%s1154_s0 + $0xa0] sm:$0xff]  ;;  %v231_v19 = vld [vmem:[%s1157_s3 + $0x70] sm:$0xff]  ;;  %v38_v22 = vld [vmem:[%s1154_s0 + $0xa8] sm:$0xff] }
   0xe   :  { %350 = vst [vmem:[%s1158_s4 + $0x28] sm:$0xff] %v286_v42  ;;  %v167_v13 = vadd.f32 %v451_v2, %v99_v3  ;;  %v101_v15 = vmul.f32 %v446_v1, %v33_v4  ;;  %v292_v18 = vadd.f32 %v228_v0, %v164_v63  ;;  %v102_v20 = vmul.f32 %v446_v1, %v34_v5  ;;  %v232_v25 = vld [vmem:[%s1157_s3 + $0x78] sm:$0xff]  ;;  %v39_v28 = vld [vmem:[%s1154_s0 + $0xb0] sm:$0xff]  ;;  %v233_v30 = vld [vmem:[%s1157_s3 + $0x80] sm:$0xff] }
   0xf   :  { %351 = vst [vmem:[%s1158_s4 + $0x30] sm:$0xff] %v287_v48  ;;  %v103_v21 = vmul.f32 %v446_v1, %v35_v10  ;;  %v293_v23 = vadd.f32 %v229_v8, %v165_v7  ;;  %v168_v24 = vadd.f32 %v451_v2, %v100_v14  ;;  %v104_v27 = vmul.f32 %v446_v1, %v36_v16  ;;  %v40_v34 = vld [vmem:[%s1154_s0 + $0xb8] sm:$0xff]  ;;  %v41_v35 = vld [vmem:[%s1154_s0 + $0xc0] sm:$0xff]  ;;  %v234_v37 = vld [vmem:[%s1157_s3 + $0x88] sm:$0xff] }
  0x10   :  { %352 = vst [vmem:[%s1158_s4 + $0x38] sm:$0xff] %v288_v61  ;;  %v169_v26 = vadd.f32 %v451_v2, %v101_v15  ;;  %v294_v29 = vadd.f32 %v230_v12, %v166_v9  ;;  %v170_v31 = vadd.f32 %v451_v2, %v102_v20  ;;  %v105_v32 = vmul.f32 %v446_v1, %v37_v17  ;;  %v42_v40 = vld [vmem:[%s1154_s0 + $0xc8] sm:$0xff]  ;;  %v235_v42 = vld [vmem:[%s1157_s3 + $0x90] sm:$0xff]  ;;  %v236_v46 = vld [vmem:[%s1157_s3 + $0x98] sm:$0xff] }
  0x11   :  { %353 = vst [vmem:[%s1158_s4 + $0x40] sm:$0xff] %v289_v62  ;;  %v106_v33 = vmul.f32 %v446_v1, %v38_v22  ;;  %v295_v36 = vadd.f32 %v231_v19, %v167_v13  ;;  %v171_v38 = vadd.f32 %v451_v2, %v103_v21  ;;  %v107_v39 = vmul.f32 %v446_v1, %v39_v28  ;;  %v43_v44 = vld [vmem:[%s1154_s0 + $0xd0] sm:$0xff]  ;;  %v44_v50 = vld [vmem:[%s1154_s0 + $0xd8] sm:$0xff]  ;;  %v237_v52 = vld [vmem:[%s1157_s3 + $0xa0] sm:$0xff] }
  0x12   :  { %354 = vst [vmem:[%s1158_s4 + $0x48] sm:$0xff] %v290_v6  ;;  %v296_v41 = vadd.f32 %v232_v25, %v168_v24  ;;  %v172_v43 = vadd.f32 %v451_v2, %v104_v27  ;;  %v297_v45 = vadd.f32 %v233_v30, %v169_v26  ;;  %v173_v47 = vadd.f32 %v451_v2, %v105_v32  ;;  %v45_v55 = vld [vmem:[%s1154_s0 + $0xe0] sm:$0xff]  ;;  %v238_v57 = vld [vmem:[%s1157_s3 + $0xa8] sm:$0xff]  ;;  %v239_v62 = vld [vmem:[%s1157_s3 + $0xb0] sm:$0xff] }
  0x13   :  { %355 = vst [vmem:[%s1158_s4 + $0x50] sm:$0xff] %v291_v11  ;;  %v108_v48 = vmul.f32 %v446_v1, %v40_v34  ;;  %v109_v49 = vmul.f32 %v446_v1, %v41_v35  ;;  %v298_v51 = vadd.f32 %v234_v37, %v170_v31  ;;  %v174_v53 = vadd.f32 %v451_v2, %v106_v33  ;;  %v46_v60 = vld [vmem:[%s1154_s0 + $0xe8] sm:$0xff]  ;;  %v47_v3 = vld [vmem:[%s1154_s0 + $0xf0] sm:$0xff]  ;;  %v240_v5 = vld [vmem:[%s1157_s3 + $0xb8] sm:$0xff] }
  0x14   :  { %356 = vst [vmem:[%s1158_s4 + $0x58] sm:$0xff] %v292_v18  ;;  %v110_v54 = vmul.f32 %v446_v1, %v42_v40  ;;  %v299_v56 = vadd.f32 %v235_v42, %v171_v38  ;;  %v175_v58 = vadd.f32 %v451_v2, %v107_v39  ;;  %v111_v59 = vmul.f32 %v446_v1, %v43_v44  ;;  %v48_v8 = vld [vmem:[%s1154_s0 + $0xf8] sm:$0xff]  ;;  %v241_v10 = vld [vmem:[%s1157_s3 + $0xc0] sm:$0xff]  ;;  %v242_v15 = vld [vmem:[%s1157_s3 + $0xc8] sm:$0xff] }
  0x15   :  { %357 = vst [vmem:[%s1158_s4 + $0x60] sm:$0xff] %v293_v23  ;;  %v300_v61 = vadd.f32 %v236_v46, %v172_v43  ;;  %v176_v63 = vadd.f32 %v451_v2, %v108_v48  ;;  %v112_v0 = vmul.f32 %v446_v1, %v44_v50  ;;  %v301_v4 = vadd.f32 %v237_v52, %v173_v47  ;;  %v49_v13 = vld [vmem:[%s1154_s0 + $0x100] sm:$0xff]  ;;  %v50_v18 = vld [vmem:[%s1154_s0 + $0x108] sm:$0xff]  ;;  %v243_v20 = vld [vmem:[%s1157_s3 + $0xd0] sm:$0xff] }
  0x16   :  { %358 = vst [vmem:[%s1158_s4 + $0x68] sm:$0xff] %v294_v29  ;;  %v177_v6 = vadd.f32 %v451_v2, %v109_v49  ;;  %v113_v7 = vmul.f32 %v446_v1, %v45_v55  ;;  %v302_v9 = vadd.f32 %v238_v57, %v174_v53  ;;  %v178_v11 = vadd.f32 %v451_v2, %v110_v54  ;;  %v51_v23 = vld [vmem:[%s1154_s0 + $0x110] sm:$0xff]  ;;  %v244_v25 = vld [vmem:[%s1157_s3 + $0xd8] sm:$0xff]  ;;  %v245_v30 = vld [vmem:[%s1157_s3 + $0xe0] sm:$0xff] }
  0x17   :  { %359 = vst [vmem:[%s1158_s4 + $0x70] sm:$0xff] %v295_v36  ;;  %v114_v12 = vmul.f32 %v446_v1, %v46_v60  ;;  %v303_v14 = vadd.f32 %v239_v62, %v175_v58  ;;  %v179_v16 = vadd.f32 %v451_v2, %v111_v59  ;;  %v115_v17 = vmul.f32 %v446_v1, %v47_v3  ;;  %v52_v28 = vld [vmem:[%s1154_s0 + $0x118] sm:$0xff]  ;;  %v53_v33 = vld [vmem:[%s1154_s0 + $0x120] sm:$0xff]  ;;  %v246_v35 = vld [vmem:[%s1157_s3 + $0xe8] sm:$0xff] }
  0x18   :  { %360 = vst [vmem:[%s1158_s4 + $0x78] sm:$0xff] %v296_v41  ;;  %v304_v19 = vadd.f32 %v240_v5, %v176_v63  ;;  %v180_v21 = vadd.f32 %v451_v2, %v112_v0  ;;  %v116_v22 = vmul.f32 %v446_v1, %v48_v8  ;;  %v305_v24 = vadd.f32 %v241_v10, %v177_v6  ;;  %v54_v38 = vld [vmem:[%s1154_s0 + $0x128] sm:$0xff]  ;;  %v247_v40 = vld [vmem:[%s1157_s3 + $0xf0] sm:$0xff]  ;;  %v56_v48 = vld [vmem:[%s1154_s0 + $0x138] sm:$0xff] }
  0x19   :  { %361 = vst [vmem:[%s1158_s4 + $0x80] sm:$0xff] %v297_v45  ;;  %v181_v26 = vadd.f32 %v451_v2, %v113_v7  ;;  %v117_v27 = vmul.f32 %v446_v1, %v49_v13  ;;  %v306_v29 = vadd.f32 %v242_v15, %v178_v11  ;;  %v182_v31 = vadd.f32 %v451_v2, %v114_v12  ;;  %v55_v43 = vld [vmem:[%s1154_s0 + $0x130] sm:$0xff]  ;;  %v248_v45 = vld [vmem:[%s1157_s3 + $0xf8] sm:$0xff]  ;;  %v249_v50 = vld [vmem:[%s1157_s3 + $0x100] sm:$0xff] }
  0x1a   :  { %362 = vst [vmem:[%s1158_s4 + $0x88] sm:$0xff] %v298_v51  ;;  %v118_v32 = vmul.f32 %v446_v1, %v50_v18  ;;  %v307_v34 = vadd.f32 %v243_v20, %v179_v16  ;;  %v183_v36 = vadd.f32 %v451_v2, %v115_v17  ;;  %v119_v37 = vmul.f32 %v446_v1, %v51_v23  ;;  %v57_v53 = vld [vmem:[%s1154_s0 + $0x140] sm:$0xff]  ;;  %v250_v55 = vld [vmem:[%s1157_s3 + $0x108] sm:$0xff]  ;;  %v251_v60 = vld [vmem:[%s1157_s3 + $0x110] sm:$0xff] }
  0x1b   :  { %363 = vst [vmem:[%s1158_s4 + $0x90] sm:$0xff] %v299_v56  ;;  %v308_v39 = vadd.f32 %v244_v25, %v180_v21  ;;  %v184_v41 = vadd.f32 %v451_v2, %v116_v22  ;;  %v120_v42 = vmul.f32 %v446_v1, %v52_v28  ;;  %v309_v44 = vadd.f32 %v245_v30, %v181_v26  ;;  %v58_v58 = vld [vmem:[%s1154_s0 + $0x148] sm:$0xff]  ;;  %v59_v63 = vld [vmem:[%s1154_s0 + $0x150] sm:$0xff]  ;;  %v252_v3 = vld [vmem:[%s1157_s3 + $0x118] sm:$0xff] }
  0x1c   :  { %364 = vst [vmem:[%s1158_s4 + $0x98] sm:$0xff] %v300_v61  ;;  %v185_v46 = vadd.f32 %v451_v2, %v117_v27  ;;  %v121_v47 = vmul.f32 %v446_v1, %v53_v33  ;;  %v310_v49 = vadd.f32 %v246_v35, %v182_v31  ;;  %v186_v51 = vadd.f32 %v451_v2, %v118_v32  ;;  %v60_v6 = vld [vmem:[%s1154_s0 + $0x158] sm:$0xff]  ;;  %v253_v8 = vld [vmem:[%s1157_s3 + $0x120] sm:$0xff]  ;;  %v254_v13 = vld [vmem:[%s1157_s3 + $0x128] sm:$0xff] }
  0x1d   :  { %365 = vst [vmem:[%s1158_s4 + $0xa0] sm:$0xff] %v301_v4  ;;  %v122_v52 = vmul.f32 %v446_v1, %v54_v38  ;;  %v311_v54 = vadd.f32 %v247_v40, %v183_v36  ;;  %v187_v56 = vadd.f32 %v451_v2, %v119_v37  ;;  %v123_v57 = vmul.f32 %v446_v1, %v55_v43  ;;  %v61_v11 = vld [vmem:[%s1154_s0 + $0x160] sm:$0xff]  ;;  %v62_v16 = vld [vmem:[%s1154_s0 + $0x168] sm:$0xff]  ;;  %v255_v18 = vld [vmem:[%s1157_s3 + $0x130] sm:$0xff] }
  0x1e   :  { %366 = vst [vmem:[%s1158_s4 + $0xa8] sm:$0xff] %v302_v9  ;;  %v312_v59 = vadd.f32 %v248_v45, %v184_v41  ;;  %v188_v61 = vadd.f32 %v451_v2, %v120_v42  ;;  %v124_v62 = vmul.f32 %v446_v1, %v56_v48  ;;  %v313_v0 = vadd.f32 %v249_v50, %v185_v46  ;;  %v63_v21 = vld [vmem:[%s1154_s0 + $0x170] sm:$0xff]  ;;  %v256_v23 = vld [vmem:[%s1157_s3 + $0x138] sm:$0xff]  ;;  %v257_v28 = vld [vmem:[%s1157_s3 + $0x140] sm:$0xff] }
  0x1f   :  { %367 = vst [vmem:[%s1158_s4 + $0xb0] sm:$0xff] %v303_v14  ;;  %v189_v4 = vadd.f32 %v451_v2, %v121_v47  ;;  %v125_v5 = vmul.f32 %v446_v1, %v57_v53  ;;  %v314_v7 = vadd.f32 %v250_v55, %v186_v51  ;;  %v190_v9 = vadd.f32 %v451_v2, %v122_v52  ;;  %v64_v26 = vld [vmem:[%s1154_s0 + $0x178] sm:$0xff]  ;;  %v65_v31 = vld [vmem:[%s1154_s0 + $0x180] sm:$0xff]  ;;  %v258_v33 = vld [vmem:[%s1157_s3 + $0x148] sm:$0xff] }
  0x20   :  { %368 = vst [vmem:[%s1158_s4 + $0xb8] sm:$0xff] %v304_v19  ;;  %v126_v10 = vmul.f32 %v446_v1, %v58_v58  ;;  %v315_v12 = vadd.f32 %v251_v60, %v187_v56  ;;  %v191_v14 = vadd.f32 %v451_v2, %v123_v57  ;;  %v127_v15 = vmul.f32 %v446_v1, %v59_v63  ;;  %v66_v36 = vld [vmem:[%s1154_s0 + $0x188] sm:$0xff]  ;;  %v259_v38 = vld [vmem:[%s1157_s3 + $0x150] sm:$0xff]  ;;  %v260_v43 = vld [vmem:[%s1157_s3 + $0x158] sm:$0xff] }
  0x21   :  { %369 = vst [vmem:[%s1158_s4 + $0xc0] sm:$0xff] %v305_v24  ;;  %v316_v17 = vadd.f32 %v252_v3, %v188_v61  ;;  %v192_v19 = vadd.f32 %v451_v2, %v124_v62  ;;  %v128_v20 = vmul.f32 %v446_v1, %v60_v6  ;;  %v317_v22 = vadd.f32 %v253_v8, %v189_v4  ;;  %v67_v41 = vld [vmem:[%s1154_s0 + $0x190] sm:$0xff]  ;;  %v68_v46 = vld [vmem:[%s1154_s0 + $0x198] sm:$0xff]  ;;  %v261_v48 = vld [vmem:[%s1157_s3 + $0x160] sm:$0xff] }
  0x22   :  { %370 = vst [vmem:[%s1158_s4 + $0xc8] sm:$0xff] %v306_v29  ;;  %v193_v24 = vadd.f32 %v451_v2, %v125_v5  ;;  %v129_v25 = vmul.f32 %v446_v1, %v61_v11  ;;  %v318_v27 = vadd.f32 %v254_v13, %v190_v9  ;;  %v194_v29 = vadd.f32 %v451_v2, %v126_v10  ;;  %v69_v51 = vld [vmem:[%s1154_s0 + $0x1a0] sm:$0xff]  ;;  %v262_v53 = vld [vmem:[%s1157_s3 + $0x168] sm:$0xff]  ;;  %v263_v58 = vld [vmem:[%s1157_s3 + $0x170] sm:$0xff] }
  0x23   :  { %371 = vst [vmem:[%s1158_s4 + $0xd0] sm:$0xff] %v307_v34  ;;  %v130_v30 = vmul.f32 %v446_v1, %v62_v16  ;;  %v319_v32 = vadd.f32 %v255_v18, %v191_v14  ;;  %v195_v34 = vadd.f32 %v451_v2, %v127_v15  ;;  %v131_v35 = vmul.f32 %v446_v1, %v63_v21  ;;  %v70_v56 = vld [vmem:[%s1154_s0 + $0x1a8] sm:$0xff]  ;;  %v71_v61 = vld [vmem:[%s1154_s0 + $0x1b0] sm:$0xff]  ;;  %v80_v62 = vld [vmem:[%s1154_s0 + $0x1f8] sm:$0xff] }
  0x24   :  { %372 = vst [vmem:[%s1158_s4 + $0xd8] sm:$0xff] %v308_v39  ;;  %v320_v37 = vadd.f32 %v256_v23, %v192_v19  ;;  %v196_v39 = vadd.f32 %v451_v2, %v128_v20  ;;  %v132_v40 = vmul.f32 %v446_v1, %v64_v26  ;;  %v321_v42 = vadd.f32 %v257_v28, %v193_v24  ;;  %v72_v5 = vld [vmem:[%s1154_s0 + $0x1b8] sm:$0xff]  ;;  %v73_v10 = vld [vmem:[%s1154_s0 + $0x1c0] sm:$0xff]  ;;  %v74_v15 = vld [vmem:[%s1154_s0 + $0x1c8] sm:$0xff] }
  0x25   :  { %373 = vst [vmem:[%s1158_s4 + $0xe0] sm:$0xff] %v309_v44  ;;  %v197_v44 = vadd.f32 %v451_v2, %v129_v25  ;;  %v133_v45 = vmul.f32 %v446_v1, %v65_v31  ;;  %v322_v47 = vadd.f32 %v258_v33, %v194_v29  ;;  %v134_v50 = vmul.f32 %v446_v1, %v66_v36  ;;  %v267_v18 = vld [vmem:[%s1157_s3 + $0x190] sm:$0xff]  ;;  %v268_v23 = vld [vmem:[%s1157_s3 + $0x198] sm:$0xff]  ;;  %v269_v29 = vld [vmem:[%s1157_s3 + $0x1a0] sm:$0xff] }
  0x26   :  { %374 = vst [vmem:[%s1158_s4 + $0xe8] sm:$0xff] %v310_v49  ;;  %v198_v49 = vadd.f32 %v451_v2, %v130_v30  ;;  %v323_v52 = vadd.f32 %v259_v38, %v195_v34  ;;  %v135_v55 = vmul.f32 %v446_v1, %v67_v41  ;;  %v324_v57 = vadd.f32 %v260_v43, %v196_v39  ;;  %v75_v21 = vld [vmem:[%s1154_s0 + $0x1d0] sm:$0xff]  ;;  %v76_v26 = vld [vmem:[%s1154_s0 + $0x1d8] sm:$0xff]  ;;  %v270_v34 = vld [vmem:[%s1157_s3 + $0x1a8] sm:$0xff] }
  0x27   :  { %375 = vst [vmem:[%s1158_s4 + $0xf0] sm:$0xff] %v311_v54  ;;  %v199_v54 = vadd.f32 %v451_v2, %v131_v35  ;;  %v136_v60 = vmul.f32 %v446_v1, %v68_v46  ;;  %v325_v63 = vadd.f32 %v261_v48, %v197_v44  ;;  %v201_v3 = vadd.f32 %v451_v2, %v133_v45  ;;  %v271_v39 = vld [vmem:[%s1157_s3 + $0x1b0] sm:$0xff]  ;;  %v272_v44 = vld [vmem:[%s1157_s3 + $0x1b8] sm:$0xff]  ;;  %v273_v48 = vld [vmem:[%s1157_s3 + $0x1c0] sm:$0xff] }
  0x28   :  { %376 = vst [vmem:[%s1158_s4 + $0xf8] sm:$0xff] %v312_v59  ;;  %v200_v59 = vadd.f32 %v451_v2, %v132_v40  ;;  %v137_v4 = vmul.f32 %v446_v1, %v69_v51  ;;  %v326_v6 = vadd.f32 %v262_v53, %v198_v49  ;;  %v202_v8 = vadd.f32 %v451_v2, %v134_v50 }
  0x29   :  { %377 = vst [vmem:[%s1158_s4 + $0x100] sm:$0xff] %v313_v0  ;;  %v264_v0 = vld [vmem:[%s1157_s3 + $0x178] sm:$0xff]  ;;  %v138_v9 = vmul.f32 %v446_v1, %v70_v56  ;;  %v327_v11 = vadd.f32 %v263_v58, %v199_v54  ;;  %v203_v13 = vadd.f32 %v451_v2, %v135_v55  ;;  %v139_v14 = vmul.f32 %v446_v1, %v71_v61  ;;  %v275_v56 = vld [vmem:[%s1157_s3 + $0x1d0] sm:$0xff]  ;;  %v277_v61 = vld [vmem:[%s1157_s3 + $0x1e0] sm:$0xff] }
  0x2a   :  { %378 = vst [vmem:[%s1158_s4 + $0x108] sm:$0xff] %v314_v7  ;;  %v265_v7 = vld [vmem:[%s1157_s3 + $0x180] sm:$0xff]  ;;  %v148_v16 = vmul.f32 %v446_v1, %v80_v62  ;;  %v204_v19 = vadd.f32 %v451_v2, %v136_v60  ;;  %v140_v20 = vmul.f32 %v446_v1, %v72_v5  ;;  %v205_v24 = vadd.f32 %v451_v2, %v137_v4  ;;  %v279_v5 = vld [vmem:[%s1157_s3 + $0x1f0] sm:$0xff] }
  0x2b   :  { %379 = vst [vmem:[%s1158_s4 + $0x110] sm:$0xff] %v315_v12  ;;  %v266_v12 = vld [vmem:[%s1157_s3 + $0x188] sm:$0xff]  ;;  %v141_v25 = vmul.f32 %v446_v1, %v73_v10  ;;  %v206_v30 = vadd.f32 %v451_v2, %v138_v9  ;;  %v142_v31 = vmul.f32 %v446_v1, %v74_v15  ;;  %v331_v33 = vadd.f32 %v267_v18, %v203_v13 }
  0x2c   :  { %380 = vst [vmem:[%s1158_s4 + $0x118] sm:$0xff] %v316_v17  ;;  %v328_v17 = vadd.f32 %v264_v0, %v200_v59  ;;  %v330_v28 = vadd.f32 %v266_v12, %v202_v8  ;;  %v207_v35 = vadd.f32 %v451_v2, %v139_v14  ;;  %v143_v36 = vmul.f32 %v446_v1, %v75_v21  ;;  %v278_v0 = vld [vmem:[%s1157_s3 + $0x1e8] sm:$0xff] }
  0x2d   :  { %381 = vst [vmem:[%s1158_s4 + $0x120] sm:$0xff] %v317_v22  ;;  %v329_v22 = vadd.f32 %v265_v7, %v201_v3  ;;  %v332_v38 = vadd.f32 %v268_v23, %v204_v19  ;;  %v208_v40 = vadd.f32 %v451_v2, %v140_v20  ;;  %v144_v41 = vmul.f32 %v446_v1, %v76_v26  ;;  %v280_v7 = vld [vmem:[%s1157_s3 + $0x1f8] sm:$0xff] }
  0x2e   :  { %382 = vst [vmem:[%s1158_s4 + $0x128] sm:$0xff] %v318_v27  ;;  %v216_v27 = vadd.f32 %v451_v2, %v148_v16  ;;  %v333_v43 = vadd.f32 %v269_v29, %v205_v24  ;;  %v209_v45 = vadd.f32 %v451_v2, %v141_v25  ;;  %v210_v49 = vadd.f32 %v451_v2, %v142_v31 }
  0x2f   :  { %383 = vst [vmem:[%s1158_s4 + $0x130] sm:$0xff] %v319_v32  ;;  %v77_v32 = vld [vmem:[%s1154_s0 + $0x1e0] sm:$0xff]  ;;  %v335_v51 = vadd.f32 %v271_v39, %v207_v35  ;;  %v211_v53 = vadd.f32 %v451_v2, %v143_v36  ;;  %v336_v55 = vadd.f32 %v272_v44, %v208_v40 }
  0x30   :  { %384 = vst [vmem:[%s1158_s4 + $0x138] sm:$0xff] %v320_v37  ;;  %v78_v37 = vld [vmem:[%s1154_s0 + $0x1e8] sm:$0xff]  ;;  %v145_v46 = vmul.f32 %v446_v1, %v77_v32  ;;  %v337_v58 = vadd.f32 %v273_v48, %v209_v45  ;;  %v344_v9 = vadd.f32 %v280_v7, %v216_v27 }
  0x31   :  { %385 = vst [vmem:[%s1158_s4 + $0x140] sm:$0xff] %v321_v42  ;;  %v79_v42 = vld [vmem:[%s1154_s0 + $0x1f0] sm:$0xff]  ;;  %v146_v50 = vmul.f32 %v446_v1, %v78_v37 }
  0x32   :  { %386 = vst [vmem:[%s1158_s4 + $0x148] sm:$0xff] %v322_v47  ;;  %v334_v47 = vadd.f32 %v270_v34, %v206_v30  ;;  %v147_v54 = vmul.f32 %v446_v1, %v79_v42  ;;  %v276_v1 = vld [vmem:[%s1157_s3 + $0x1d8] sm:$0xff]  ;;  %v213_v59 = vadd.f32 %v451_v2, %v145_v46 }
  0x33   :  { %387 = vst [vmem:[%s1158_s4 + $0x150] sm:$0xff] %v323_v52  ;;  %v274_v52 = vld [vmem:[%s1157_s3 + $0x1c8] sm:$0xff]  ;;  %v214_v62 = vadd.f32 %v451_v2, %v146_v50 }
  0x34   :  { %388 = vst [vmem:[%s1158_s4 + $0x158] sm:$0xff] %v324_v57  ;;  %v212_v57 = vadd.f32 %v451_v2, %v144_v41  ;;  %v338_v60 = vadd.f32 %v274_v52, %v210_v49  ;;  %v215_v3 = vadd.f32 %v451_v2, %v147_v54 }
  0x35   :  { %389 = vst [vmem:[%s1158_s4 + $0x160] sm:$0xff] %v325_v63  ;;  %v339_v63 = vadd.f32 %v275_v56, %v211_v53  ;;  %v342_v2 = vadd.f32 %v278_v0, %v214_v62 }
  0x36   :  { %390 = vst [vmem:[%s1158_s4 + $0x168] sm:$0xff] %v326_v6  ;;  %v340_v4 = vadd.f32 %v276_v1, %v212_v57  ;;  %v341_v6 = vadd.f32 %v277_v61, %v213_v59  ;;  %v343_v8 = vadd.f32 %v279_v5, %v215_v3 }
  0x37   :  { %391 = vst [vmem:[%s1158_s4 + $0x170] sm:$0xff] %v327_v11 }
  0x38   :  { %392 = vst [vmem:[%s1158_s4 + $0x178] sm:$0xff] %v328_v17 }
  0x39   :  { %393 = vst [vmem:[%s1158_s4 + $0x180] sm:$0xff] %v329_v22 }
  0x3a   :  { %394 = vst [vmem:[%s1158_s4 + $0x188] sm:$0xff] %v330_v28 }
  0x3b   :  { %395 = vst [vmem:[%s1158_s4 + $0x190] sm:$0xff] %v331_v33 }
  0x3c   :  { %396 = vst [vmem:[%s1158_s4 + $0x198] sm:$0xff] %v332_v38 }
  0x3d   :  { %397 = vst [vmem:[%s1158_s4 + $0x1a0] sm:$0xff] %v333_v43 }
  0x3e   :  { %398 = vst [vmem:[%s1158_s4 + $0x1a8] sm:$0xff] %v334_v47 }
  0x3f   :  { %399 = vst [vmem:[%s1158_s4 + $0x1b0] sm:$0xff] %v335_v51 }
  0x40   :  { %400 = vst [vmem:[%s1158_s4 + $0x1b8] sm:$0xff] %v336_v55 }
  0x41   :  { %401 = vst [vmem:[%s1158_s4 + $0x1c0] sm:$0xff] %v337_v58 }
  0x42   :  { %402 = vst [vmem:[%s1158_s4 + $0x1c8] sm:$0xff] %v338_v60 }
  0x43   :  { %403 = vst [vmem:[%s1158_s4 + $0x1d0] sm:$0xff] %v339_v63 }
  0x44   :  { %404 = vst [vmem:[%s1158_s4 + $0x1d8] sm:$0xff] %v340_v4 }
  0x45   :  { %405 = vst [vmem:[%s1158_s4 + $0x1e0] sm:$0xff] %v341_v6 }
  0x46   :  { %406 = vst [vmem:[%s1158_s4 + $0x1e8] sm:$0xff] %v342_v2 }
  0x47   :  { %407 = vst [vmem:[%s1158_s4 + $0x1f0] sm:$0xff] %v343_v8 }
  0x48   :  { %408 = vst [vmem:[%s1158_s4 + $0x1f8] sm:$0xff] %v344_v9 }

// kernel: _lambda_.10
= control target key start
LH: loop header
LB: loop body
LE: loop exit
PB: predicated region body
PF: predicated region fallthrough
CT: control target
= control target key end

     0   :  { %s1119_s24 = smov 0   ;;  %s1121_s25 = smov 0   ;;  %s1553_s0 = inlined_call_operand.vmem [shape: f32[2,256,128], index: 0, kind: input, shape index: {}]   ;;  %s1554_s1 = inlined_call_operand.vmem [shape: f32[1,128], index: 1, kind: input, shape index: {}]   ;;  %s1555_s2 = inlined_call_operand.vmem [shape: f32[1,128], index: 2, kind: input, shape index: {}]   ;;  %s1556_s3 = inlined_call_operand.vmem [shape: f32[2,1,128], index: 3, kind: input, shape index: {}]   ;;  %s1557_s4 = inlined_call_operand.vmem [shape: f32[128,128], index: 4, kind: input, shape index: {}]   ;;  %s1558_s5 = inlined_call_operand.vmem [shape: f32[1,128], index: 5, kind: input, shape index: {}]   ;;  %s1559_s6 = inlined_call_operand.vmem [shape: f32[2,256,128], index: 6, kind: output, shape index: {0}]   ;;  %s1560_s7 = inlined_call_operand.vmem [shape: f32[2,1,2,128], index: 7, kind: output, shape index: {1}]  }
   0x1   :  { %s1123_s26 = smov 0  }
   0x2 LB: > { %s30_s27 = sadd.s32 1, %s1073_s25  ;;  %p969_p0 = scmp.ge.s32.totalorder %s1077_s26, 1  ;;  %s1077_s26 = sphi %s1123_s26, %s18_s26   ;;  %s1073_s25 = sphi %s1121_s25, %s1562_s25   ;;  %s1069_s24 = sphi %s1119_s24, %s1561_s24  }
   0x3   : > { %p32_p1 = scmp.ge.s32.totalorder %s30_s27, 2  ;;  %p271_p2 = scmp.lt.s32.totalorder %s1077_s26, 3 }
   0x5   : > { %s1564_s27 = smov (%p32_p1, %s30_s27), 0  ;;  %p272_p3 = pnand %p969_p0, %p271_p2 }
   0x6   : > { %p322_p4 = scmp.lt.s32.totalorder (!%p272_p3), %s1069_s24, 1 }
   0x7   : > { %275 = sbr.rel (%p272_p3) target bundleno = 293 (0x125), region = 44 }
   0xc   : > { %v570_v0 = vld [vmem:[%s1557_s4 + $0x78] sm:$0xff]  ;;  %v569_v1 = vld [vmem:[%s1557_s4 + $0x70] sm:$0xff]  ;;  %v568_v2 = vld [vmem:[%s1557_s4 + $0x68] sm:$0xff]  ;;  %s1566_s24 = smov (!%p322_p4, %s1069_s24), 1 }
   0xd   : > { %575 = vmatpush.msra.mxu0 %v570_v0  ;;  %979 = vmatpush.msra.mxu1 %v570_v0  ;;  %v567_v3 = vld [vmem:[%s1557_s4 + $0x60] sm:$0xff]  ;;  %s977_s13 = sshll.u32 %s1566_s24, 8  ;;  %v566_v4 = vld [vmem:[%s1557_s4 + $0x58] sm:$0xff]  ;;  %s333_s21 = scalar_lea.vmem %s1556_s3, %s1566_s24  ;;  %v565_v5 = vld [vmem:[%s1557_s4 + $0x50] sm:$0xff] }
   0xe   : > { %980 = vmatpush.msra.mxu2 %v570_v0  ;;  %981 = vmatpush.msra.mxu3 %v570_v0  ;;  %s1160_s18 = scalar_lea.vmem %s1553_s0, %s977_s13  ;;  %v1172_v6 = vld [vmem:[%s1554_s1] ss:$0 sm:$0xff]  ;;  %v564_v9 = vld [vmem:[%s1557_s4 + $0x48] sm:$0xff]  ;;  %v562_v14 = vld [vmem:[%s1557_s4 + $0x38] sm:$0xff]  ;;  %s1354_s19 = scalar_lea.vmem %s1559_s6, %s977_s13 }
   0xf   : > { %576 = vmatpush.msra.mxu0 %v569_v1  ;;  %982 = vmatpush.msra.mxu1 %v569_v1  ;;  %v351_v7 = vld [vmem:[%s1160_s18] sm:$0xff]  ;;  %v561_v16 = vld [vmem:[%s1557_s4 + $0x30] sm:$0xff]  ;;  %v352_v18 = vld [vmem:[%s1160_s18 + $0x8] sm:$0xff]  ;;  %s974_s13 = sshll.u32 %s1566_s24, 1 }
  0x10   : > { %983 = vmatpush.msra.mxu2 %v569_v1  ;;  %984 = vmatpush.msra.mxu3 %v569_v1  ;;  %v359_v8 = vld [vmem:[%s1160_s18 + $0x40] sm:$0xff]  ;;  %v387_v11 = vmul.f32 %v1172_v6, %v351_v7  ;;  %v360_v20 = vld [vmem:[%s1160_s18 + $0x48] sm:$0xff]  ;;  %v388_v23 = vmul.f32 %v1172_v6, %v352_v18  ;;  %v558_v29 = vld [vmem:[%s1557_s4 + $0x18] sm:$0xff]  ;;  %s350_s23 = scalar_lea.vmem %s1560_s7, %s974_s13 }
  0x11   : > { %577 = vmatpush.msra.mxu0 %v568_v2  ;;  %985 = vmatpush.msra.mxu1 %v568_v2  ;;  %v563_v10 = vld [vmem:[%s1557_s4 + $0x40] sm:$0xff]  ;;  %v395_v13 = vmul.f32 %v1172_v6, %v359_v8  ;;  %v560_v22 = vld [vmem:[%s1557_s4 + $0x28] sm:$0xff]  ;;  %v396_v28 = vmul.f32 %v1172_v6, %v360_v20  ;;  %v557_v33 = vld [vmem:[%s1557_s4 + $0x10] sm:$0xff] }
  0x12   : > { %986 = vmatpush.msra.mxu2 %v568_v2  ;;  %987 = vmatpush.msra.mxu3 %v568_v2  ;;  %v1186_v12 = vld [vmem:[%s1555_s2] ss:$0 sm:$0xff]  ;;  %v368_v32 = vld [vmem:[%s1160_s18 + $0x88] sm:$0xff]  ;;  %v353_v36 = vld [vmem:[%s1160_s18 + $0x10] sm:$0xff] }
  0x13   : > { %578 = vmatpush.msra.mxu0 %v567_v3  ;;  %988 = vmatpush.msra.mxu1 %v567_v3  ;;  %v367_v15 = vld [vmem:[%s1160_s18 + $0x80] sm:$0xff]  ;;  %v423_v17 = vadd.f32 %v1186_v12, %v387_v11  ;;  %v431_v19 = vadd.f32 %v1186_v12, %v395_v13  ;;  %v424_v31 = vadd.f32 %v1186_v12, %v388_v23  ;;  %v361_v40 = vld [vmem:[%s1160_s18 + $0x50] sm:$0xff]  ;;  %v556_v41 = vld [vmem:[%s1557_s4 + $0x8] sm:$0xff] }
  0x14   : > { %989 = vmatpush.msra.mxu2 %v567_v3  ;;  %990 = vmatpush.msra.mxu3 %v567_v3  ;;  %v403_v21 = vmul.f32 %v1172_v6, %v367_v15  ;;  %v559_v25 = vld [vmem:[%s1557_s4 + $0x20] sm:$0xff]  ;;  %v432_v38 = vadd.f32 %v1186_v12, %v396_v28  ;;  %v404_v39 = vmul.f32 %v1172_v6, %v368_v32  ;;  %v369_v54 = vld [vmem:[%s1160_s18 + $0x90] sm:$0xff]  ;;  %v354_v57 = vld [vmem:[%s1160_s18 + $0x18] sm:$0xff] }
  0x15   : > { %579 = vmatpush.msra.mxu0 %v566_v4  ;;  %991 = vmatpush.msra.mxu1 %v566_v4  ;;  %v455_v26 = vmax.f32 %v423_v17, 0.0  ;;  %v463_v27 = vmax.f32 %v431_v19, 0.0  ;;  %v1223_v35 = vld [vmem:[%s333_s21] ss:$0 sm:$0xff]  ;;  %v456_v44 = vmax.f32 %v424_v31, 0.0  ;;  %v389_v45 = vmul.f32 %v1172_v6, %v353_v36  ;;  %v362_v60 = vld [vmem:[%s1160_s18 + $0x58] sm:$0xff] }
  0x16   : > { %992 = vmatpush.msra.mxu2 %v566_v4  ;;  %993 = vmatpush.msra.mxu3 %v566_v4  ;;  %v439_v24 = vadd.f32 %v1186_v12, %v403_v21  ;;  %v440_v43 = vadd.f32 %v1186_v12, %v404_v39  ;;  %v555_v46 = vld [vmem:[%s1557_s4] sm:$0xff]  ;;  %v464_v49 = vmax.f32 %v432_v38, 0.0  ;;  %v397_v50 = vmul.f32 %v1172_v6, %v361_v40  ;;  %v370_v15 = vld [vmem:[%s1160_s18 + $0x98] sm:$0xff]  ;;  %v356_v39 = vld [vmem:[%s1160_s18 + $0x28] sm:$0xff] }
  0x17   : > { %580 = vmatpush.msra.mxu0 %v565_v5  ;;  %994 = vmatpush.msra.mxu1 %v565_v5  ;;  %v487_v34 = vmin.f32 %v455_v26, 6.0  ;;  %v495_v37 = vmin.f32 %v463_v27, 6.0  ;;  %v425_v53 = vadd.f32 %v1186_v12, %v389_v45  ;;  %v375_v55 = vld [vmem:[%s1160_s18 + $0xc0] sm:$0xff]  ;;  %v488_v56 = vmin.f32 %v456_v44, 6.0 }
  0x18   : > { %995 = vmatpush.msra.mxu2 %v565_v5  ;;  %996 = vmatpush.msra.mxu3 %v565_v5  ;;  %v471_v30 = vmax.f32 %v439_v24, 0.0  ;;  %v472_v52 = vmax.f32 %v440_v43, 0.0  ;;  %v496_v58 = vmin.f32 %v464_v49, 6.0  ;;  %v433_v59 = vadd.f32 %v1186_v12, %v397_v50  ;;  %v355_v18 = vld [vmem:[%s1160_s18 + $0x20] sm:$0xff] }
  0x19   : > { %581 = vmatpush.msra.mxu0 %v564_v9  ;;  %997 = vmatpush.msra.mxu1 %v564_v9  ;;  %v523_v47 = vmul.f32 %v1223_v35, %v487_v34  ;;  %v531_v48 = vmul.f32 %v1223_v35, %v495_v37  ;;  %v405_v61 = vmul.f32 %v1172_v6, %v369_v54  ;;  %v457_v0 = vmax.f32 %v425_v53, 0.0  ;;  %v363_v23 = vld [vmem:[%s1160_s18 + $0x60] sm:$0xff] }
  0x1a   : > { %998 = vmatpush.msra.mxu2 %v564_v9  ;;  %999 = vmatpush.msra.mxu3 %v564_v9  ;;  %v503_v42 = vmin.f32 %v471_v30, 6.0  ;;  %v411_v62 = vmul.f32 %v1172_v6, %v375_v55  ;;  %v504_v63 = vmin.f32 %v472_v52, 6.0  ;;  %v390_v1 = vmul.f32 %v1172_v6, %v354_v57 }
  0x1b   : > { %582 = vmatpush.msra.mxu0 %v563_v10  ;;  %1000 = vmatpush.msra.mxu1 %v563_v10  ;;  %v441_v2 = vadd.f32 %v1186_v12, %v405_v61  ;;  %v524_v4 = vmul.f32 %v1223_v35, %v488_v56  ;;  %v532_v5 = vmul.f32 %v1223_v35, %v496_v58  ;;  %v465_v7 = vmax.f32 %v433_v59, 0.0 }
  0x1c   : > { %1001 = vmatpush.msra.mxu2 %v563_v10  ;;  %1002 = vmatpush.msra.mxu3 %v563_v10  ;;  %v539_v51 = vmul.f32 %v1223_v35, %v503_v42  ;;  %v447_v3 = vadd.f32 %v1186_v12, %v411_v62  ;;  %v398_v8 = vmul.f32 %v1172_v6, %v362_v60  ;;  %v489_v13 = vmin.f32 %v457_v0, 6.0  ;;  %v377_v42 = vld [vmem:[%s1160_s18 + $0xd0] sm:$0xff] }
  0x1d   : > { %583 = vmatpush.msra.mxu0 %v562_v14  ;;  %1003 = vmatpush.msra.mxu1 %v562_v14  ;;  %v540_v10 = vmul.f32 %v1223_v35, %v504_v63  ;;  %v473_v11 = vmax.f32 %v441_v2, 0.0  ;;  %v426_v17 = vadd.f32 %v1186_v12, %v390_v1  ;;  %v497_v19 = vmin.f32 %v465_v7, 6.0  ;;  %v372_v1 = vld [vmem:[%s1160_s18 + $0xa8] sm:$0xff]  ;;  %v378_v2 = vld [vmem:[%s1160_s18 + $0xd8] sm:$0xff] }
  0x1e   : > { %1004 = vmatpush.msra.mxu2 %v562_v14  ;;  %1005 = vmatpush.msra.mxu3 %v562_v14  ;;  %v479_v9 = vmax.f32 %v447_v3, 0.0  ;;  %v434_v20 = vadd.f32 %v1186_v12, %v398_v8  ;;  %v406_v21 = vmul.f32 %v1172_v6, %v370_v15  ;;  %v525_v27 = vmul.f32 %v1223_v35, %v489_v13  ;;  %v357_v3 = vld [vmem:[%s1160_s18 + $0x30] sm:$0xff]  ;;  %v379_v8 = vld [vmem:[%s1160_s18 + $0xe0] sm:$0xff] }
  0x1f   : > { %584 = vmatpush.msra.mxu0 %v561_v16  ;;  %1006 = vmatpush.msra.mxu1 %v561_v16  ;;  %v391_v28 = vmul.f32 %v1172_v6, %v355_v18  ;;  %v458_v30 = vmax.f32 %v426_v17, 0.0  ;;  %v533_v31 = vmul.f32 %v1223_v35, %v497_v19  ;;  %v413_v49 = vmul.f32 %v1172_v6, %v377_v42 }
  0x20   : > { %1007 = vmatpush.msra.mxu2 %v561_v16  ;;  %1008 = vmatpush.msra.mxu3 %v561_v16  ;;  %v511_v14 = vmin.f32 %v479_v9, 6.0  ;;  %v376_v16 = vld [vmem:[%s1160_s18 + $0xc8] sm:$0xff]  ;;  %v442_v26 = vadd.f32 %v1186_v12, %v406_v21  ;;  %v466_v32 = vmax.f32 %v434_v20, 0.0  ;;  %v392_v50 = vmul.f32 %v1172_v6, %v356_v39  ;;  %v373_v20 = vld [vmem:[%s1160_s18 + $0xb0] sm:$0xff] }
  0x21   : > { %585 = vmatpush.msra.mxu0 %v560_v22  ;;  %1009 = vmatpush.msra.mxu1 %v560_v22  ;;  %v412_v24 = vmul.f32 %v1172_v6, %v376_v16  ;;  %v427_v38 = vadd.f32 %v1186_v12, %v391_v28  ;;  %v490_v43 = vmin.f32 %v458_v30, 6.0  ;;  %v449_v54 = vadd.f32 %v1186_v12, %v413_v49  ;;  %v374_v49 = vld [vmem:[%s1160_s18 + $0xb8] sm:$0xff] }
  0x22   : > { %1010 = vmatpush.msra.mxu2 %v560_v22  ;;  %1011 = vmatpush.msra.mxu3 %v560_v22  ;;  %v547_v22 = vmul.f32 %v1223_v35, %v511_v14  ;;  %v474_v37 = vmax.f32 %v442_v26, 0.0  ;;  %v498_v44 = vmin.f32 %v466_v32, 6.0  ;;  %v428_v60 = vadd.f32 %v1186_v12, %v392_v50 }
  0x23   : > { %586 = vmatpush.msra.mxu0 %v559_v25  ;;  %1012 = vmatpush.msra.mxu1 %v559_v25  ;;  %v459_v53 = vmax.f32 %v427_v38, 0.0  ;;  %v526_v55 = vmul.f32 %v1223_v35, %v490_v43  ;;  %v481_v59 = vmax.f32 %v449_v54, 0.0  ;;  %v408_v7 = vmul.f32 %v1172_v6, %v372_v1  ;;  %v381_v54 = vld [vmem:[%s1160_s18 + $0xf0] sm:$0xff] }
  0x24   : > { %1013 = vmatpush.msra.mxu2 %v559_v25  ;;  %1014 = vmatpush.msra.mxu3 %v559_v25  ;;  %v505_v25 = vmin.f32 %v473_v11, 6.0  ;;  %v534_v56 = vmul.f32 %v1223_v35, %v498_v44  ;;  %v414_v11 = vmul.f32 %v1172_v6, %v378_v2  ;;  %v460_v13 = vmax.f32 %v428_v60, 0.0 }
  0x25   : > { %587 = vmatpush.msra.mxu0 %v558_v29  ;;  %1015 = vmatpush.msra.mxu1 %v558_v29  ;;  %v491_v63 = vmin.f32 %v459_v53, 6.0  ;;  %v513_v0 = vmin.f32 %v481_v59, 6.0  ;;  %v444_v15 = vadd.f32 %v1186_v12, %v408_v7  ;;  %v415_v16 = vmul.f32 %v1172_v6, %v379_v8 }
  0x26   : > { %1016 = vmatpush.msra.mxu2 %v558_v29  ;;  %1017 = vmatpush.msra.mxu3 %v558_v29  ;;  %v448_v29 = vadd.f32 %v1186_v12, %v412_v24  ;;  %v541_v36 = vmul.f32 %v1223_v35, %v505_v25  ;;  %v393_v18 = vmul.f32 %v1172_v6, %v357_v3  ;;  %v380_v25 = vld [vmem:[%s1160_s18 + $0xe8] sm:$0xff] }
  0x27   : > { %588 = vmatpush.msra.mxu0 %v557_v33  ;;  %1018 = vmatpush.msra.mxu1 %v557_v33  ;;  %v549_v9 = vmul.f32 %v1223_v35, %v513_v0  ;;  %v527_v17 = vmul.f32 %v1223_v35, %v491_v63  ;;  %v450_v19 = vadd.f32 %v1186_v12, %v414_v11 }
  0x28   : > { %1019 = vmatpush.msra.mxu2 %v557_v33  ;;  %1020 = vmatpush.msra.mxu3 %v557_v33  ;;  %v399_v33 = vmul.f32 %v1172_v6, %v363_v23  ;;  %v480_v34 = vmax.f32 %v448_v29, 0.0  ;;  %v451_v24 = vadd.f32 %v1186_v12, %v415_v16  ;;  %v476_v29 = vmax.f32 %v444_v15, 0.0 }
  0x29   : > { %589 = vmatpush.msra.mxu0 %v556_v41  ;;  %1021 = vmatpush.msra.mxu1 %v556_v41  ;;  %v482_v26 = vmax.f32 %v450_v19, 0.0  ;;  %v409_v30 = vmul.f32 %v1172_v6, %v373_v20  ;;  %v417_v63 = vmul.f32 %v1172_v6, %v381_v54 }
  0x2a   : > { %1022 = vmatpush.msra.mxu2 %v556_v41  ;;  %1023 = vmatpush.msra.mxu3 %v556_v41  ;;  %v512_v40 = vmin.f32 %v480_v34, 6.0  ;;  %v371_v41 = vld [vmem:[%s1160_s18 + $0xa0] sm:$0xff]  ;;  %v435_v45 = vadd.f32 %v1186_v12, %v399_v33  ;;  %v483_v33 = vmax.f32 %v451_v24, 0.0  ;;  %v416_v34 = vmul.f32 %v1172_v6, %v380_v25 }
  0x2b   : > { %590 = vmatpush.msra.mxu0 %v555_v46  ;;  %1024 = vmatpush.msra.mxu1 %v555_v46  ;;  %v514_v32 = vmin.f32 %v482_v26, 6.0  ;;  %v508_v43 = vmin.f32 %v476_v29, 6.0  ;;  %v445_v44 = vadd.f32 %v1186_v12, %v409_v30  ;;  %v1347_v25 = vld [vmem:[%s1558_s5] ss:$0 sm:$0xff] }
  0x2c   : > { %591 = vmatmul.f32.vlgmr.msra.gmra.mxu0 %v523_v47  ;;  %615 = vmatmul.f32.vlgmr.msra.gmra.mxu1 %v531_v48  ;;  %v548_v47 = vmul.f32 %v1223_v35, %v512_v40  ;;  %v364_v48 = vld [vmem:[%s1160_s18 + $0x68] sm:$0xff]  ;;  %v467_v57 = vmax.f32 %v435_v45, 0.0  ;;  %v452_v50 = vadd.f32 %v1186_v12, %v416_v34 }
  0x2d   : > { %1025 = vmatpush.msra.mxu2 %v555_v46  ;;  %1026 = vmatpush.msra.mxu3 %v555_v46  ;;  %v407_v46 = vmul.f32 %v1172_v6, %v371_v41  ;;  %v400_v58 = vmul.f32 %v1172_v6, %v364_v48  ;;  %v550_v40 = vmul.f32 %v1223_v35, %v514_v32  ;;  %v366_v41 = vld [vmem:[%s1160_s18 + $0x78] sm:$0xff]  ;;  %v515_v48 = vmin.f32 %v483_v33, 6.0 }
  0x2e   : > { %639 = vmatmul.f32.vlgmr.msra.gmra.mxu2 %v539_v51  ;;  %663 = vmatmul.f32.vlgmr.msra.gmra.mxu3 %v547_v22  ;;  %v506_v51 = vmin.f32 %v474_v37, 6.0  ;;  %v358_v37 = vld [vmem:[%s1160_s18 + $0x38] sm:$0xff]  ;;  %v402_v53 = vmul.f32 %v1172_v6, %v366_v41 }
  0x2f   : > { %v443_v52 = vadd.f32 %v1186_v12, %v407_v46 }
  0x30   : > { %v542_v61 = vmul.f32 %v1223_v35, %v506_v51  ;;  %v438_v2 = vadd.f32 %v1186_v12, %v402_v53 }
  0x31   : > { %v475_v62 = vmax.f32 %v443_v52, 0.0 }
  0x33   : > { %v507_v14 = vmin.f32 %v475_v62, 6.0  ;;  %v484_v62 = vmax.f32 %v452_v50, 0.0 }
  0x34   : > { %594 = vmatmul.f32.gmra.mxu0 %v524_v4  ;;  %618 = vmatmul.f32.gmra.mxu1 %v532_v5  ;;  %v499_v4 = vmin.f32 %v467_v57, 6.0  ;;  %v436_v5 = vadd.f32 %v1186_v12, %v400_v58  ;;  %v477_v57 = vmax.f32 %v445_v44, 0.0  ;;  %v410_v58 = vmul.f32 %v1172_v6, %v374_v49 }
  0x35   : > { %v543_v28 = vmul.f32 %v1223_v35, %v507_v14  ;;  %v516_v8 = vmin.f32 %v484_v62, 6.0 }
  0x36   : > { %642 = vmatmul.f32.gmra.mxu2 %v540_v10  ;;  %666 = vmatmul.f32.gmra.mxu3 %v548_v47  ;;  %v365_v10 = vld [vmem:[%s1160_s18 + $0x70] sm:$0xff]  ;;  %v535_v21 = vmul.f32 %v1223_v35, %v499_v4  ;;  %v468_v22 = vmax.f32 %v436_v5, 0.0  ;;  %v394_v47 = vmul.f32 %v1172_v6, %v358_v37  ;;  %v509_v4 = vmin.f32 %v477_v57, 6.0 }
  0x37   : > { %v401_v23 = vmul.f32 %v1172_v6, %v365_v10  ;;  %v446_v5 = vadd.f32 %v1186_v12, %v410_v58  ;;  %v552_v16 = vmul.f32 %v1223_v35, %v516_v8 }
  0x38   : > { %v500_v38 = vmin.f32 %v468_v22, 6.0  ;;  %v430_v0 = vadd.f32 %v1186_v12, %v394_v47  ;;  %v545_v14 = vmul.f32 %v1223_v35, %v509_v4 }
  0x39   : > { %v437_v39 = vadd.f32 %v1186_v12, %v401_v23  ;;  %v478_v15 = vmax.f32 %v446_v5, 0.0 }
  0x3a   : > { %v536_v51 = vmul.f32 %v1223_v35, %v500_v38  ;;  %v462_v10 = vmax.f32 %v430_v0, 0.0 }
  0x3b   : > { %v469_v52 = vmax.f32 %v437_v39, 0.0  ;;  %v510_v20 = vmin.f32 %v478_v15, 6.0 }
  0x3c   : > { %597 = vmatmul.f32.gmra.mxu0 %v525_v27  ;;  %621 = vmatmul.f32.gmra.mxu1 %v533_v31  ;;  %v492_v27 = vmin.f32 %v460_v13, 6.0  ;;  %v429_v31 = vadd.f32 %v1186_v12, %v393_v18  ;;  %v470_v13 = vmax.f32 %v438_v2, 0.0  ;;  %v494_v18 = vmin.f32 %v462_v10, 6.0 }
  0x3d   : > { %v501_v1 = vmin.f32 %v469_v52, 6.0  ;;  %v546_v23 = vmul.f32 %v1223_v35, %v510_v20 }
  0x3e   : > { %645 = vmatmul.f32.gmra.mxu2 %v541_v36  ;;  %669 = vmatmul.f32.gmra.mxu3 %v549_v9  ;;  %v382_v36 = vld [vmem:[%s1160_s18 + $0xf8] sm:$0xff]  ;;  %v528_v42 = vmul.f32 %v1223_v35, %v492_v27  ;;  %v461_v46 = vmax.f32 %v429_v31, 0.0  ;;  %v453_v9 = vadd.f32 %v1186_v12, %v417_v63  ;;  %v502_v19 = vmin.f32 %v470_v13, 6.0 }
  0x3f   : > { %v418_v45 = vmul.f32 %v1172_v6, %v382_v36  ;;  %v537_v11 = vmul.f32 %v1223_v35, %v501_v1 }
  0x40   : > { %v493_v60 = vmin.f32 %v461_v46, 6.0  ;;  %v538_v22 = vmul.f32 %v1223_v35, %v502_v19 }
  0x42   : > { %v529_v6 = vmul.f32 %v1223_v35, %v493_v60 }
  0x44   : > { %600 = vmatmul.f32.gmra.mxu0 %v526_v55  ;;  %624 = vmatmul.f32.gmra.mxu1 %v534_v56  ;;  %v454_v55 = vadd.f32 %v1186_v12, %v418_v45  ;;  %v544_v56 = vmul.f32 %v1223_v35, %v508_v43 }
  0x46   : > { %648 = vmatmul.f32.gmra.mxu2 %v542_v61  ;;  %672 = vmatmul.f32.gmra.mxu3 %v550_v40  ;;  %v486_v59 = vmax.f32 %v454_v55, 0.0  ;;  %v551_v61 = vmul.f32 %v1223_v35, %v515_v48 }
  0x48   : > { %v518_v3 = vmin.f32 %v486_v59, 6.0 }
  0x4a   : > { %v554_v7 = vmul.f32 %v1223_v35, %v518_v3 }
  0x4c   : > { %603 = vmatmul.f32.gmra.mxu0 %v527_v17  ;;  %627 = vmatmul.f32.gmra.mxu1 %v535_v21  ;;  %v485_v17 = vmax.f32 %v453_v9, 0.0  ;;  %v530_v21 = vmul.f32 %v1223_v35, %v494_v18 }
  0x4e   : > { %651 = vmatmul.f32.gmra.mxu2 %v543_v28  ;;  %675 = vmatmul.f32.gmra.mxu3 %v551_v61  ;;  %v517_v12 = vmin.f32 %v485_v17, 6.0 }
  0x50   : > { %v553_v24 = vmul.f32 %v1223_v35, %v517_v12 }
  0x54   : > { %606 = vmatmul.f32.gmra.mxu0 %v528_v42  ;;  %630 = vmatmul.f32.gmra.mxu1 %v536_v51 }
  0x56   : > { %654 = vmatmul.f32.gmra.mxu2 %v544_v56  ;;  %678 = vmatmul.f32.gmra.mxu3 %v552_v16 }
  0x5c   : > { %609 = vmatmul.f32.gmra.mxu0 %v529_v6  ;;  %633 = vmatmul.f32.gmra.mxu1 %v537_v11 }
  0x5e   : > { %657 = vmatmul.f32.gmra.mxu2 %v545_v14  ;;  %681 = vmatmul.f32.gmra.mxu3 %v553_v24 }
  0x64   : > { %612 = vmatmul.f32.gmra.mxu0 %v530_v21  ;;  %636 = vmatmul.f32.gmra.mxu1 %v538_v22 }
  0x66   : > { %660 = vmatmul.f32.gmra.mxu2 %v546_v23  ;;  %684 = vmatmul.f32.gmra.mxu3 %v554_v7 }
  0xa9   : > { %v592_v35 = vpop.f32.mrf.mxu0  ;;  %v616_v26 = vpop.f32.mrf.mxu1 }
  0xaa   : > { %v1357_v27 = vadd.f32 %v1347_v25, %v592_v35  ;;  %v1360_v28 = vadd.f32 %v1347_v25, %v616_v26 }
  0xac   : > { %688 = vst [vmem:[%s1354_s19] sm:$0xff] %v1357_v27  ;;  %v758_v5 = vmul.f32 %v1357_v27, %v1357_v27 }
  0xad   : > { %696 = vst [vmem:[%s1354_s19 + $0x40] sm:$0xff] %v1360_v28 }
  0xb1   : > { %v595_v29 = vpop.f32.mrf.mxu0  ;;  %v619_v30 = vpop.f32.mrf.mxu1 }
  0xb2   : > { %v596_v31 = vadd.f32 %v1347_v25, %v595_v29  ;;  %v1368_v32 = vadd.f32 %v1347_v25, %v619_v30  ;;  %v640_v33 = vpop.f32.mrf.mxu2  ;;  %v664_v41 = vpop.f32.mrf.mxu3 }
  0xb3   : > { %v1371_v34 = vadd.f32 %v1347_v25, %v640_v33  ;;  %v1386_v43 = vadd.f32 %v1347_v25, %v664_v41 }
  0xb4   : > { %689 = vst [vmem:[%s1354_s19 + $0x8] sm:$0xff] %v596_v31  ;;  %v759_v4 = vmul.f32 %v596_v31, %v596_v31  ;;  %v720_v7 = vadd.f32 %v596_v31, %v1357_v27 }
  0xb5   : > { %697 = vst [vmem:[%s1354_s19 + $0x48] sm:$0xff] %v1368_v32 }
  0xb6   : > { %704 = vst [vmem:[%s1354_s19 + $0x80] sm:$0xff] %v1371_v34  ;;  %v790_v9 = vadd.f32 %v759_v4, %v758_v5 }
  0xb7   : > { %712 = vst [vmem:[%s1354_s19 + $0xc0] sm:$0xff] %v1386_v43 }
  0xb9   : > { %v598_v36 = vpop.f32.mrf.mxu0  ;;  %v622_v37 = vpop.f32.mrf.mxu1 }
  0xba   : > { %v599_v38 = vadd.f32 %v1347_v25, %v598_v36  ;;  %v1380_v39 = vadd.f32 %v1347_v25, %v622_v37  ;;  %v643_v40 = vpop.f32.mrf.mxu2  ;;  %v667_v49 = vpop.f32.mrf.mxu3 }
  0xbb   : > { %v1383_v42 = vadd.f32 %v1347_v25, %v643_v40  ;;  %v1403_v51 = vadd.f32 %v1347_v25, %v667_v49  ;;  %v766_v49 = vmul.f32 %v1360_v28, %v1360_v28 }
  0xbc   : > { %690 = vst [vmem:[%s1354_s19 + $0x10] sm:$0xff] %v599_v38  ;;  %v760_v8 = vmul.f32 %v599_v38, %v599_v38  ;;  %v721_v11 = vadd.f32 %v720_v7, %v599_v38 }
  0xbd   : > { %698 = vst [vmem:[%s1354_s19 + $0x50] sm:$0xff] %v1380_v39 }
  0xbe   : > { %705 = vst [vmem:[%s1354_s19 + $0x88] sm:$0xff] %v1383_v42  ;;  %v791_v20 = vadd.f32 %v790_v9, %v760_v8 }
  0xbf   : > { %713 = vst [vmem:[%s1354_s19 + $0xc8] sm:$0xff] %v1403_v51 }
  0xc1   : > { %v601_v44 = vpop.f32.mrf.mxu0  ;;  %v625_v45 = vpop.f32.mrf.mxu1 }
  0xc2   : > { %v602_v46 = vadd.f32 %v1347_v25, %v601_v44  ;;  %v1397_v47 = vadd.f32 %v1347_v25, %v625_v45  ;;  %v646_v48 = vpop.f32.mrf.mxu2  ;;  %v670_v57 = vpop.f32.mrf.mxu3 }
  0xc3   : > { %v1400_v50 = vadd.f32 %v1347_v25, %v646_v48  ;;  %v1420_v59 = vadd.f32 %v1347_v25, %v670_v57 }
  0xc4   : > { %691 = vst [vmem:[%s1354_s19 + $0x18] sm:$0xff] %v602_v46  ;;  %v761_v13 = vmul.f32 %v602_v46, %v602_v46  ;;  %v722_v12 = vadd.f32 %v721_v11, %v602_v46  ;;  %v769_v5 = vmul.f32 %v1397_v47, %v1397_v47 }
  0xc5   : > { %699 = vst [vmem:[%s1354_s19 + $0x58] sm:$0xff] %v1397_v47 }
  0xc6   : > { %706 = vst [vmem:[%s1354_s19 + $0x90] sm:$0xff] %v1400_v50  ;;  %v792_v22 = vadd.f32 %v791_v20, %v761_v13 }
  0xc7   : > { %714 = vst [vmem:[%s1354_s19 + $0xd0] sm:$0xff] %v1420_v59 }
  0xc9   : > { %v604_v52 = vpop.f32.mrf.mxu0  ;;  %v628_v53 = vpop.f32.mrf.mxu1 }
  0xca   : > { %v605_v54 = vadd.f32 %v1347_v25, %v604_v52  ;;  %v1414_v55 = vadd.f32 %v1347_v25, %v628_v53  ;;  %v649_v56 = vpop.f32.mrf.mxu2  ;;  %v673_v1 = vpop.f32.mrf.mxu3 }
  0xcb   : > { %v1417_v58 = vadd.f32 %v1347_v25, %v649_v56  ;;  %v1437_v3 = vadd.f32 %v1347_v25, %v673_v1 }
  0xcc   : > { %692 = vst [vmem:[%s1354_s19 + $0x20] sm:$0xff] %v605_v54  ;;  %v762_v21 = vmul.f32 %v605_v54, %v605_v54  ;;  %v723_v23 = vadd.f32 %v722_v12, %v605_v54  ;;  %v767_v54 = vmul.f32 %v1368_v32, %v1368_v32  ;;  %v770_v8 = vmul.f32 %v1414_v55, %v1414_v55 }
  0xcd   : > { %700 = vst [vmem:[%s1354_s19 + $0x60] sm:$0xff] %v1414_v55 }
  0xce   : > { %707 = vst [vmem:[%s1354_s19 + $0x98] sm:$0xff] %v1417_v58  ;;  %v793_v35 = vadd.f32 %v792_v22, %v762_v21 }
  0xcf   : > { %715 = vst [vmem:[%s1354_s19 + $0xd8] sm:$0xff] %v1437_v3 }
  0xd1   : > { %v607_v60 = vpop.f32.mrf.mxu0  ;;  %v631_v61 = vpop.f32.mrf.mxu1 }
  0xd2   : > { %v608_v62 = vadd.f32 %v1347_v25, %v607_v60  ;;  %v1431_v63 = vadd.f32 %v1347_v25, %v631_v61  ;;  %v652_v0 = vpop.f32.mrf.mxu2  ;;  %v676_v17 = vpop.f32.mrf.mxu3  ;;  %v768_v60 = vmul.f32 %v1380_v39, %v1380_v39 }
  0xd3   : > { %v1434_v2 = vadd.f32 %v1347_v25, %v652_v0  ;;  %v1455_v19 = vadd.f32 %v1347_v25, %v676_v17 }
  0xd4   : > { %693 = vst [vmem:[%s1354_s19 + $0x28] sm:$0xff] %v608_v62  ;;  %v763_v24 = vmul.f32 %v608_v62, %v608_v62  ;;  %v724_v26 = vadd.f32 %v723_v23, %v608_v62 }
  0xd5   : > { %701 = vst [vmem:[%s1354_s19 + $0x68] sm:$0xff] %v1431_v63 }
  0xd6   : > { %708 = vst [vmem:[%s1354_s19 + $0xa0] sm:$0xff] %v1434_v2  ;;  %v794_v31 = vadd.f32 %v793_v35, %v763_v24 }
  0xd7   : > { %716 = vst [vmem:[%s1354_s19 + $0xe0] sm:$0xff] %v1455_v19 }
  0xd9   : > { %v610_v6 = vpop.f32.mrf.mxu0  ;;  %v634_v10 = vpop.f32.mrf.mxu1 }
  0xda   : > { %v611_v14 = vadd.f32 %v1347_v25, %v610_v6  ;;  %v635_v15 = vadd.f32 %v1347_v25, %v634_v10  ;;  %v655_v16 = vpop.f32.mrf.mxu2  ;;  %v679_v40 = vpop.f32.mrf.mxu3  ;;  %v771_v10 = vmul.f32 %v1431_v63, %v1431_v63 }
  0xdb   : > { %v1452_v18 = vadd.f32 %v1347_v25, %v655_v16  ;;  %v1467_v44 = vadd.f32 %v1347_v25, %v679_v40 }
  0xdc   : > { %694 = vst [vmem:[%s1354_s19 + $0x30] sm:$0xff] %v611_v14  ;;  %v764_v27 = vmul.f32 %v611_v14, %v611_v14  ;;  %v725_v33 = vadd.f32 %v724_v26, %v611_v14 }
  0xdd   : > { %702 = vst [vmem:[%s1354_s19 + $0x70] sm:$0xff] %v635_v15 }
  0xde   : > { %709 = vst [vmem:[%s1354_s19 + $0xa8] sm:$0xff] %v1452_v18  ;;  %v795_v45 = vadd.f32 %v794_v31, %v764_v27  ;;  %v777_v27 = vmul.f32 %v1417_v58, %v1417_v58 }
  0xdf   : > { %717 = vst [vmem:[%s1354_s19 + $0xe8] sm:$0xff] %v1467_v44 }
  0xe1   : > { %v613_v29 = vpop.f32.mrf.mxu0  ;;  %v637_v30 = vpop.f32.mrf.mxu1 }
  0xe2   : > { %v614_v36 = vadd.f32 %v1347_v25, %v613_v29  ;;  %v638_v37 = vadd.f32 %v1347_v25, %v637_v30  ;;  %v658_v38 = vpop.f32.mrf.mxu2 }
  0xe3   : > { %v659_v41 = vadd.f32 %v1347_v25, %v658_v38 }
  0xe4   : > { %695 = vst [vmem:[%s1354_s19 + $0x38] sm:$0xff] %v614_v36  ;;  %v726_v46 = vadd.f32 %v725_v33, %v614_v36  ;;  %v765_v48 = vmul.f32 %v614_v36, %v614_v36  ;;  %v773_v16 = vmul.f32 %v638_v37, %v638_v37  ;;  %v779_v36 = vmul.f32 %v1452_v18, %v1452_v18 }
  0xe5   : > { %703 = vst [vmem:[%s1354_s19 + $0x78] sm:$0xff] %v638_v37  ;;  %v780_v40 = vmul.f32 %v659_v41, %v659_v41 }
  0xe6   : > { %v727_v52 = vadd.f32 %v726_v46, %v1360_v28  ;;  %v796_v53 = vadd.f32 %v795_v45, %v765_v48  ;;  %710 = vst [vmem:[%s1354_s19 + $0xb0] sm:$0xff] %v659_v41  ;;  %v682_v28 = vpop.f32.mrf.mxu3 }
  0xe7   : > { %v1485_v4 = vadd.f32 %v1347_v25, %v682_v28  ;;  %v787_v28 = vmul.f32 %v1467_v44, %v1467_v44 }
  0xe8   : > { %v728_v56 = vadd.f32 %v727_v52, %v1368_v32  ;;  %v797_v57 = vadd.f32 %v796_v53, %v766_v49 }
  0xe9   : > { %718 = vst [vmem:[%s1354_s19 + $0xf0] sm:$0xff] %v1485_v4 }
  0xea   : > { %v798_v61 = vadd.f32 %v797_v57, %v767_v54  ;;  %v729_v62 = vadd.f32 %v728_v56, %v1380_v39  ;;  %v661_v0 = vpop.f32.mrf.mxu2  ;;  %v785_v57 = vmul.f32 %v1437_v3, %v1437_v3 }
  0xeb   : > { %v662_v1 = vadd.f32 %v1347_v25, %v661_v0 }
  0xec   : > { %v730_v32 = vadd.f32 %v729_v62, %v1397_v47  ;;  %v799_v7 = vadd.f32 %v798_v61, %v768_v60  ;;  %v772_v47 = vmul.f32 %v635_v15, %v635_v15 }
  0xed   : > { %711 = vst [vmem:[%s1354_s19 + $0xb8] sm:$0xff] %v662_v1  ;;  %v781_v45 = vmul.f32 %v662_v1, %v662_v1 }
  0xee   : > { %v731_v39 = vadd.f32 %v730_v32, %v1414_v55  ;;  %v800_v9 = vadd.f32 %v799_v7, %v769_v5  ;;  %v685_v17 = vpop.f32.mrf.mxu3  ;;  %v774_v55 = vmul.f32 %v1371_v34, %v1371_v34 }
  0xef   : > { %v686_v20 = vadd.f32 %v1347_v25, %v685_v17 }
  0xf0   : > { %v732_v6 = vadd.f32 %v731_v39, %v1431_v63  ;;  %v801_v11 = vadd.f32 %v800_v9, %v770_v8  ;;  %v775_v63 = vmul.f32 %v1383_v42, %v1383_v42 }
  0xf1   : > { %719 = vst [vmem:[%s1354_s19 + $0xf8] sm:$0xff] %v686_v20  ;;  %v789_v32 = vmul.f32 %v686_v20, %v686_v20 }
  0xf2   : > { %v802_v13 = vadd.f32 %v801_v11, %v771_v10  ;;  %v733_v14 = vadd.f32 %v732_v6, %v635_v15  ;;  %v776_v15 = vmul.f32 %v1400_v50, %v1400_v50 }
  0xf4   : > { %v803_v12 = vadd.f32 %v802_v13, %v772_v47  ;;  %v734_v21 = vadd.f32 %v733_v14, %v638_v37 }
  0xf6   : > { %v735_v22 = vadd.f32 %v734_v21, %v1371_v34  ;;  %v804_v23 = vadd.f32 %v803_v12, %v773_v16  ;;  %v778_v34 = vmul.f32 %v1434_v2, %v1434_v2 }
  0xf8   : > { %v736_v24 = vadd.f32 %v735_v22, %v1383_v42  ;;  %v805_v35 = vadd.f32 %v804_v23, %v774_v55 }
  0xfa   : > { %v806_v26 = vadd.f32 %v805_v35, %v775_v63  ;;  %v737_v25 = vadd.f32 %v736_v24, %v1400_v50 }
  0xfc   : > { %v738_v29 = vadd.f32 %v737_v25, %v1417_v58  ;;  %v807_v30 = vadd.f32 %v806_v26, %v776_v15  ;;  %v782_v58 = vmul.f32 %v1386_v43, %v1386_v43 }
  0xfe   : > { %v739_v31 = vadd.f32 %v738_v29, %v1434_v2  ;;  %v808_v33 = vadd.f32 %v807_v30, %v777_v27  ;;  %v783_v2 = vmul.f32 %v1403_v51, %v1403_v51 }
 0x100   : > { %v740_v42 = vadd.f32 %v739_v31, %v1452_v18  ;;  %v809_v37 = vadd.f32 %v808_v33, %v778_v34  ;;  %v784_v18 = vmul.f32 %v1420_v59, %v1420_v59 }
 0x102   : > { %v810_v38 = vadd.f32 %v809_v37, %v779_v36  ;;  %v741_v50 = vadd.f32 %v740_v42, %v659_v41 }
 0x104   : > { %v811_v46 = vadd.f32 %v810_v38, %v780_v40  ;;  %v742_v48 = vadd.f32 %v741_v50, %v662_v1 }
 0x106   : > { %v743_v49 = vadd.f32 %v742_v48, %v1386_v43  ;;  %v812_v52 = vadd.f32 %v811_v46, %v781_v45  ;;  %v786_v43 = vmul.f32 %v1455_v19, %v1455_v19 }
 0x108   : > { %v744_v53 = vadd.f32 %v743_v49, %v1403_v51  ;;  %v813_v54 = vadd.f32 %v812_v52, %v782_v58 }
 0x10a   : > { %v814_v56 = vadd.f32 %v813_v54, %v783_v2  ;;  %v745_v41 = vadd.f32 %v744_v53, %v1420_v59 }
 0x10c   : > { %v746_v60 = vadd.f32 %v745_v41, %v1437_v3  ;;  %v815_v61 = vadd.f32 %v814_v56, %v784_v18  ;;  %v788_v3 = vmul.f32 %v1485_v4, %v1485_v4 }
 0x10e   : > { %v747_v62 = vadd.f32 %v746_v60, %v1455_v19  ;;  %v816_v0 = vadd.f32 %v815_v61, %v785_v57 }
 0x110   : > { %v748_v51 = vadd.f32 %v747_v62, %v1467_v44  ;;  %v817_v1 = vadd.f32 %v816_v0, %v786_v43 }
 0x112   : > { %v818_v59 = vadd.f32 %v817_v1, %v787_v28  ;;  %v749_v5 = vadd.f32 %v748_v51, %v1485_v4 }
 0x114   : > { %v819_v7 = vadd.f32 %v818_v59, %v788_v3  ;;  %v750_v8 = vadd.f32 %v749_v5, %v686_v20 }
 0x116   : > { %v751_v39 = vrot.slane %v750_v8, 4  ;;  %v820_v9 = vadd.f32 %v819_v7, %v789_v32 }
 0x118   : > { %v752_v19 = vadd.f32 %v751_v39, %v750_v8  ;;  %v821_v6 = vrot.slane %v820_v9, 4 }
 0x11a   : > { %v753_v10 = vrot.slane %v752_v19, 2  ;;  %v822_v11 = vadd.f32 %v821_v6, %v820_v9 }
 0x11c   : > { %v754_v13 = vadd.f32 %v753_v10, %v752_v19  ;;  %v823_v14 = vrot.slane %v822_v11, 2 }
 0x11e   : > { %v755_v44 = vrot.slane %v754_v13, 1  ;;  %v824_v47 = vadd.f32 %v823_v14, %v822_v11 }
 0x120   : > { %v756_v16 = vadd.f32 %v755_v44, %v754_v13  ;;  %v825_v4 = vrot.slane %v824_v47, 1 }
 0x122   : > { %757 = vst [vmem:[%s350_s23] sm:$0x1] %v756_v16  ;;  %v826_v17 = vadd.f32 %v825_v4, %v824_v47 }
 0x124   : > { %827 = vst [vmem:[%s350_s23 + $0x1] sm:$0x1] %v826_v17 }
 0x125 PF: > { %s18_s26 = sadd.s32 1, %s1077_s26   ;;  %s1561_s24 = smov %s1073_s25 }
 0x126   : > { %p15_p5 = scmp.ge.s32.totalorder %s18_s26, 4   ;;  %s1562_s25 = smov %s1564_s27 }
 0x128   :  { %17 = sbr.rel (!%p15_p5) target bundleno = 2 (0x2), region = 89 }

</bundles_post_ra>
